<compile_context>
chip_gen: v5e
topology: v5e:2x2
jax: 0.10.0
libtpu: 0.0.40
codegen_flags: <defaults>
</compile_context>

<pallas_src>
import functools
import math

import jax
import jax.numpy as jnp
from jax.experimental import pallas as pl
from jax.experimental.pallas import tpu as pltpu

# ---------------- model hyper-parameters (small, deterministic) ----------------
D_MODEL = 32
N_HEAD = 4
HEAD_DIM = D_MODEL // N_HEAD
DIM_FF = 64
NUM_LAYERS = 2
LN_EPS = 1e-5
_SCALE = 1.0 / math.sqrt(HEAD_DIM)


# =========================== in-kernel helpers ===========================

def _layer_norm(x, gamma, beta, eps=LN_EPS):
    mu = jnp.mean(x, axis=-1, keepdims=True)
    xc = x - mu
    var = jnp.mean(xc * xc, axis=-1, keepdims=True)
    return xc * jax.lax.rsqrt(var + eps) * gamma + beta


def _mha_heads(q, k, v, wo_t, bo, need_weights):
    """q:(Lq,D) k,v:(Lk,D) already projected (per-head columns).

    Returns (attention output incl. out-projection+bias (Lq,D),
             head-averaged attention weights (Lq,Lk) or None)."""
    lq = q.shape[0]
    lk = k.shape[0]
    q = q * _SCALE
    out = jnp.zeros((lq, D_MODEL), jnp.float32) + bo
    attn_sum = jnp.zeros((lq, lk), jnp.float32) if need_weights else None
    for h in range(N_HEAD):
        lo = h * HEAD_DIM
        hi = lo + HEAD_DIM
        qh = q[:, lo:hi]                               # (Lq, Dh)
        kh = k[:, lo:hi]                               # (Lk, Dh)
        vh = v[:, lo:hi]                               # (Lk, Dh)
        s = jax.lax.dot_general(qh, kh, (((1,), (1,)), ((), ())),
                                preferred_element_type=jnp.float32)   # (Lq, Lk)
        m = jnp.max(s, axis=-1, keepdims=True)
        p = jnp.exp(s - m)
        a = p * pl.reciprocal(jnp.sum(p, axis=-1, keepdims=True), approx=True)
        if need_weights:
            attn_sum = attn_sum + a
        oh = jnp.dot(a, vh, preferred_element_type=jnp.float32)       # (Lq, Dh)
        # fold the per-head slice of the output projection in directly
        # (avoids concatenating heads / extra layout ops)
        out = out + jnp.dot(oh, wo_t[lo:hi, :], preferred_element_type=jnp.float32)
    if need_weights:
        return out, attn_sum * (1.0 / N_HEAD)
    return out, None


# ===================== fully fused decoder-stack kernel =====================

def _decoder_stack_kernel(
        # activations (blocked over the batch grid axis)
        tgt_ref, qpos_ref, qtpos_ref, mem_ref, pos_ref,
        # per-layer weights, stacked along a leading layer axis
        sa_wqk_ref, sa_bqk_ref, sa_wv_ref, sa_bv_ref, sa_wo_ref, sa_bo_ref,
        ca_wq_ref, ca_bq_ref, ca_wk_ref, ca_bk_ref, ca_wv_ref, ca_bv_ref,
        ca_wo_ref, ca_bo_ref,
        ffn_w1_ref, ffn_b1_ref, ffn_w2_ref, ffn_b2_ref,
        # packed LayerNorm params: rows 0,1,2 = norm1/2/3, row 3 = decoder final norm
        ln_g_ref, ln_b_ref,
        # outputs: per-layer final-normed hidden states + head-avg cross-attn weights
        inter_ref, attn_ref,
        *, num_layers):
    f32 = jnp.float32
    tgt = tgt_ref[0].astype(f32)                       # (Lq, D)
    q_pos = qpos_ref[0].astype(f32)                    # query_pos
    sq_pos = q_pos + qtpos_ref[0].astype(f32)          # query_pos + query_time_pos
    mem = mem_ref[0].astype(f32)                       # (Lk, D)
    mem_k = mem + pos_ref[0].astype(f32)               # memory + pos (cross-attn keys)

    for l in range(num_layers):                        # unrolled: num_layers is static
        ln_g = ln_g_ref[l].astype(f32)                 # (4, D)
        ln_b = ln_b_ref[l].astype(f32)

        # ---- self attention (q/k carry query_pos + query_time_pos, value = tgt) ----
        q_in = tgt + sq_pos
        qk = (jnp.dot(q_in, sa_wqk_ref[l], preferred_element_type=f32)
              + sa_bqk_ref[l])                         # (Lq, 2D) fused Q|K
        v_s = jnp.dot(tgt, sa_wv_ref[l], preferred_element_type=f32) + sa_bv_ref[l]
        sa_out, _ = _mha_heads(qk[:, :D_MODEL], qk[:, D_MODEL:], v_s,
                               sa_wo_ref[l], sa_bo_ref[l], need_weights=False)
        tgt = _layer_norm(tgt + sa_out, ln_g[0:1, :], ln_b[0:1, :])

        # ---- cross attention to memory (keys carry pos) ----
        q_c = (jnp.dot(tgt + q_pos, ca_wq_ref[l], preferred_element_type=f32)
               + ca_bq_ref[l])
        k_c = jnp.dot(mem_k, ca_wk_ref[l], preferred_element_type=f32) + ca_bk_ref[l]
        v_c = jnp.dot(mem, ca_wv_ref[l], preferred_element_type=f32) + ca_bv_ref[l]
        ca_out, attn_avg = _mha_heads(q_c, k_c, v_c,
                                      ca_wo_ref[l], ca_bo_ref[l], need_weights=True)
        tgt = _layer_norm(tgt + ca_out, ln_g[1:2, :], ln_b[1:2, :])

        # ---- FFN ----
        h1 = jnp.maximum(
            jnp.dot(tgt, ffn_w1_ref[l], preferred_element_type=f32) + ffn_b1_ref[l],
            0.0)
        ffn = jnp.dot(h1, ffn_w2_ref[l], preferred_element_type=f32) + ffn_b2_ref[l]
        tgt = _layer_norm(tgt + ffn, ln_g[2:3, :], ln_b[2:3, :])

        # decoder-level final LayerNorm fused per layer (== torch intermediate entries)
        inter_ref[l, 0] = _layer_norm(tgt, ln_g[3:4, :], ln_b[3:4, :]).astype(inter_ref.dtype)
        attn_ref[l, 0] = attn_avg.astype(attn_ref.dtype)


_WEIGHT_ORDER = ("sa_wqk", "sa_bqk", "sa_wv", "sa_bv", "sa_wo", "sa_bo",
                 "ca_wq", "ca_bq", "ca_wk", "ca_bk", "ca_wv", "ca_bv",
                 "ca_wo", "ca_bo",
                 "ffn_w1", "ffn_b1", "ffn_w2", "ffn_b2",
                 "ln_g", "ln_b")


def decoder_stack(tgt, q_pos, q_time_pos, mem, pos, pw):
    """Fused full decoder stack. All activations batch-first.

    tgt/q_pos/q_time_pos: (B, Lq, D); mem/pos: (B, Lk, D).
    pw: dict of per-layer weights stacked along a leading layer axis.
    Returns (inter (L, B, Lq, D) = final_norm(output) after every layer,
             attn  (L, B, Lq, Lk) head-averaged cross-attn weights)."""
    B, Lq, D = tgt.shape
    Lk = mem.shape[1]
    L = pw["ln_g"].shape[0]

    def act_spec(length):
        return pl.BlockSpec((1, length, D), lambda b: (b, 0, 0))

    def full_spec(arr):
        nd = arr.ndim
        return pl.BlockSpec(arr.shape, lambda b, n=nd: (0,) * n)

    weights = [pw[name] for name in _WEIGHT_ORDER]

    in_specs = ([act_spec(Lq), act_spec(Lq), act_spec(Lq), act_spec(Lk), act_spec(Lk)]
                + [full_spec(w) for w in weights])
    out_specs = (pl.BlockSpec((L, 1, Lq, D), lambda b: (0, b, 0, 0)),
                 pl.BlockSpec((L, 1, Lq, Lk), lambda b: (0, b, 0, 0)))
    out_shape = (jax.ShapeDtypeStruct((L, B, Lq, D), tgt.dtype),
                 jax.ShapeDtypeStruct((L, B, Lq, Lk), jnp.float32))

    kernel = functools.partial(_decoder_stack_kernel, num_layers=L)
    return pl.pallas_call(
        kernel,
        out_shape=out_shape,
        grid=(B,),
        in_specs=in_specs,
        out_specs=out_specs,
        compiler_params=pltpu.CompilerParams(dimension_semantics=("parallel",)),
    )(tgt, q_pos, q_time_pos, mem, pos, *weights)


# =================== parameter preparation (one-time hoist) ===================

def _prep_attn(p):
    wq, wk, wv = jnp.split(p["in_proj_weight"], 3, axis=0)
    bq, bk, bv = jnp.split(p["in_proj_bias"], 3)
    return {
        "wq_t": wq.T, "wk_t": wk.T, "wv_t": wv.T,
        "bq": bq.reshape(1, -1), "bk": bk.reshape(1, -1), "bv": bv.reshape(1, -1),
        "wo_t": p["out_proj_weight"].T, "bo": p["out_proj_bias"].reshape(1, -1),
    }


def prepare_params(params):
    """Hoist all transposes / splits / bias reshapes / layer stacking out of the forward."""
    fg, fb = params["norm"]["gamma"], params["norm"]["beta"]
    per_layer = []
    for lp in params["layers"]:
        sa = _prep_attn(lp["self_attn"])
        ca = _prep_attn(lp["cross_attn"])
        per_layer.append({
            "sa_wqk": jnp.concatenate([sa["wq_t"], sa["wk_t"]], axis=1),   # (D, 2D)
            "sa_bqk": jnp.concatenate([sa["bq"], sa["bk"]], axis=1),       # (1, 2D)
            "sa_wv": sa["wv_t"], "sa_bv": sa["bv"],
            "sa_wo": sa["wo_t"], "sa_bo": sa["bo"],
            "ca_wq": ca["wq_t"], "ca_bq": ca["bq"],
            "ca_wk": ca["wk_t"], "ca_bk": ca["bk"],
            "ca_wv": ca["wv_t"], "ca_bv": ca["bv"],
            "ca_wo": ca["wo_t"], "ca_bo": ca["bo"],
            "ffn_w1": lp["linear1_w"].T, "ffn_b1": lp["linear1_b"].reshape(1, -1),
            "ffn_w2": lp["linear2_w"].T, "ffn_b2": lp["linear2_b"].reshape(1, -1),
            "ln_g": jnp.stack([lp["norm1"]["gamma"], lp["norm2"]["gamma"],
                               lp["norm3"]["gamma"], fg]),
            "ln_b": jnp.stack([lp["norm1"]["beta"], lp["norm2"]["beta"],
                               lp["norm3"]["beta"], fb]),
        })
    # stack every weight along a leading layer axis -> one array per weight name
    return {name: jnp.stack([d[name] for d in per_layer]) for name in _WEIGHT_ORDER}


# =============================== decoder forward ===============================

def time_decoder_forward(tgt, memory, prepared,
                         tgt_mask=None, memory_mask=None,
                         tgt_key_padding_mask=None, memory_key_padding_mask=None,
                         pos=None, query_pos=None, query_time_pos=None,
                         durations=None,
                         return_intermediate=True, return_weights=True):
    # TODO(synk): attention masks / key-padding masks / durations are accepted
    # but not wired into the fused kernel (the reference call passes None for all).
    del tgt_mask, memory_mask, tgt_key_padding_mask, memory_key_padding_mask, durations

    # Batch-first slabs once for the whole stack: (L, B, D) -> (B, L, D).
    tgt_b = jnp.transpose(tgt, (1, 0, 2))
    mem_b = jnp.transpose(memory, (1, 0, 2))
    pos_b = jnp.zeros_like(mem_b) if pos is None else jnp.transpose(pos, (1, 0, 2))
    qp_b = jnp.zeros_like(tgt_b) if query_pos is None else jnp.transpose(query_pos, (1, 0, 2))
    qtp_b = (jnp.zeros_like(tgt_b) if query_time_pos is None
             else jnp.transpose(query_time_pos, (1, 0, 2)))

    # One fused kernel for the whole stack.
    inter, attn = decoder_stack(tgt_b, qp_b, qtp_b, mem_b, pos_b, prepared)
    # inter[l] == final_norm(output after layer l); torch's pop()/append(norm(output))
    # is a semantic no-op, so inter already matches the stacked intermediates.

    if return_intermediate:
        if not return_weights:
            return inter                              # (L, B, Lq, D) == torch .transpose(1,2)
        return inter, attn                            # attn: (L, B, Lq, Lk)

    out_lbd = jnp.transpose(inter[-1], (1, 0, 2))     # back to (Lq, B, D) torch layout
    if not return_weights:
        return out_lbd
    return out_lbd, attn[-1]


# =============================== parameter init ===============================

def _init_layer_params(key):
    ks = jax.random.split(key, 6)

    def attn_params(k1, k2):
        return {
            "in_proj_weight": 0.05 * jax.random.normal(k1, (3 * D_MODEL, D_MODEL), jnp.float32),
            "in_proj_bias": jnp.zeros((3 * D_MODEL,), jnp.float32),
            "out_proj_weight": 0.05 * jax.random.normal(k2, (D_MODEL, D_MODEL), jnp.float32),
            "out_proj_bias": jnp.zeros((D_MODEL,), jnp.float32),
        }

    def ln():
        return {"gamma": jnp.ones((D_MODEL,), jnp.float32),
                "beta": jnp.zeros((D_MODEL,), jnp.float32)}

    return {
        "self_attn": attn_params(ks[0], ks[1]),
        "cross_attn": attn_params(ks[2], ks[3]),
        "linear1_w": 0.05 * jax.random.normal(ks[4], (DIM_FF, D_MODEL), jnp.float32),
        "linear1_b": jnp.zeros((DIM_FF,), jnp.float32),
        "linear2_w": 0.05 * jax.random.normal(ks[5], (D_MODEL, DIM_FF), jnp.float32),
        "linear2_b": jnp.zeros((D_MODEL,), jnp.float32),
        "norm1": ln(), "norm2": ln(), "norm3": ln(),
    }


def init_params(key):
    keys = jax.random.split(key, NUM_LAYERS)
    return {
        "layers": [_init_layer_params(k) for k in keys],
        "norm": {"gamma": jnp.ones((D_MODEL,), jnp.float32),
                 "beta": jnp.zeros((D_MODEL,), jnp.float32)},
    }


# ==================================== main ====================================

if __name__ == "__main__":
    NUM_QUERIES = 8   # tgt sequence length
    MEM_LEN = 16      # memory sequence length
    BATCH = 2

    root = jax.random.PRNGKey(0)
    k_tgt, k_mem, k_qp, k_qtp, k_pos, k_param = jax.random.split(root, 6)

    tgt = jnp.zeros((NUM_QUERIES, BATCH, D_MODEL), jnp.float32)  # DETR queries start at zero
    memory = jax.random.normal(k_mem, (MEM_LEN, BATCH, D_MODEL), jnp.float32)
    query_pos = jax.random.normal(k_qp, (NUM_QUERIES, BATCH, D_MODEL), jnp.float32)
    query_time_pos = jax.random.normal(k_qtp, (NUM_QUERIES, BATCH, D_MODEL), jnp.float32)
    pos = jax.random.normal(k_pos, (MEM_LEN, BATCH, D_MODEL), jnp.float32)

    params = init_params(k_param)
    prepared = prepare_params(params)   # one-time transpose/split/stack hoist

    fwd = jax.jit(time_decoder_forward,
                  static_argnames=("return_intermediate", "return_weights"))

    hs, attn_weights = fwd(tgt, memory, prepared,
                           pos=pos, query_pos=query_pos, query_time_pos=query_time_pos,
                           return_intermediate=True, return_weights=True)

    jax.block_until_ready(hs)
    jax.block_until_ready(attn_weights)

    assert hs.shape == (NUM_LAYERS, BATCH, NUM_QUERIES, D_MODEL), hs.shape
    assert attn_weights.shape == (NUM_LAYERS, BATCH, NUM_QUERIES, MEM_LEN), attn_weights.shape
    assert jnp.all(jnp.isfinite(hs)) and jnp.all(jnp.isfinite(attn_weights))

    print("KERNEL_OK")
</pallas_src>

<mosaic_0001>
module attributes {stable_mosaic.version = 11 : i64} {
  func.func @_decoder_stack_kernel(%arg0: i32, %arg1: memref<1x8x32xf32, #tpu.memory_space<vmem>>, %arg2: memref<1x8x32xf32, #tpu.memory_space<vmem>>, %arg3: memref<1x8x32xf32, #tpu.memory_space<vmem>>, %arg4: memref<1x16x32xf32, #tpu.memory_space<vmem>>, %arg5: memref<1x16x32xf32, #tpu.memory_space<vmem>>, %arg6: memref<2x32x64xf32, #tpu.memory_space<vmem>>, %arg7: memref<2x1x64xf32, #tpu.memory_space<vmem>>, %arg8: memref<2x32x32xf32, #tpu.memory_space<vmem>>, %arg9: memref<2x1x32xf32, #tpu.memory_space<vmem>>, %arg10: memref<2x32x32xf32, #tpu.memory_space<vmem>>, %arg11: memref<2x1x32xf32, #tpu.memory_space<vmem>>, %arg12: memref<2x32x32xf32, #tpu.memory_space<vmem>>, %arg13: memref<2x1x32xf32, #tpu.memory_space<vmem>>, %arg14: memref<2x32x32xf32, #tpu.memory_space<vmem>>, %arg15: memref<2x1x32xf32, #tpu.memory_space<vmem>>, %arg16: memref<2x32x32xf32, #tpu.memory_space<vmem>>, %arg17: memref<2x1x32xf32, #tpu.memory_space<vmem>>, %arg18: memref<2x32x32xf32, #tpu.memory_space<vmem>>, %arg19: memref<2x1x32xf32, #tpu.memory_space<vmem>>, %arg20: memref<2x32x64xf32, #tpu.memory_space<vmem>>, %arg21: memref<2x1x64xf32, #tpu.memory_space<vmem>>, %arg22: memref<2x64x32xf32, #tpu.memory_space<vmem>>, %arg23: memref<2x1x32xf32, #tpu.memory_space<vmem>>, %arg24: memref<2x4x32xf32, #tpu.memory_space<vmem>>, %arg25: memref<2x4x32xf32, #tpu.memory_space<vmem>>, %arg26: memref<2x1x8x32xf32, #tpu.memory_space<vmem>>, %arg27: memref<2x1x8x16xf32, #tpu.memory_space<vmem>>) attributes {dimension_semantics = [#tpu.dimension_semantics<parallel>], iteration_bounds = array<i64: 2>, scalar_prefetch = 0 : i64, scratch_operands = 0 : i64, tpu.core_type = #tpu.core_type<tc>, window_params = [{transform_indices = @transform_0, window_bounds = array<i64: 1, 8, 32>}, {transform_indices = @transform_1, window_bounds = array<i64: 1, 8, 32>}, {transform_indices = @transform_2, window_bounds = array<i64: 1, 8, 32>}, {transform_indices = @transform_3, window_bounds = array<i64: 1, 16, 32>}, {transform_indices = @transform_4, window_bounds = array<i64: 1, 16, 32>}, {pipeline_mode = #tpu.pipeline_mode<synchronous>, transform_indices = @transform_5, window_bounds = array<i64: 2, 32, 64>}, {pipeline_mode = #tpu.pipeline_mode<synchronous>, transform_indices = @transform_6, window_bounds = array<i64: 2, 1, 64>}, {pipeline_mode = #tpu.pipeline_mode<synchronous>, transform_indices = @transform_7, window_bounds = array<i64: 2, 32, 32>}, {pipeline_mode = #tpu.pipeline_mode<synchronous>, transform_indices = @transform_8, window_bounds = array<i64: 2, 1, 32>}, {pipeline_mode = #tpu.pipeline_mode<synchronous>, transform_indices = @transform_9, window_bounds = array<i64: 2, 32, 32>}, {pipeline_mode = #tpu.pipeline_mode<synchronous>, transform_indices = @transform_10, window_bounds = array<i64: 2, 1, 32>}, {pipeline_mode = #tpu.pipeline_mode<synchronous>, transform_indices = @transform_11, window_bounds = array<i64: 2, 32, 32>}, {pipeline_mode = #tpu.pipeline_mode<synchronous>, transform_indices = @transform_12, window_bounds = array<i64: 2, 1, 32>}, {pipeline_mode = #tpu.pipeline_mode<synchronous>, transform_indices = @transform_13, window_bounds = array<i64: 2, 32, 32>}, {pipeline_mode = #tpu.pipeline_mode<synchronous>, transform_indices = @transform_14, window_bounds = array<i64: 2, 1, 32>}, {pipeline_mode = #tpu.pipeline_mode<synchronous>, transform_indices = @transform_15, window_bounds = array<i64: 2, 32, 32>}, {pipeline_mode = #tpu.pipeline_mode<synchronous>, transform_indices = @transform_16, window_bounds = array<i64: 2, 1, 32>}, {pipeline_mode = #tpu.pipeline_mode<synchronous>, transform_indices = @transform_17, window_bounds = array<i64: 2, 32, 32>}, {pipeline_mode = #tpu.pipeline_mode<synchronous>, transform_indices = @transform_18, window_bounds = array<i64: 2, 1, 32>}, {pipeline_mode = #tpu.pipeline_mode<synchronous>, transform_indices = @transform_19, window_bounds = array<i64: 2, 32, 64>}, {pipeline_mode = #tpu.pipeline_mode<synchronous>, transform_indices = @transform_20, window_bounds = array<i64: 2, 1, 64>}, {pipeline_mode = #tpu.pipeline_mode<synchronous>, transform_indices = @transform_21, window_bounds = array<i64: 2, 64, 32>}, {pipeline_mode = #tpu.pipeline_mode<synchronous>, transform_indices = @transform_22, window_bounds = array<i64: 2, 1, 32>}, {pipeline_mode = #tpu.pipeline_mode<synchronous>, transform_indices = @transform_23, window_bounds = array<i64: 2, 4, 32>}, {pipeline_mode = #tpu.pipeline_mode<synchronous>, transform_indices = @transform_24, window_bounds = array<i64: 2, 4, 32>}, {transform_indices = @transform_25, window_bounds = array<i64: 2, 1, 8, 32>}, {transform_indices = @transform_26, window_bounds = array<i64: 2, 1, 8, 16>}]} {
    %c0 = arith.constant 0 : index
    %c0_0 = arith.constant 0 : index
    %c0_1 = arith.constant 0 : index
    %0 = vector.load %arg1[%c0, %c0_0, %c0_1] : memref<1x8x32xf32, #tpu.memory_space<vmem>>, vector<1x8x32xf32>
    %1 = vector.shape_cast %0 : vector<1x8x32xf32> to vector<8x32xf32>
    %c0_2 = arith.constant 0 : index
    %c0_3 = arith.constant 0 : index
    %c0_4 = arith.constant 0 : index
    %2 = vector.load %arg2[%c0_2, %c0_3, %c0_4] : memref<1x8x32xf32, #tpu.memory_space<vmem>>, vector<1x8x32xf32>
    %3 = vector.shape_cast %2 : vector<1x8x32xf32> to vector<8x32xf32>
    %c0_5 = arith.constant 0 : index
    %c0_6 = arith.constant 0 : index
    %c0_7 = arith.constant 0 : index
    %4 = vector.load %arg3[%c0_5, %c0_6, %c0_7] : memref<1x8x32xf32, #tpu.memory_space<vmem>>, vector<1x8x32xf32>
    %5 = vector.shape_cast %4 : vector<1x8x32xf32> to vector<8x32xf32>
    %6 = arith.addf %3, %5 : vector<8x32xf32>
    %c0_8 = arith.constant 0 : index
    %c0_9 = arith.constant 0 : index
    %c0_10 = arith.constant 0 : index
    %7 = vector.load %arg4[%c0_8, %c0_9, %c0_10] : memref<1x16x32xf32, #tpu.memory_space<vmem>>, vector<1x16x32xf32>
    %8 = vector.shape_cast %7 : vector<1x16x32xf32> to vector<16x32xf32>
    %c0_11 = arith.constant 0 : index
    %c0_12 = arith.constant 0 : index
    %c0_13 = arith.constant 0 : index
    %9 = vector.load %arg5[%c0_11, %c0_12, %c0_13] : memref<1x16x32xf32, #tpu.memory_space<vmem>>, vector<1x16x32xf32>
    %10 = vector.shape_cast %9 : vector<1x16x32xf32> to vector<16x32xf32>
    %11 = arith.addf %8, %10 : vector<16x32xf32>
    %c0_14 = arith.constant 0 : index
    %c0_15 = arith.constant 0 : index
    %c0_16 = arith.constant 0 : index
    %12 = vector.load %arg24[%c0_14, %c0_15, %c0_16] : memref<2x4x32xf32, #tpu.memory_space<vmem>>, vector<1x4x32xf32>
    %13 = vector.shape_cast %12 : vector<1x4x32xf32> to vector<4x32xf32>
    %c0_17 = arith.constant 0 : index
    %c0_18 = arith.constant 0 : index
    %c0_19 = arith.constant 0 : index
    %14 = vector.load %arg25[%c0_17, %c0_18, %c0_19] : memref<2x4x32xf32, #tpu.memory_space<vmem>>, vector<1x4x32xf32>
    %15 = vector.shape_cast %14 : vector<1x4x32xf32> to vector<4x32xf32>
    %16 = arith.addf %1, %6 : vector<8x32xf32>
    %c0_20 = arith.constant 0 : index
    %c0_21 = arith.constant 0 : index
    %c0_22 = arith.constant 0 : index
    %17 = vector.load %arg6[%c0_20, %c0_21, %c0_22] : memref<2x32x64xf32, #tpu.memory_space<vmem>>, vector<1x32x64xf32>
    %18 = vector.shape_cast %17 : vector<1x32x64xf32> to vector<32x64xf32>
    %cst = arith.constant dense<0.000000e+00> : vector<8x64xf32>
    %19 = tpu.matmul %16, %18, %cst {dimension_numbers = #tpu.dot_dimension_numbers<[1], [0], [0], [1], [0, 0, 1, 1], [], []>} : vector<8x32xf32>, vector<32x64xf32>, vector<8x64xf32> -> vector<8x64xf32>
    %c0_23 = arith.constant 0 : index
    %c0_24 = arith.constant 0 : index
    %c0_25 = arith.constant 0 : index
    %20 = vector.load %arg7[%c0_23, %c0_24, %c0_25] : memref<2x1x64xf32, #tpu.memory_space<vmem>>, vector<1x1x64xf32>
    %21 = vector.shape_cast %20 : vector<1x1x64xf32> to vector<1x64xf32>
    %22 = vector.broadcast %21 : vector<1x64xf32> to vector<8x64xf32>
    %23 = arith.addf %19, %22 : vector<8x64xf32>
    %c0_26 = arith.constant 0 : index
    %c0_27 = arith.constant 0 : index
    %c0_28 = arith.constant 0 : index
    %24 = vector.load %arg8[%c0_26, %c0_27, %c0_28] : memref<2x32x32xf32, #tpu.memory_space<vmem>>, vector<1x32x32xf32>
    %25 = vector.shape_cast %24 : vector<1x32x32xf32> to vector<32x32xf32>
    %cst_29 = arith.constant dense<0.000000e+00> : vector<8x32xf32>
    %26 = tpu.matmul %1, %25, %cst_29 {dimension_numbers = #tpu.dot_dimension_numbers<[1], [0], [0], [1], [0, 0, 1, 1], [], []>} : vector<8x32xf32>, vector<32x32xf32>, vector<8x32xf32> -> vector<8x32xf32>
    %c0_30 = arith.constant 0 : index
    %c0_31 = arith.constant 0 : index
    %c0_32 = arith.constant 0 : index
    %27 = vector.load %arg9[%c0_30, %c0_31, %c0_32] : memref<2x1x32xf32, #tpu.memory_space<vmem>>, vector<1x1x32xf32>
    %28 = vector.shape_cast %27 : vector<1x1x32xf32> to vector<1x32xf32>
    %29 = vector.broadcast %28 : vector<1x32xf32> to vector<8x32xf32>
    %30 = arith.addf %26, %29 : vector<8x32xf32>
    %31 = vector.extract_strided_slice %23 {offsets = [0, 0], sizes = [8, 32], strides = [1, 1]} : vector<8x64xf32> to vector<8x32xf32>
    %32 = vector.extract_strided_slice %23 {offsets = [0, 32], sizes = [8, 32], strides = [1, 1]} : vector<8x64xf32> to vector<8x32xf32>
    %c0_33 = arith.constant 0 : index
    %c0_34 = arith.constant 0 : index
    %c0_35 = arith.constant 0 : index
    %33 = vector.load %arg10[%c0_33, %c0_34, %c0_35] : memref<2x32x32xf32, #tpu.memory_space<vmem>>, vector<1x32x32xf32>
    %34 = vector.shape_cast %33 : vector<1x32x32xf32> to vector<32x32xf32>
    %c0_36 = arith.constant 0 : index
    %c0_37 = arith.constant 0 : index
    %c0_38 = arith.constant 0 : index
    %35 = vector.load %arg11[%c0_36, %c0_37, %c0_38] : memref<2x1x32xf32, #tpu.memory_space<vmem>>, vector<1x1x32xf32>
    %36 = vector.shape_cast %35 : vector<1x1x32xf32> to vector<1x32xf32>
    %cst_39 = arith.constant 0.353553385 : f32
    %37 = vector.broadcast %cst_39 : f32 to vector<8x32xf32>
    %38 = arith.mulf %31, %37 : vector<8x32xf32>
    %cst_40 = arith.constant 0.000000e+00 : f32
    %39 = vector.broadcast %cst_40 : f32 to vector<8x32xf32>
    %40 = vector.broadcast %36 : vector<1x32xf32> to vector<8x32xf32>
    %41 = arith.addf %39, %40 : vector<8x32xf32>
    %42 = vector.extract_strided_slice %38 {offsets = [0, 0], sizes = [8, 8], strides = [1, 1]} : vector<8x32xf32> to vector<8x8xf32>
    %43 = vector.extract_strided_slice %32 {offsets = [0, 0], sizes = [8, 8], strides = [1, 1]} : vector<8x32xf32> to vector<8x8xf32>
    %44 = vector.extract_strided_slice %30 {offsets = [0, 0], sizes = [8, 8], strides = [1, 1]} : vector<8x32xf32> to vector<8x8xf32>
    %cst_41 = arith.constant dense<0.000000e+00> : vector<8x8xf32>
    %45 = tpu.matmul %42, %43, %cst_41 {dimension_numbers = #tpu.dot_dimension_numbers<[1], [1], [0], [0], [0, 0, 1, 0], [], []>} : vector<8x8xf32>, vector<8x8xf32>, vector<8x8xf32> -> vector<8x8xf32>
    %cst_42 = arith.constant dense<0xFF800000> : vector<8xf32>
    %46 = vector.multi_reduction <maximumf>, %45, %cst_42 [1] : vector<8x8xf32> to vector<8xf32>
    %47 = vector.shape_cast %46 : vector<8xf32> to vector<8x1xf32>
    %48 = vector.broadcast %47 : vector<8x1xf32> to vector<8x8xf32>
    %49 = arith.subf %45, %48 : vector<8x8xf32>
    %50 = math.exp %49 : vector<8x8xf32>
    %cst_43 = arith.constant dense<0.000000e+00> : vector<8xf32>
    %51 = vector.multi_reduction <add>, %50, %cst_43 [1] : vector<8x8xf32> to vector<8xf32>
    %52 = vector.shape_cast %51 : vector<8xf32> to vector<8x1xf32>
    %53 = tpu.reciprocal %52 {approx = true} : vector<8x1xf32> -> vector<8x1xf32>
    %54 = vector.broadcast %53 : vector<8x1xf32> to vector<8x8xf32>
    %55 = arith.mulf %50, %54 : vector<8x8xf32>
    %cst_44 = arith.constant dense<0.000000e+00> : vector<8x8xf32>
    %56 = tpu.matmul %55, %44, %cst_44 {dimension_numbers = #tpu.dot_dimension_numbers<[1], [0], [0], [1], [0, 0, 1, 1], [], []>} : vector<8x8xf32>, vector<8x8xf32>, vector<8x8xf32> -> vector<8x8xf32>
    %57 = vector.extract_strided_slice %34 {offsets = [0, 0], sizes = [8, 32], strides = [1, 1]} : vector<32x32xf32> to vector<8x32xf32>
    %cst_45 = arith.constant dense<0.000000e+00> : vector<8x32xf32>
    %58 = tpu.matmul %56, %57, %cst_45 {dimension_numbers = #tpu.dot_dimension_numbers<[1], [0], [0], [1], [0, 0, 1, 1], [], []>} : vector<8x8xf32>, vector<8x32xf32>, vector<8x32xf32> -> vector<8x32xf32>
    %59 = arith.addf %41, %58 : vector<8x32xf32>
    %60 = vector.extract_strided_slice %38 {offsets = [0, 8], sizes = [8, 8], strides = [1, 1]} : vector<8x32xf32> to vector<8x8xf32>
    %61 = vector.extract_strided_slice %32 {offsets = [0, 8], sizes = [8, 8], strides = [1, 1]} : vector<8x32xf32> to vector<8x8xf32>
    %62 = vector.extract_strided_slice %30 {offsets = [0, 8], sizes = [8, 8], strides = [1, 1]} : vector<8x32xf32> to vector<8x8xf32>
    %cst_46 = arith.constant dense<0.000000e+00> : vector<8x8xf32>
    %63 = tpu.matmul %60, %61, %cst_46 {dimension_numbers = #tpu.dot_dimension_numbers<[1], [1], [0], [0], [0, 0, 1, 0], [], []>} : vector<8x8xf32>, vector<8x8xf32>, vector<8x8xf32> -> vector<8x8xf32>
    %cst_47 = arith.constant dense<0xFF800000> : vector<8xf32>
    %64 = vector.multi_reduction <maximumf>, %63, %cst_47 [1] : vector<8x8xf32> to vector<8xf32>
    %65 = vector.shape_cast %64 : vector<8xf32> to vector<8x1xf32>
    %66 = vector.broadcast %65 : vector<8x1xf32> to vector<8x8xf32>
    %67 = arith.subf %63, %66 : vector<8x8xf32>
    %68 = math.exp %67 : vector<8x8xf32>
    %cst_48 = arith.constant dense<0.000000e+00> : vector<8xf32>
    %69 = vector.multi_reduction <add>, %68, %cst_48 [1] : vector<8x8xf32> to vector<8xf32>
    %70 = vector.shape_cast %69 : vector<8xf32> to vector<8x1xf32>
    %71 = tpu.reciprocal %70 {approx = true} : vector<8x1xf32> -> vector<8x1xf32>
    %72 = vector.broadcast %71 : vector<8x1xf32> to vector<8x8xf32>
    %73 = arith.mulf %68, %72 : vector<8x8xf32>
    %cst_49 = arith.constant dense<0.000000e+00> : vector<8x8xf32>
    %74 = tpu.matmul %73, %62, %cst_49 {dimension_numbers = #tpu.dot_dimension_numbers<[1], [0], [0], [1], [0, 0, 1, 1], [], []>} : vector<8x8xf32>, vector<8x8xf32>, vector<8x8xf32> -> vector<8x8xf32>
    %75 = vector.extract_strided_slice %34 {offsets = [8, 0], sizes = [8, 32], strides = [1, 1]} : vector<32x32xf32> to vector<8x32xf32>
    %cst_50 = arith.constant dense<0.000000e+00> : vector<8x32xf32>
    %76 = tpu.matmul %74, %75, %cst_50 {dimension_numbers = #tpu.dot_dimension_numbers<[1], [0], [0], [1], [0, 0, 1, 1], [], []>} : vector<8x8xf32>, vector<8x32xf32>, vector<8x32xf32> -> vector<8x32xf32>
    %77 = arith.addf %59, %76 : vector<8x32xf32>
    %78 = vector.extract_strided_slice %38 {offsets = [0, 16], sizes = [8, 8], strides = [1, 1]} : vector<8x32xf32> to vector<8x8xf32>
    %79 = vector.extract_strided_slice %32 {offsets = [0, 16], sizes = [8, 8], strides = [1, 1]} : vector<8x32xf32> to vector<8x8xf32>
    %80 = vector.extract_strided_slice %30 {offsets = [0, 16], sizes = [8, 8], strides = [1, 1]} : vector<8x32xf32> to vector<8x8xf32>
    %cst_51 = arith.constant dense<0.000000e+00> : vector<8x8xf32>
    %81 = tpu.matmul %78, %79, %cst_51 {dimension_numbers = #tpu.dot_dimension_numbers<[1], [1], [0], [0], [0, 0, 1, 0], [], []>} : vector<8x8xf32>, vector<8x8xf32>, vector<8x8xf32> -> vector<8x8xf32>
    %cst_52 = arith.constant dense<0xFF800000> : vector<8xf32>
    %82 = vector.multi_reduction <maximumf>, %81, %cst_52 [1] : vector<8x8xf32> to vector<8xf32>
    %83 = vector.shape_cast %82 : vector<8xf32> to vector<8x1xf32>
    %84 = vector.broadcast %83 : vector<8x1xf32> to vector<8x8xf32>
    %85 = arith.subf %81, %84 : vector<8x8xf32>
    %86 = math.exp %85 : vector<8x8xf32>
    %cst_53 = arith.constant dense<0.000000e+00> : vector<8xf32>
    %87 = vector.multi_reduction <add>, %86, %cst_53 [1] : vector<8x8xf32> to vector<8xf32>
    %88 = vector.shape_cast %87 : vector<8xf32> to vector<8x1xf32>
    %89 = tpu.reciprocal %88 {approx = true} : vector<8x1xf32> -> vector<8x1xf32>
    %90 = vector.broadcast %89 : vector<8x1xf32> to vector<8x8xf32>
    %91 = arith.mulf %86, %90 : vector<8x8xf32>
    %cst_54 = arith.constant dense<0.000000e+00> : vector<8x8xf32>
    %92 = tpu.matmul %91, %80, %cst_54 {dimension_numbers = #tpu.dot_dimension_numbers<[1], [0], [0], [1], [0, 0, 1, 1], [], []>} : vector<8x8xf32>, vector<8x8xf32>, vector<8x8xf32> -> vector<8x8xf32>
    %93 = vector.extract_strided_slice %34 {offsets = [16, 0], sizes = [8, 32], strides = [1, 1]} : vector<32x32xf32> to vector<8x32xf32>
    %cst_55 = arith.constant dense<0.000000e+00> : vector<8x32xf32>
    %94 = tpu.matmul %92, %93, %cst_55 {dimension_numbers = #tpu.dot_dimension_numbers<[1], [0], [0], [1], [0, 0, 1, 1], [], []>} : vector<8x8xf32>, vector<8x32xf32>, vector<8x32xf32> -> vector<8x32xf32>
    %95 = arith.addf %77, %94 : vector<8x32xf32>
    %96 = vector.extract_strided_slice %38 {offsets = [0, 24], sizes = [8, 8], strides = [1, 1]} : vector<8x32xf32> to vector<8x8xf32>
    %97 = vector.extract_strided_slice %32 {offsets = [0, 24], sizes = [8, 8], strides = [1, 1]} : vector<8x32xf32> to vector<8x8xf32>
    %98 = vector.extract_strided_slice %30 {offsets = [0, 24], sizes = [8, 8], strides = [1, 1]} : vector<8x32xf32> to vector<8x8xf32>
    %cst_56 = arith.constant dense<0.000000e+00> : vector<8x8xf32>
    %99 = tpu.matmul %96, %97, %cst_56 {dimension_numbers = #tpu.dot_dimension_numbers<[1], [1], [0], [0], [0, 0, 1, 0], [], []>} : vector<8x8xf32>, vector<8x8xf32>, vector<8x8xf32> -> vector<8x8xf32>
    %cst_57 = arith.constant dense<0xFF800000> : vector<8xf32>
    %100 = vector.multi_reduction <maximumf>, %99, %cst_57 [1] : vector<8x8xf32> to vector<8xf32>
    %101 = vector.shape_cast %100 : vector<8xf32> to vector<8x1xf32>
    %102 = vector.broadcast %101 : vector<8x1xf32> to vector<8x8xf32>
    %103 = arith.subf %99, %102 : vector<8x8xf32>
    %104 = math.exp %103 : vector<8x8xf32>
    %cst_58 = arith.constant dense<0.000000e+00> : vector<8xf32>
    %105 = vector.multi_reduction <add>, %104, %cst_58 [1] : vector<8x8xf32> to vector<8xf32>
    %106 = vector.shape_cast %105 : vector<8xf32> to vector<8x1xf32>
    %107 = tpu.reciprocal %106 {approx = true} : vector<8x1xf32> -> vector<8x1xf32>
    %108 = vector.broadcast %107 : vector<8x1xf32> to vector<8x8xf32>
    %109 = arith.mulf %104, %108 : vector<8x8xf32>
    %cst_59 = arith.constant dense<0.000000e+00> : vector<8x8xf32>
    %110 = tpu.matmul %109, %98, %cst_59 {dimension_numbers = #tpu.dot_dimension_numbers<[1], [0], [0], [1], [0, 0, 1, 1], [], []>} : vector<8x8xf32>, vector<8x8xf32>, vector<8x8xf32> -> vector<8x8xf32>
    %111 = vector.extract_strided_slice %34 {offsets = [24, 0], sizes = [8, 32], strides = [1, 1]} : vector<32x32xf32> to vector<8x32xf32>
    %cst_60 = arith.constant dense<0.000000e+00> : vector<8x32xf32>
    %112 = tpu.matmul %110, %111, %cst_60 {dimension_numbers = #tpu.dot_dimension_numbers<[1], [0], [0], [1], [0, 0, 1, 1], [], []>} : vector<8x8xf32>, vector<8x32xf32>, vector<8x32xf32> -> vector<8x32xf32>
    %113 = arith.addf %95, %112 : vector<8x32xf32>
    %114 = arith.addf %1, %113 : vector<8x32xf32>
    %115 = vector.extract_strided_slice %13 {offsets = [0, 0], sizes = [1, 32], strides = [1, 1]} : vector<4x32xf32> to vector<1x32xf32>
    %116 = vector.extract_strided_slice %15 {offsets = [0, 0], sizes = [1, 32], strides = [1, 1]} : vector<4x32xf32> to vector<1x32xf32>
    %cst_61 = arith.constant dense<0.000000e+00> : vector<8xf32>
    %117 = vector.multi_reduction <add>, %114, %cst_61 [1] : vector<8x32xf32> to vector<8xf32>
    %118 = vector.shape_cast %117 : vector<8xf32> to vector<8x1xf32>
    %cst_62 = arith.constant 3.200000e+01 : f32
    %119 = vector.broadcast %cst_62 : f32 to vector<8x1xf32>
    %120 = arith.divf %118, %119 : vector<8x1xf32>
    %121 = vector.broadcast %120 : vector<8x1xf32> to vector<8x32xf32>
    %122 = arith.subf %114, %121 : vector<8x32xf32>
    %123 = arith.mulf %122, %122 : vector<8x32xf32>
    %cst_63 = arith.constant dense<0.000000e+00> : vector<8xf32>
    %124 = vector.multi_reduction <add>, %123, %cst_63 [1] : vector<8x32xf32> to vector<8xf32>
    %125 = vector.shape_cast %124 : vector<8xf32> to vector<8x1xf32>
    %cst_64 = arith.constant 3.200000e+01 : f32
    %126 = vector.broadcast %cst_64 : f32 to vector<8x1xf32>
    %127 = arith.divf %125, %126 : vector<8x1xf32>
    %cst_65 = arith.constant 9.99999974E-6 : f32
    %128 = vector.broadcast %cst_65 : f32 to vector<8x1xf32>
    %129 = arith.addf %127, %128 : vector<8x1xf32>
    %130 = math.rsqrt %129 : vector<8x1xf32>
    %131 = vector.broadcast %130 : vector<8x1xf32> to vector<8x32xf32>
    %132 = arith.mulf %122, %131 : vector<8x32xf32>
    %133 = vector.broadcast %115 : vector<1x32xf32> to vector<8x32xf32>
    %134 = arith.mulf %132, %133 : vector<8x32xf32>
    %135 = vector.broadcast %116 : vector<1x32xf32> to vector<8x32xf32>
    %136 = arith.addf %134, %135 : vector<8x32xf32>
    %137 = arith.addf %136, %3 : vector<8x32xf32>
    %c0_66 = arith.constant 0 : index
    %c0_67 = arith.constant 0 : index
    %c0_68 = arith.constant 0 : index
    %138 = vector.load %arg12[%c0_66, %c0_67, %c0_68] : memref<2x32x32xf32, #tpu.memory_space<vmem>>, vector<1x32x32xf32>
    %139 = vector.shape_cast %138 : vector<1x32x32xf32> to vector<32x32xf32>
    %cst_69 = arith.constant dense<0.000000e+00> : vector<8x32xf32>
    %140 = tpu.matmul %137, %139, %cst_69 {dimension_numbers = #tpu.dot_dimension_numbers<[1], [0], [0], [1], [0, 0, 1, 1], [], []>} : vector<8x32xf32>, vector<32x32xf32>, vector<8x32xf32> -> vector<8x32xf32>
    %c0_70 = arith.constant 0 : index
    %c0_71 = arith.constant 0 : index
    %c0_72 = arith.constant 0 : index
    %141 = vector.load %arg13[%c0_70, %c0_71, %c0_72] : memref<2x1x32xf32, #tpu.memory_space<vmem>>, vector<1x1x32xf32>
    %142 = vector.shape_cast %141 : vector<1x1x32xf32> to vector<1x32xf32>
    %143 = vector.broadcast %142 : vector<1x32xf32> to vector<8x32xf32>
    %144 = arith.addf %140, %143 : vector<8x32xf32>
    %c0_73 = arith.constant 0 : index
    %c0_74 = arith.constant 0 : index
    %c0_75 = arith.constant 0 : index
    %145 = vector.load %arg14[%c0_73, %c0_74, %c0_75] : memref<2x32x32xf32, #tpu.memory_space<vmem>>, vector<1x32x32xf32>
    %146 = vector.shape_cast %145 : vector<1x32x32xf32> to vector<32x32xf32>
    %cst_76 = arith.constant dense<0.000000e+00> : vector<16x32xf32>
    %147 = tpu.matmul %11, %146, %cst_76 {dimension_numbers = #tpu.dot_dimension_numbers<[1], [0], [0], [1], [0, 0, 1, 1], [], []>} : vector<16x32xf32>, vector<32x32xf32>, vector<16x32xf32> -> vector<16x32xf32>
    %c0_77 = arith.constant 0 : index
    %c0_78 = arith.constant 0 : index
    %c0_79 = arith.constant 0 : index
    %148 = vector.load %arg15[%c0_77, %c0_78, %c0_79] : memref<2x1x32xf32, #tpu.memory_space<vmem>>, vector<1x1x32xf32>
    %149 = vector.shape_cast %148 : vector<1x1x32xf32> to vector<1x32xf32>
    %150 = vector.broadcast %149 : vector<1x32xf32> to vector<16x32xf32>
    %151 = arith.addf %147, %150 : vector<16x32xf32>
    %c0_80 = arith.constant 0 : index
    %c0_81 = arith.constant 0 : index
    %c0_82 = arith.constant 0 : index
    %152 = vector.load %arg16[%c0_80, %c0_81, %c0_82] : memref<2x32x32xf32, #tpu.memory_space<vmem>>, vector<1x32x32xf32>
    %153 = vector.shape_cast %152 : vector<1x32x32xf32> to vector<32x32xf32>
    %cst_83 = arith.constant dense<0.000000e+00> : vector<16x32xf32>
    %154 = tpu.matmul %8, %153, %cst_83 {dimension_numbers = #tpu.dot_dimension_numbers<[1], [0], [0], [1], [0, 0, 1, 1], [], []>} : vector<16x32xf32>, vector<32x32xf32>, vector<16x32xf32> -> vector<16x32xf32>
    %c0_84 = arith.constant 0 : index
    %c0_85 = arith.constant 0 : index
    %c0_86 = arith.constant 0 : index
    %155 = vector.load %arg17[%c0_84, %c0_85, %c0_86] : memref<2x1x32xf32, #tpu.memory_space<vmem>>, vector<1x1x32xf32>
    %156 = vector.shape_cast %155 : vector<1x1x32xf32> to vector<1x32xf32>
    %157 = vector.broadcast %156 : vector<1x32xf32> to vector<16x32xf32>
    %158 = arith.addf %154, %157 : vector<16x32xf32>
    %c0_87 = arith.constant 0 : index
    %c0_88 = arith.constant 0 : index
    %c0_89 = arith.constant 0 : index
    %159 = vector.load %arg18[%c0_87, %c0_88, %c0_89] : memref<2x32x32xf32, #tpu.memory_space<vmem>>, vector<1x32x32xf32>
    %160 = vector.shape_cast %159 : vector<1x32x32xf32> to vector<32x32xf32>
    %c0_90 = arith.constant 0 : index
    %c0_91 = arith.constant 0 : index
    %c0_92 = arith.constant 0 : index
    %161 = vector.load %arg19[%c0_90, %c0_91, %c0_92] : memref<2x1x32xf32, #tpu.memory_space<vmem>>, vector<1x1x32xf32>
    %162 = vector.shape_cast %161 : vector<1x1x32xf32> to vector<1x32xf32>
    %cst_93 = arith.constant 0.353553385 : f32
    %163 = vector.broadcast %cst_93 : f32 to vector<8x32xf32>
    %164 = arith.mulf %144, %163 : vector<8x32xf32>
    %cst_94 = arith.constant 0.000000e+00 : f32
    %165 = vector.broadcast %cst_94 : f32 to vector<8x32xf32>
    %166 = vector.broadcast %162 : vector<1x32xf32> to vector<8x32xf32>
    %167 = arith.addf %165, %166 : vector<8x32xf32>
    %cst_95 = arith.constant 0.000000e+00 : f32
    %168 = vector.broadcast %cst_95 : f32 to vector<8x16xf32>
    %169 = vector.extract_strided_slice %164 {offsets = [0, 0], sizes = [8, 8], strides = [1, 1]} : vector<8x32xf32> to vector<8x8xf32>
    %170 = vector.extract_strided_slice %151 {offsets = [0, 0], sizes = [16, 8], strides = [1, 1]} : vector<16x32xf32> to vector<16x8xf32>
    %171 = vector.extract_strided_slice %158 {offsets = [0, 0], sizes = [16, 8], strides = [1, 1]} : vector<16x32xf32> to vector<16x8xf32>
    %cst_96 = arith.constant dense<0.000000e+00> : vector<8x16xf32>
    %172 = tpu.matmul %169, %170, %cst_96 {dimension_numbers = #tpu.dot_dimension_numbers<[1], [1], [0], [0], [0, 0, 1, 0], [], []>} : vector<8x8xf32>, vector<16x8xf32>, vector<8x16xf32> -> vector<8x16xf32>
    %cst_97 = arith.constant dense<0xFF800000> : vector<8xf32>
    %173 = vector.multi_reduction <maximumf>, %172, %cst_97 [1] : vector<8x16xf32> to vector<8xf32>
    %174 = vector.shape_cast %173 : vector<8xf32> to vector<8x1xf32>
    %175 = vector.broadcast %174 : vector<8x1xf32> to vector<8x16xf32>
    %176 = arith.subf %172, %175 : vector<8x16xf32>
    %177 = math.exp %176 : vector<8x16xf32>
    %cst_98 = arith.constant dense<0.000000e+00> : vector<8xf32>
    %178 = vector.multi_reduction <add>, %177, %cst_98 [1] : vector<8x16xf32> to vector<8xf32>
    %179 = vector.shape_cast %178 : vector<8xf32> to vector<8x1xf32>
    %180 = tpu.reciprocal %179 {approx = true} : vector<8x1xf32> -> vector<8x1xf32>
    %181 = vector.broadcast %180 : vector<8x1xf32> to vector<8x16xf32>
    %182 = arith.mulf %177, %181 : vector<8x16xf32>
    %183 = arith.addf %168, %182 : vector<8x16xf32>
    %cst_99 = arith.constant dense<0.000000e+00> : vector<8x8xf32>
    %184 = tpu.matmul %182, %171, %cst_99 {dimension_numbers = #tpu.dot_dimension_numbers<[1], [0], [0], [1], [0, 0, 1, 1], [], []>} : vector<8x16xf32>, vector<16x8xf32>, vector<8x8xf32> -> vector<8x8xf32>
    %185 = vector.extract_strided_slice %160 {offsets = [0, 0], sizes = [8, 32], strides = [1, 1]} : vector<32x32xf32> to vector<8x32xf32>
    %cst_100 = arith.constant dense<0.000000e+00> : vector<8x32xf32>
    %186 = tpu.matmul %184, %185, %cst_100 {dimension_numbers = #tpu.dot_dimension_numbers<[1], [0], [0], [1], [0, 0, 1, 1], [], []>} : vector<8x8xf32>, vector<8x32xf32>, vector<8x32xf32> -> vector<8x32xf32>
    %187 = arith.addf %167, %186 : vector<8x32xf32>
    %188 = vector.extract_strided_slice %164 {offsets = [0, 8], sizes = [8, 8], strides = [1, 1]} : vector<8x32xf32> to vector<8x8xf32>
    %189 = vector.extract_strided_slice %151 {offsets = [0, 8], sizes = [16, 8], strides = [1, 1]} : vector<16x32xf32> to vector<16x8xf32>
    %190 = vector.extract_strided_slice %158 {offsets = [0, 8], sizes = [16, 8], strides = [1, 1]} : vector<16x32xf32> to vector<16x8xf32>
    %cst_101 = arith.constant dense<0.000000e+00> : vector<8x16xf32>
    %191 = tpu.matmul %188, %189, %cst_101 {dimension_numbers = #tpu.dot_dimension_numbers<[1], [1], [0], [0], [0, 0, 1, 0], [], []>} : vector<8x8xf32>, vector<16x8xf32>, vector<8x16xf32> -> vector<8x16xf32>
    %cst_102 = arith.constant dense<0xFF800000> : vector<8xf32>
    %192 = vector.multi_reduction <maximumf>, %191, %cst_102 [1] : vector<8x16xf32> to vector<8xf32>
    %193 = vector.shape_cast %192 : vector<8xf32> to vector<8x1xf32>
    %194 = vector.broadcast %193 : vector<8x1xf32> to vector<8x16xf32>
    %195 = arith.subf %191, %194 : vector<8x16xf32>
    %196 = math.exp %195 : vector<8x16xf32>
    %cst_103 = arith.constant dense<0.000000e+00> : vector<8xf32>
    %197 = vector.multi_reduction <add>, %196, %cst_103 [1] : vector<8x16xf32> to vector<8xf32>
    %198 = vector.shape_cast %197 : vector<8xf32> to vector<8x1xf32>
    %199 = tpu.reciprocal %198 {approx = true} : vector<8x1xf32> -> vector<8x1xf32>
    %200 = vector.broadcast %199 : vector<8x1xf32> to vector<8x16xf32>
    %201 = arith.mulf %196, %200 : vector<8x16xf32>
    %202 = arith.addf %183, %201 : vector<8x16xf32>
    %cst_104 = arith.constant dense<0.000000e+00> : vector<8x8xf32>
    %203 = tpu.matmul %201, %190, %cst_104 {dimension_numbers = #tpu.dot_dimension_numbers<[1], [0], [0], [1], [0, 0, 1, 1], [], []>} : vector<8x16xf32>, vector<16x8xf32>, vector<8x8xf32> -> vector<8x8xf32>
    %204 = vector.extract_strided_slice %160 {offsets = [8, 0], sizes = [8, 32], strides = [1, 1]} : vector<32x32xf32> to vector<8x32xf32>
    %cst_105 = arith.constant dense<0.000000e+00> : vector<8x32xf32>
    %205 = tpu.matmul %203, %204, %cst_105 {dimension_numbers = #tpu.dot_dimension_numbers<[1], [0], [0], [1], [0, 0, 1, 1], [], []>} : vector<8x8xf32>, vector<8x32xf32>, vector<8x32xf32> -> vector<8x32xf32>
    %206 = arith.addf %187, %205 : vector<8x32xf32>
    %207 = vector.extract_strided_slice %164 {offsets = [0, 16], sizes = [8, 8], strides = [1, 1]} : vector<8x32xf32> to vector<8x8xf32>
    %208 = vector.extract_strided_slice %151 {offsets = [0, 16], sizes = [16, 8], strides = [1, 1]} : vector<16x32xf32> to vector<16x8xf32>
    %209 = vector.extract_strided_slice %158 {offsets = [0, 16], sizes = [16, 8], strides = [1, 1]} : vector<16x32xf32> to vector<16x8xf32>
    %cst_106 = arith.constant dense<0.000000e+00> : vector<8x16xf32>
    %210 = tpu.matmul %207, %208, %cst_106 {dimension_numbers = #tpu.dot_dimension_numbers<[1], [1], [0], [0], [0, 0, 1, 0], [], []>} : vector<8x8xf32>, vector<16x8xf32>, vector<8x16xf32> -> vector<8x16xf32>
    %cst_107 = arith.constant dense<0xFF800000> : vector<8xf32>
    %211 = vector.multi_reduction <maximumf>, %210, %cst_107 [1] : vector<8x16xf32> to vector<8xf32>
    %212 = vector.shape_cast %211 : vector<8xf32> to vector<8x1xf32>
    %213 = vector.broadcast %212 : vector<8x1xf32> to vector<8x16xf32>
    %214 = arith.subf %210, %213 : vector<8x16xf32>
    %215 = math.exp %214 : vector<8x16xf32>
    %cst_108 = arith.constant dense<0.000000e+00> : vector<8xf32>
    %216 = vector.multi_reduction <add>, %215, %cst_108 [1] : vector<8x16xf32> to vector<8xf32>
    %217 = vector.shape_cast %216 : vector<8xf32> to vector<8x1xf32>
    %218 = tpu.reciprocal %217 {approx = true} : vector<8x1xf32> -> vector<8x1xf32>
    %219 = vector.broadcast %218 : vector<8x1xf32> to vector<8x16xf32>
    %220 = arith.mulf %215, %219 : vector<8x16xf32>
    %221 = arith.addf %202, %220 : vector<8x16xf32>
    %cst_109 = arith.constant dense<0.000000e+00> : vector<8x8xf32>
    %222 = tpu.matmul %220, %209, %cst_109 {dimension_numbers = #tpu.dot_dimension_numbers<[1], [0], [0], [1], [0, 0, 1, 1], [], []>} : vector<8x16xf32>, vector<16x8xf32>, vector<8x8xf32> -> vector<8x8xf32>
    %223 = vector.extract_strided_slice %160 {offsets = [16, 0], sizes = [8, 32], strides = [1, 1]} : vector<32x32xf32> to vector<8x32xf32>
    %cst_110 = arith.constant dense<0.000000e+00> : vector<8x32xf32>
    %224 = tpu.matmul %222, %223, %cst_110 {dimension_numbers = #tpu.dot_dimension_numbers<[1], [0], [0], [1], [0, 0, 1, 1], [], []>} : vector<8x8xf32>, vector<8x32xf32>, vector<8x32xf32> -> vector<8x32xf32>
    %225 = arith.addf %206, %224 : vector<8x32xf32>
    %226 = vector.extract_strided_slice %164 {offsets = [0, 24], sizes = [8, 8], strides = [1, 1]} : vector<8x32xf32> to vector<8x8xf32>
    %227 = vector.extract_strided_slice %151 {offsets = [0, 24], sizes = [16, 8], strides = [1, 1]} : vector<16x32xf32> to vector<16x8xf32>
    %228 = vector.extract_strided_slice %158 {offsets = [0, 24], sizes = [16, 8], strides = [1, 1]} : vector<16x32xf32> to vector<16x8xf32>
    %cst_111 = arith.constant dense<0.000000e+00> : vector<8x16xf32>
    %229 = tpu.matmul %226, %227, %cst_111 {dimension_numbers = #tpu.dot_dimension_numbers<[1], [1], [0], [0], [0, 0, 1, 0], [], []>} : vector<8x8xf32>, vector<16x8xf32>, vector<8x16xf32> -> vector<8x16xf32>
    %cst_112 = arith.constant dense<0xFF800000> : vector<8xf32>
    %230 = vector.multi_reduction <maximumf>, %229, %cst_112 [1] : vector<8x16xf32> to vector<8xf32>
    %231 = vector.shape_cast %230 : vector<8xf32> to vector<8x1xf32>
    %232 = vector.broadcast %231 : vector<8x1xf32> to vector<8x16xf32>
    %233 = arith.subf %229, %232 : vector<8x16xf32>
    %234 = math.exp %233 : vector<8x16xf32>
    %cst_113 = arith.constant dense<0.000000e+00> : vector<8xf32>
    %235 = vector.multi_reduction <add>, %234, %cst_113 [1] : vector<8x16xf32> to vector<8xf32>
    %236 = vector.shape_cast %235 : vector<8xf32> to vector<8x1xf32>
    %237 = tpu.reciprocal %236 {approx = true} : vector<8x1xf32> -> vector<8x1xf32>
    %238 = vector.broadcast %237 : vector<8x1xf32> to vector<8x16xf32>
    %239 = arith.mulf %234, %238 : vector<8x16xf32>
    %240 = arith.addf %221, %239 : vector<8x16xf32>
    %cst_114 = arith.constant dense<0.000000e+00> : vector<8x8xf32>
    %241 = tpu.matmul %239, %228, %cst_114 {dimension_numbers = #tpu.dot_dimension_numbers<[1], [0], [0], [1], [0, 0, 1, 1], [], []>} : vector<8x16xf32>, vector<16x8xf32>, vector<8x8xf32> -> vector<8x8xf32>
    %242 = vector.extract_strided_slice %160 {offsets = [24, 0], sizes = [8, 32], strides = [1, 1]} : vector<32x32xf32> to vector<8x32xf32>
    %cst_115 = arith.constant dense<0.000000e+00> : vector<8x32xf32>
    %243 = tpu.matmul %241, %242, %cst_115 {dimension_numbers = #tpu.dot_dimension_numbers<[1], [0], [0], [1], [0, 0, 1, 1], [], []>} : vector<8x8xf32>, vector<8x32xf32>, vector<8x32xf32> -> vector<8x32xf32>
    %244 = arith.addf %225, %243 : vector<8x32xf32>
    %cst_116 = arith.constant 2.500000e-01 : f32
    %245 = vector.broadcast %cst_116 : f32 to vector<8x16xf32>
    %246 = arith.mulf %240, %245 : vector<8x16xf32>
    %247 = arith.addf %136, %244 : vector<8x32xf32>
    %248 = vector.extract_strided_slice %13 {offsets = [1, 0], sizes = [1, 32], strides = [1, 1]} : vector<4x32xf32> to vector<1x32xf32>
    %249 = vector.extract_strided_slice %15 {offsets = [1, 0], sizes = [1, 32], strides = [1, 1]} : vector<4x32xf32> to vector<1x32xf32>
    %cst_117 = arith.constant dense<0.000000e+00> : vector<8xf32>
    %250 = vector.multi_reduction <add>, %247, %cst_117 [1] : vector<8x32xf32> to vector<8xf32>
    %251 = vector.shape_cast %250 : vector<8xf32> to vector<8x1xf32>
    %cst_118 = arith.constant 3.200000e+01 : f32
    %252 = vector.broadcast %cst_118 : f32 to vector<8x1xf32>
    %253 = arith.divf %251, %252 : vector<8x1xf32>
    %254 = vector.broadcast %253 : vector<8x1xf32> to vector<8x32xf32>
    %255 = arith.subf %247, %254 : vector<8x32xf32>
    %256 = arith.mulf %255, %255 : vector<8x32xf32>
    %cst_119 = arith.constant dense<0.000000e+00> : vector<8xf32>
    %257 = vector.multi_reduction <add>, %256, %cst_119 [1] : vector<8x32xf32> to vector<8xf32>
    %258 = vector.shape_cast %257 : vector<8xf32> to vector<8x1xf32>
    %cst_120 = arith.constant 3.200000e+01 : f32
    %259 = vector.broadcast %cst_120 : f32 to vector<8x1xf32>
    %260 = arith.divf %258, %259 : vector<8x1xf32>
    %cst_121 = arith.constant 9.99999974E-6 : f32
    %261 = vector.broadcast %cst_121 : f32 to vector<8x1xf32>
    %262 = arith.addf %260, %261 : vector<8x1xf32>
    %263 = math.rsqrt %262 : vector<8x1xf32>
    %264 = vector.broadcast %263 : vector<8x1xf32> to vector<8x32xf32>
    %265 = arith.mulf %255, %264 : vector<8x32xf32>
    %266 = vector.broadcast %248 : vector<1x32xf32> to vector<8x32xf32>
    %267 = arith.mulf %265, %266 : vector<8x32xf32>
    %268 = vector.broadcast %249 : vector<1x32xf32> to vector<8x32xf32>
    %269 = arith.addf %267, %268 : vector<8x32xf32>
    %c0_122 = arith.constant 0 : index
    %c0_123 = arith.constant 0 : index
    %c0_124 = arith.constant 0 : index
    %270 = vector.load %arg20[%c0_122, %c0_123, %c0_124] : memref<2x32x64xf32, #tpu.memory_space<vmem>>, vector<1x32x64xf32>
    %271 = vector.shape_cast %270 : vector<1x32x64xf32> to vector<32x64xf32>
    %cst_125 = arith.constant dense<0.000000e+00> : vector<8x64xf32>
    %272 = tpu.matmul %269, %271, %cst_125 {dimension_numbers = #tpu.dot_dimension_numbers<[1], [0], [0], [1], [0, 0, 1, 1], [], []>} : vector<8x32xf32>, vector<32x64xf32>, vector<8x64xf32> -> vector<8x64xf32>
    %c0_126 = arith.constant 0 : index
    %c0_127 = arith.constant 0 : index
    %c0_128 = arith.constant 0 : index
    %273 = vector.load %arg21[%c0_126, %c0_127, %c0_128] : memref<2x1x64xf32, #tpu.memory_space<vmem>>, vector<1x1x64xf32>
    %274 = vector.shape_cast %273 : vector<1x1x64xf32> to vector<1x64xf32>
    %275 = vector.broadcast %274 : vector<1x64xf32> to vector<8x64xf32>
    %276 = arith.addf %272, %275 : vector<8x64xf32>
    %cst_129 = arith.constant 0.000000e+00 : f32
    %277 = vector.broadcast %cst_129 : f32 to vector<8x64xf32>
    %278 = arith.maximumf %276, %277 : vector<8x64xf32>
    %c0_130 = arith.constant 0 : index
    %c0_131 = arith.constant 0 : index
    %c0_132 = arith.constant 0 : index
    %279 = vector.load %arg22[%c0_130, %c0_131, %c0_132] : memref<2x64x32xf32, #tpu.memory_space<vmem>>, vector<1x64x32xf32>
    %280 = vector.shape_cast %279 : vector<1x64x32xf32> to vector<64x32xf32>
    %cst_133 = arith.constant dense<0.000000e+00> : vector<8x32xf32>
    %281 = tpu.matmul %278, %280, %cst_133 {dimension_numbers = #tpu.dot_dimension_numbers<[1], [0], [0], [1], [0, 0, 1, 1], [], []>} : vector<8x64xf32>, vector<64x32xf32>, vector<8x32xf32> -> vector<8x32xf32>
    %c0_134 = arith.constant 0 : index
    %c0_135 = arith.constant 0 : index
    %c0_136 = arith.constant 0 : index
    %282 = vector.load %arg23[%c0_134, %c0_135, %c0_136] : memref<2x1x32xf32, #tpu.memory_space<vmem>>, vector<1x1x32xf32>
    %283 = vector.shape_cast %282 : vector<1x1x32xf32> to vector<1x32xf32>
    %284 = vector.broadcast %283 : vector<1x32xf32> to vector<8x32xf32>
    %285 = arith.addf %281, %284 : vector<8x32xf32>
    %286 = arith.addf %269, %285 : vector<8x32xf32>
    %287 = vector.extract_strided_slice %13 {offsets = [2, 0], sizes = [1, 32], strides = [1, 1]} : vector<4x32xf32> to vector<1x32xf32>
    %288 = vector.extract_strided_slice %15 {offsets = [2, 0], sizes = [1, 32], strides = [1, 1]} : vector<4x32xf32> to vector<1x32xf32>
    %cst_137 = arith.constant dense<0.000000e+00> : vector<8xf32>
    %289 = vector.multi_reduction <add>, %286, %cst_137 [1] : vector<8x32xf32> to vector<8xf32>
    %290 = vector.shape_cast %289 : vector<8xf32> to vector<8x1xf32>
    %cst_138 = arith.constant 3.200000e+01 : f32
    %291 = vector.broadcast %cst_138 : f32 to vector<8x1xf32>
    %292 = arith.divf %290, %291 : vector<8x1xf32>
    %293 = vector.broadcast %292 : vector<8x1xf32> to vector<8x32xf32>
    %294 = arith.subf %286, %293 : vector<8x32xf32>
    %295 = arith.mulf %294, %294 : vector<8x32xf32>
    %cst_139 = arith.constant dense<0.000000e+00> : vector<8xf32>
    %296 = vector.multi_reduction <add>, %295, %cst_139 [1] : vector<8x32xf32> to vector<8xf32>
    %297 = vector.shape_cast %296 : vector<8xf32> to vector<8x1xf32>
    %cst_140 = arith.constant 3.200000e+01 : f32
    %298 = vector.broadcast %cst_140 : f32 to vector<8x1xf32>
    %299 = arith.divf %297, %298 : vector<8x1xf32>
    %cst_141 = arith.constant 9.99999974E-6 : f32
    %300 = vector.broadcast %cst_141 : f32 to vector<8x1xf32>
    %301 = arith.addf %299, %300 : vector<8x1xf32>
    %302 = math.rsqrt %301 : vector<8x1xf32>
    %303 = vector.broadcast %302 : vector<8x1xf32> to vector<8x32xf32>
    %304 = arith.mulf %294, %303 : vector<8x32xf32>
    %305 = vector.broadcast %287 : vector<1x32xf32> to vector<8x32xf32>
    %306 = arith.mulf %304, %305 : vector<8x32xf32>
    %307 = vector.broadcast %288 : vector<1x32xf32> to vector<8x32xf32>
    %308 = arith.addf %306, %307 : vector<8x32xf32>
    %309 = vector.extract_strided_slice %13 {offsets = [3, 0], sizes = [1, 32], strides = [1, 1]} : vector<4x32xf32> to vector<1x32xf32>
    %310 = vector.extract_strided_slice %15 {offsets = [3, 0], sizes = [1, 32], strides = [1, 1]} : vector<4x32xf32> to vector<1x32xf32>
    %cst_142 = arith.constant dense<0.000000e+00> : vector<8xf32>
    %311 = vector.multi_reduction <add>, %308, %cst_142 [1] : vector<8x32xf32> to vector<8xf32>
    %312 = vector.shape_cast %311 : vector<8xf32> to vector<8x1xf32>
    %cst_143 = arith.constant 3.200000e+01 : f32
    %313 = vector.broadcast %cst_143 : f32 to vector<8x1xf32>
    %314 = arith.divf %312, %313 : vector<8x1xf32>
    %315 = vector.broadcast %314 : vector<8x1xf32> to vector<8x32xf32>
    %316 = arith.subf %308, %315 : vector<8x32xf32>
    %317 = arith.mulf %316, %316 : vector<8x32xf32>
    %cst_144 = arith.constant dense<0.000000e+00> : vector<8xf32>
    %318 = vector.multi_reduction <add>, %317, %cst_144 [1] : vector<8x32xf32> to vector<8xf32>
    %319 = vector.shape_cast %318 : vector<8xf32> to vector<8x1xf32>
    %cst_145 = arith.constant 3.200000e+01 : f32
    %320 = vector.broadcast %cst_145 : f32 to vector<8x1xf32>
    %321 = arith.divf %319, %320 : vector<8x1xf32>
    %cst_146 = arith.constant 9.99999974E-6 : f32
    %322 = vector.broadcast %cst_146 : f32 to vector<8x1xf32>
    %323 = arith.addf %321, %322 : vector<8x1xf32>
    %324 = math.rsqrt %323 : vector<8x1xf32>
    %325 = vector.broadcast %324 : vector<8x1xf32> to vector<8x32xf32>
    %326 = arith.mulf %316, %325 : vector<8x32xf32>
    %327 = vector.broadcast %309 : vector<1x32xf32> to vector<8x32xf32>
    %328 = arith.mulf %326, %327 : vector<8x32xf32>
    %329 = vector.broadcast %310 : vector<1x32xf32> to vector<8x32xf32>
    %330 = arith.addf %328, %329 : vector<8x32xf32>
    %c0_147 = arith.constant 0 : index
    %c0_148 = arith.constant 0 : index
    %c0_149 = arith.constant 0 : index
    %c0_150 = arith.constant 0 : index
    %331 = vector.load %arg26[%c0_147, %c0_148, %c0_149, %c0_150] : memref<2x1x8x32xf32, #tpu.memory_space<vmem>>, vector<1x1x8x32xf32>
    %332 = vector.shape_cast %331 : vector<1x1x8x32xf32> to vector<8x32xf32>
    %333 = vector.shape_cast %330 : vector<8x32xf32> to vector<1x1x8x32xf32>
    tpu.vector_store %arg26[%c0_147, %c0_148, %c0_149, %c0_150], %333 {strides = array<i32>} : memref<2x1x8x32xf32, #tpu.memory_space<vmem>>, vector<1x1x8x32xf32>,
    %c0_151 = arith.constant 0 : index
    %c0_152 = arith.constant 0 : index
    %c0_153 = arith.constant 0 : index
    %c0_154 = arith.constant 0 : index
    %334 = vector.load %arg27[%c0_151, %c0_152, %c0_153, %c0_154] : memref<2x1x8x16xf32, #tpu.memory_space<vmem>>, vector<1x1x8x16xf32>
    %335 = vector.shape_cast %334 : vector<1x1x8x16xf32> to vector<8x16xf32>
    %336 = vector.shape_cast %246 : vector<8x16xf32> to vector<1x1x8x16xf32>
    tpu.vector_store %arg27[%c0_151, %c0_152, %c0_153, %c0_154], %336 {strides = array<i32>} : memref<2x1x8x16xf32, #tpu.memory_space<vmem>>, vector<1x1x8x16xf32>,
    %c1 = arith.constant 1 : index
    %c0_155 = arith.constant 0 : index
    %c0_156 = arith.constant 0 : index
    %337 = vector.load %arg24[%c1, %c0_155, %c0_156] : memref<2x4x32xf32, #tpu.memory_space<vmem>>, vector<1x4x32xf32>
    %338 = vector.shape_cast %337 : vector<1x4x32xf32> to vector<4x32xf32>
    %c1_157 = arith.constant 1 : index
    %c0_158 = arith.constant 0 : index
    %c0_159 = arith.constant 0 : index
    %339 = vector.load %arg25[%c1_157, %c0_158, %c0_159] : memref<2x4x32xf32, #tpu.memory_space<vmem>>, vector<1x4x32xf32>
    %340 = vector.shape_cast %339 : vector<1x4x32xf32> to vector<4x32xf32>
    %341 = arith.addf %308, %6 : vector<8x32xf32>
    %c1_160 = arith.constant 1 : index
    %c0_161 = arith.constant 0 : index
    %c0_162 = arith.constant 0 : index
    %342 = vector.load %arg6[%c1_160, %c0_161, %c0_162] : memref<2x32x64xf32, #tpu.memory_space<vmem>>, vector<1x32x64xf32>
    %343 = vector.shape_cast %342 : vector<1x32x64xf32> to vector<32x64xf32>
    %cst_163 = arith.constant dense<0.000000e+00> : vector<8x64xf32>
    %344 = tpu.matmul %341, %343, %cst_163 {dimension_numbers = #tpu.dot_dimension_numbers<[1], [0], [0], [1], [0, 0, 1, 1], [], []>} : vector<8x32xf32>, vector<32x64xf32>, vector<8x64xf32> -> vector<8x64xf32>
    %c1_164 = arith.constant 1 : index
    %c0_165 = arith.constant 0 : index
    %c0_166 = arith.constant 0 : index
    %345 = vector.load %arg7[%c1_164, %c0_165, %c0_166] : memref<2x1x64xf32, #tpu.memory_space<vmem>>, vector<1x1x64xf32>
    %346 = vector.shape_cast %345 : vector<1x1x64xf32> to vector<1x64xf32>
    %347 = vector.broadcast %346 : vector<1x64xf32> to vector<8x64xf32>
    %348 = arith.addf %344, %347 : vector<8x64xf32>
    %c1_167 = arith.constant 1 : index
    %c0_168 = arith.constant 0 : index
    %c0_169 = arith.constant 0 : index
    %349 = vector.load %arg8[%c1_167, %c0_168, %c0_169] : memref<2x32x32xf32, #tpu.memory_space<vmem>>, vector<1x32x32xf32>
    %350 = vector.shape_cast %349 : vector<1x32x32xf32> to vector<32x32xf32>
    %cst_170 = arith.constant dense<0.000000e+00> : vector<8x32xf32>
    %351 = tpu.matmul %308, %350, %cst_170 {dimension_numbers = #tpu.dot_dimension_numbers<[1], [0], [0], [1], [0, 0, 1, 1], [], []>} : vector<8x32xf32>, vector<32x32xf32>, vector<8x32xf32> -> vector<8x32xf32>
    %c1_171 = arith.constant 1 : index
    %c0_172 = arith.constant 0 : index
    %c0_173 = arith.constant 0 : index
    %352 = vector.load %arg9[%c1_171, %c0_172, %c0_173] : memref<2x1x32xf32, #tpu.memory_space<vmem>>, vector<1x1x32xf32>
    %353 = vector.shape_cast %352 : vector<1x1x32xf32> to vector<1x32xf32>
    %354 = vector.broadcast %353 : vector<1x32xf32> to vector<8x32xf32>
    %355 = arith.addf %351, %354 : vector<8x32xf32>
    %356 = vector.extract_strided_slice %348 {offsets = [0, 0], sizes = [8, 32], strides = [1, 1]} : vector<8x64xf32> to vector<8x32xf32>
    %357 = vector.extract_strided_slice %348 {offsets = [0, 32], sizes = [8, 32], strides = [1, 1]} : vector<8x64xf32> to vector<8x32xf32>
    %c1_174 = arith.constant 1 : index
    %c0_175 = arith.constant 0 : index
    %c0_176 = arith.constant 0 : index
    %358 = vector.load %arg10[%c1_174, %c0_175, %c0_176] : memref<2x32x32xf32, #tpu.memory_space<vmem>>, vector<1x32x32xf32>
    %359 = vector.shape_cast %358 : vector<1x32x32xf32> to vector<32x32xf32>
    %c1_177 = arith.constant 1 : index
    %c0_178 = arith.constant 0 : index
    %c0_179 = arith.constant 0 : index
    %360 = vector.load %arg11[%c1_177, %c0_178, %c0_179] : memref<2x1x32xf32, #tpu.memory_space<vmem>>, vector<1x1x32xf32>
    %361 = vector.shape_cast %360 : vector<1x1x32xf32> to vector<1x32xf32>
    %cst_180 = arith.constant 0.353553385 : f32
    %362 = vector.broadcast %cst_180 : f32 to vector<8x32xf32>
    %363 = arith.mulf %356, %362 : vector<8x32xf32>
    %cst_181 = arith.constant 0.000000e+00 : f32
    %364 = vector.broadcast %cst_181 : f32 to vector<8x32xf32>
    %365 = vector.broadcast %361 : vector<1x32xf32> to vector<8x32xf32>
    %366 = arith.addf %364, %365 : vector<8x32xf32>
    %367 = vector.extract_strided_slice %363 {offsets = [0, 0], sizes = [8, 8], strides = [1, 1]} : vector<8x32xf32> to vector<8x8xf32>
    %368 = vector.extract_strided_slice %357 {offsets = [0, 0], sizes = [8, 8], strides = [1, 1]} : vector<8x32xf32> to vector<8x8xf32>
    %369 = vector.extract_strided_slice %355 {offsets = [0, 0], sizes = [8, 8], strides = [1, 1]} : vector<8x32xf32> to vector<8x8xf32>
    %cst_182 = arith.constant dense<0.000000e+00> : vector<8x8xf32>
    %370 = tpu.matmul %367, %368, %cst_182 {dimension_numbers = #tpu.dot_dimension_numbers<[1], [1], [0], [0], [0, 0, 1, 0], [], []>} : vector<8x8xf32>, vector<8x8xf32>, vector<8x8xf32> -> vector<8x8xf32>
    %cst_183 = arith.constant dense<0xFF800000> : vector<8xf32>
    %371 = vector.multi_reduction <maximumf>, %370, %cst_183 [1] : vector<8x8xf32> to vector<8xf32>
    %372 = vector.shape_cast %371 : vector<8xf32> to vector<8x1xf32>
    %373 = vector.broadcast %372 : vector<8x1xf32> to vector<8x8xf32>
    %374 = arith.subf %370, %373 : vector<8x8xf32>
    %375 = math.exp %374 : vector<8x8xf32>
    %cst_184 = arith.constant dense<0.000000e+00> : vector<8xf32>
    %376 = vector.multi_reduction <add>, %375, %cst_184 [1] : vector<8x8xf32> to vector<8xf32>
    %377 = vector.shape_cast %376 : vector<8xf32> to vector<8x1xf32>
    %378 = tpu.reciprocal %377 {approx = true} : vector<8x1xf32> -> vector<8x1xf32>
    %379 = vector.broadcast %378 : vector<8x1xf32> to vector<8x8xf32>
    %380 = arith.mulf %375, %379 : vector<8x8xf32>
    %cst_185 = arith.constant dense<0.000000e+00> : vector<8x8xf32>
    %381 = tpu.matmul %380, %369, %cst_185 {dimension_numbers = #tpu.dot_dimension_numbers<[1], [0], [0], [1], [0, 0, 1, 1], [], []>} : vector<8x8xf32>, vector<8x8xf32>, vector<8x8xf32> -> vector<8x8xf32>
    %382 = vector.extract_strided_slice %359 {offsets = [0, 0], sizes = [8, 32], strides = [1, 1]} : vector<32x32xf32> to vector<8x32xf32>
    %cst_186 = arith.constant dense<0.000000e+00> : vector<8x32xf32>
    %383 = tpu.matmul %381, %382, %cst_186 {dimension_numbers = #tpu.dot_dimension_numbers<[1], [0], [0], [1], [0, 0, 1, 1], [], []>} : vector<8x8xf32>, vector<8x32xf32>, vector<8x32xf32> -> vector<8x32xf32>
    %384 = arith.addf %366, %383 : vector<8x32xf32>
    %385 = vector.extract_strided_slice %363 {offsets = [0, 8], sizes = [8, 8], strides = [1, 1]} : vector<8x32xf32> to vector<8x8xf32>
    %386 = vector.extract_strided_slice %357 {offsets = [0, 8], sizes = [8, 8], strides = [1, 1]} : vector<8x32xf32> to vector<8x8xf32>
    %387 = vector.extract_strided_slice %355 {offsets = [0, 8], sizes = [8, 8], strides = [1, 1]} : vector<8x32xf32> to vector<8x8xf32>
    %cst_187 = arith.constant dense<0.000000e+00> : vector<8x8xf32>
    %388 = tpu.matmul %385, %386, %cst_187 {dimension_numbers = #tpu.dot_dimension_numbers<[1], [1], [0], [0], [0, 0, 1, 0], [], []>} : vector<8x8xf32>, vector<8x8xf32>, vector<8x8xf32> -> vector<8x8xf32>
    %cst_188 = arith.constant dense<0xFF800000> : vector<8xf32>
    %389 = vector.multi_reduction <maximumf>, %388, %cst_188 [1] : vector<8x8xf32> to vector<8xf32>
    %390 = vector.shape_cast %389 : vector<8xf32> to vector<8x1xf32>
    %391 = vector.broadcast %390 : vector<8x1xf32> to vector<8x8xf32>
    %392 = arith.subf %388, %391 : vector<8x8xf32>
    %393 = math.exp %392 : vector<8x8xf32>
    %cst_189 = arith.constant dense<0.000000e+00> : vector<8xf32>
    %394 = vector.multi_reduction <add>, %393, %cst_189 [1] : vector<8x8xf32> to vector<8xf32>
    %395 = vector.shape_cast %394 : vector<8xf32> to vector<8x1xf32>
    %396 = tpu.reciprocal %395 {approx = true} : vector<8x1xf32> -> vector<8x1xf32>
    %397 = vector.broadcast %396 : vector<8x1xf32> to vector<8x8xf32>
    %398 = arith.mulf %393, %397 : vector<8x8xf32>
    %cst_190 = arith.constant dense<0.000000e+00> : vector<8x8xf32>
    %399 = tpu.matmul %398, %387, %cst_190 {dimension_numbers = #tpu.dot_dimension_numbers<[1], [0], [0], [1], [0, 0, 1, 1], [], []>} : vector<8x8xf32>, vector<8x8xf32>, vector<8x8xf32> -> vector<8x8xf32>
    %400 = vector.extract_strided_slice %359 {offsets = [8, 0], sizes = [8, 32], strides = [1, 1]} : vector<32x32xf32> to vector<8x32xf32>
    %cst_191 = arith.constant dense<0.000000e+00> : vector<8x32xf32>
    %401 = tpu.matmul %399, %400, %cst_191 {dimension_numbers = #tpu.dot_dimension_numbers<[1], [0], [0], [1], [0, 0, 1, 1], [], []>} : vector<8x8xf32>, vector<8x32xf32>, vector<8x32xf32> -> vector<8x32xf32>
    %402 = arith.addf %384, %401 : vector<8x32xf32>
    %403 = vector.extract_strided_slice %363 {offsets = [0, 16], sizes = [8, 8], strides = [1, 1]} : vector<8x32xf32> to vector<8x8xf32>
    %404 = vector.extract_strided_slice %357 {offsets = [0, 16], sizes = [8, 8], strides = [1, 1]} : vector<8x32xf32> to vector<8x8xf32>
    %405 = vector.extract_strided_slice %355 {offsets = [0, 16], sizes = [8, 8], strides = [1, 1]} : vector<8x32xf32> to vector<8x8xf32>
    %cst_192 = arith.constant dense<0.000000e+00> : vector<8x8xf32>
    %406 = tpu.matmul %403, %404, %cst_192 {dimension_numbers = #tpu.dot_dimension_numbers<[1], [1], [0], [0], [0, 0, 1, 0], [], []>} : vector<8x8xf32>, vector<8x8xf32>, vector<8x8xf32> -> vector<8x8xf32>
    %cst_193 = arith.constant dense<0xFF800000> : vector<8xf32>
    %407 = vector.multi_reduction <maximumf>, %406, %cst_193 [1] : vector<8x8xf32> to vector<8xf32>
    %408 = vector.shape_cast %407 : vector<8xf32> to vector<8x1xf32>
    %409 = vector.broadcast %408 : vector<8x1xf32> to vector<8x8xf32>
    %410 = arith.subf %406, %409 : vector<8x8xf32>
    %411 = math.exp %410 : vector<8x8xf32>
    %cst_194 = arith.constant dense<0.000000e+00> : vector<8xf32>
    %412 = vector.multi_reduction <add>, %411, %cst_194 [1] : vector<8x8xf32> to vector<8xf32>
    %413 = vector.shape_cast %412 : vector<8xf32> to vector<8x1xf32>
    %414 = tpu.reciprocal %413 {approx = true} : vector<8x1xf32> -> vector<8x1xf32>
    %415 = vector.broadcast %414 : vector<8x1xf32> to vector<8x8xf32>
    %416 = arith.mulf %411, %415 : vector<8x8xf32>
    %cst_195 = arith.constant dense<0.000000e+00> : vector<8x8xf32>
    %417 = tpu.matmul %416, %405, %cst_195 {dimension_numbers = #tpu.dot_dimension_numbers<[1], [0], [0], [1], [0, 0, 1, 1], [], []>} : vector<8x8xf32>, vector<8x8xf32>, vector<8x8xf32> -> vector<8x8xf32>
    %418 = vector.extract_strided_slice %359 {offsets = [16, 0], sizes = [8, 32], strides = [1, 1]} : vector<32x32xf32> to vector<8x32xf32>
    %cst_196 = arith.constant dense<0.000000e+00> : vector<8x32xf32>
    %419 = tpu.matmul %417, %418, %cst_196 {dimension_numbers = #tpu.dot_dimension_numbers<[1], [0], [0], [1], [0, 0, 1, 1], [], []>} : vector<8x8xf32>, vector<8x32xf32>, vector<8x32xf32> -> vector<8x32xf32>
    %420 = arith.addf %402, %419 : vector<8x32xf32>
    %421 = vector.extract_strided_slice %363 {offsets = [0, 24], sizes = [8, 8], strides = [1, 1]} : vector<8x32xf32> to vector<8x8xf32>
    %422 = vector.extract_strided_slice %357 {offsets = [0, 24], sizes = [8, 8], strides = [1, 1]} : vector<8x32xf32> to vector<8x8xf32>
    %423 = vector.extract_strided_slice %355 {offsets = [0, 24], sizes = [8, 8], strides = [1, 1]} : vector<8x32xf32> to vector<8x8xf32>
    %cst_197 = arith.constant dense<0.000000e+00> : vector<8x8xf32>
    %424 = tpu.matmul %421, %422, %cst_197 {dimension_numbers = #tpu.dot_dimension_numbers<[1], [1], [0], [0], [0, 0, 1, 0], [], []>} : vector<8x8xf32>, vector<8x8xf32>, vector<8x8xf32> -> vector<8x8xf32>
    %cst_198 = arith.constant dense<0xFF800000> : vector<8xf32>
    %425 = vector.multi_reduction <maximumf>, %424, %cst_198 [1] : vector<8x8xf32> to vector<8xf32>
    %426 = vector.shape_cast %425 : vector<8xf32> to vector<8x1xf32>
    %427 = vector.broadcast %426 : vector<8x1xf32> to vector<8x8xf32>
    %428 = arith.subf %424, %427 : vector<8x8xf32>
    %429 = math.exp %428 : vector<8x8xf32>
    %cst_199 = arith.constant dense<0.000000e+00> : vector<8xf32>
    %430 = vector.multi_reduction <add>, %429, %cst_199 [1] : vector<8x8xf32> to vector<8xf32>
    %431 = vector.shape_cast %430 : vector<8xf32> to vector<8x1xf32>
    %432 = tpu.reciprocal %431 {approx = true} : vector<8x1xf32> -> vector<8x1xf32>
    %433 = vector.broadcast %432 : vector<8x1xf32> to vector<8x8xf32>
    %434 = arith.mulf %429, %433 : vector<8x8xf32>
    %cst_200 = arith.constant dense<0.000000e+00> : vector<8x8xf32>
    %435 = tpu.matmul %434, %423, %cst_200 {dimension_numbers = #tpu.dot_dimension_numbers<[1], [0], [0], [1], [0, 0, 1, 1], [], []>} : vector<8x8xf32>, vector<8x8xf32>, vector<8x8xf32> -> vector<8x8xf32>
    %436 = vector.extract_strided_slice %359 {offsets = [24, 0], sizes = [8, 32], strides = [1, 1]} : vector<32x32xf32> to vector<8x32xf32>
    %cst_201 = arith.constant dense<0.000000e+00> : vector<8x32xf32>
    %437 = tpu.matmul %435, %436, %cst_201 {dimension_numbers = #tpu.dot_dimension_numbers<[1], [0], [0], [1], [0, 0, 1, 1], [], []>} : vector<8x8xf32>, vector<8x32xf32>, vector<8x32xf32> -> vector<8x32xf32>
    %438 = arith.addf %420, %437 : vector<8x32xf32>
    %439 = arith.addf %308, %438 : vector<8x32xf32>
    %440 = vector.extract_strided_slice %338 {offsets = [0, 0], sizes = [1, 32], strides = [1, 1]} : vector<4x32xf32> to vector<1x32xf32>
    %441 = vector.extract_strided_slice %340 {offsets = [0, 0], sizes = [1, 32], strides = [1, 1]} : vector<4x32xf32> to vector<1x32xf32>
    %cst_202 = arith.constant dense<0.000000e+00> : vector<8xf32>
    %442 = vector.multi_reduction <add>, %439, %cst_202 [1] : vector<8x32xf32> to vector<8xf32>
    %443 = vector.shape_cast %442 : vector<8xf32> to vector<8x1xf32>
    %cst_203 = arith.constant 3.200000e+01 : f32
    %444 = vector.broadcast %cst_203 : f32 to vector<8x1xf32>
    %445 = arith.divf %443, %444 : vector<8x1xf32>
    %446 = vector.broadcast %445 : vector<8x1xf32> to vector<8x32xf32>
    %447 = arith.subf %439, %446 : vector<8x32xf32>
    %448 = arith.mulf %447, %447 : vector<8x32xf32>
    %cst_204 = arith.constant dense<0.000000e+00> : vector<8xf32>
    %449 = vector.multi_reduction <add>, %448, %cst_204 [1] : vector<8x32xf32> to vector<8xf32>
    %450 = vector.shape_cast %449 : vector<8xf32> to vector<8x1xf32>
    %cst_205 = arith.constant 3.200000e+01 : f32
    %451 = vector.broadcast %cst_205 : f32 to vector<8x1xf32>
    %452 = arith.divf %450, %451 : vector<8x1xf32>
    %cst_206 = arith.constant 9.99999974E-6 : f32
    %453 = vector.broadcast %cst_206 : f32 to vector<8x1xf32>
    %454 = arith.addf %452, %453 : vector<8x1xf32>
    %455 = math.rsqrt %454 : vector<8x1xf32>
    %456 = vector.broadcast %455 : vector<8x1xf32> to vector<8x32xf32>
    %457 = arith.mulf %447, %456 : vector<8x32xf32>
    %458 = vector.broadcast %440 : vector<1x32xf32> to vector<8x32xf32>
    %459 = arith.mulf %457, %458 : vector<8x32xf32>
    %460 = vector.broadcast %441 : vector<1x32xf32> to vector<8x32xf32>
    %461 = arith.addf %459, %460 : vector<8x32xf32>
    %462 = arith.addf %461, %3 : vector<8x32xf32>
    %c1_207 = arith.constant 1 : index
    %c0_208 = arith.constant 0 : index
    %c0_209 = arith.constant 0 : index
    %463 = vector.load %arg12[%c1_207, %c0_208, %c0_209] : memref<2x32x32xf32, #tpu.memory_space<vmem>>, vector<1x32x32xf32>
    %464 = vector.shape_cast %463 : vector<1x32x32xf32> to vector<32x32xf32>
    %cst_210 = arith.constant dense<0.000000e+00> : vector<8x32xf32>
    %465 = tpu.matmul %462, %464, %cst_210 {dimension_numbers = #tpu.dot_dimension_numbers<[1], [0], [0], [1], [0, 0, 1, 1], [], []>} : vector<8x32xf32>, vector<32x32xf32>, vector<8x32xf32> -> vector<8x32xf32>
    %c1_211 = arith.constant 1 : index
    %c0_212 = arith.constant 0 : index
    %c0_213 = arith.constant 0 : index
    %466 = vector.load %arg13[%c1_211, %c0_212, %c0_213] : memref<2x1x32xf32, #tpu.memory_space<vmem>>, vector<1x1x32xf32>
    %467 = vector.shape_cast %466 : vector<1x1x32xf32> to vector<1x32xf32>
    %468 = vector.broadcast %467 : vector<1x32xf32> to vector<8x32xf32>
    %469 = arith.addf %465, %468 : vector<8x32xf32>
    %c1_214 = arith.constant 1 : index
    %c0_215 = arith.constant 0 : index
    %c0_216 = arith.constant 0 : index
    %470 = vector.load %arg14[%c1_214, %c0_215, %c0_216] : memref<2x32x32xf32, #tpu.memory_space<vmem>>, vector<1x32x32xf32>
    %471 = vector.shape_cast %470 : vector<1x32x32xf32> to vector<32x32xf32>
    %cst_217 = arith.constant dense<0.000000e+00> : vector<16x32xf32>
    %472 = tpu.matmul %11, %471, %cst_217 {dimension_numbers = #tpu.dot_dimension_numbers<[1], [0], [0], [1], [0, 0, 1, 1], [], []>} : vector<16x32xf32>, vector<32x32xf32>, vector<16x32xf32> -> vector<16x32xf32>
    %c1_218 = arith.constant 1 : index
    %c0_219 = arith.constant 0 : index
    %c0_220 = arith.constant 0 : index
    %473 = vector.load %arg15[%c1_218, %c0_219, %c0_220] : memref<2x1x32xf32, #tpu.memory_space<vmem>>, vector<1x1x32xf32>
    %474 = vector.shape_cast %473 : vector<1x1x32xf32> to vector<1x32xf32>
    %475 = vector.broadcast %474 : vector<1x32xf32> to vector<16x32xf32>
    %476 = arith.addf %472, %475 : vector<16x32xf32>
    %c1_221 = arith.constant 1 : index
    %c0_222 = arith.constant 0 : index
    %c0_223 = arith.constant 0 : index
    %477 = vector.load %arg16[%c1_221, %c0_222, %c0_223] : memref<2x32x32xf32, #tpu.memory_space<vmem>>, vector<1x32x32xf32>
    %478 = vector.shape_cast %477 : vector<1x32x32xf32> to vector<32x32xf32>
    %cst_224 = arith.constant dense<0.000000e+00> : vector<16x32xf32>
    %479 = tpu.matmul %8, %478, %cst_224 {dimension_numbers = #tpu.dot_dimension_numbers<[1], [0], [0], [1], [0, 0, 1, 1], [], []>} : vector<16x32xf32>, vector<32x32xf32>, vector<16x32xf32> -> vector<16x32xf32>
    %c1_225 = arith.constant 1 : index
    %c0_226 = arith.constant 0 : index
    %c0_227 = arith.constant 0 : index
    %480 = vector.load %arg17[%c1_225, %c0_226, %c0_227] : memref<2x1x32xf32, #tpu.memory_space<vmem>>, vector<1x1x32xf32>
    %481 = vector.shape_cast %480 : vector<1x1x32xf32> to vector<1x32xf32>
    %482 = vector.broadcast %481 : vector<1x32xf32> to vector<16x32xf32>
    %483 = arith.addf %479, %482 : vector<16x32xf32>
    %c1_228 = arith.constant 1 : index
    %c0_229 = arith.constant 0 : index
    %c0_230 = arith.constant 0 : index
    %484 = vector.load %arg18[%c1_228, %c0_229, %c0_230] : memref<2x32x32xf32, #tpu.memory_space<vmem>>, vector<1x32x32xf32>
    %485 = vector.shape_cast %484 : vector<1x32x32xf32> to vector<32x32xf32>
    %c1_231 = arith.constant 1 : index
    %c0_232 = arith.constant 0 : index
    %c0_233 = arith.constant 0 : index
    %486 = vector.load %arg19[%c1_231, %c0_232, %c0_233] : memref<2x1x32xf32, #tpu.memory_space<vmem>>, vector<1x1x32xf32>
    %487 = vector.shape_cast %486 : vector<1x1x32xf32> to vector<1x32xf32>
    %cst_234 = arith.constant 0.353553385 : f32
    %488 = vector.broadcast %cst_234 : f32 to vector<8x32xf32>
    %489 = arith.mulf %469, %488 : vector<8x32xf32>
    %cst_235 = arith.constant 0.000000e+00 : f32
    %490 = vector.broadcast %cst_235 : f32 to vector<8x32xf32>
    %491 = vector.broadcast %487 : vector<1x32xf32> to vector<8x32xf32>
    %492 = arith.addf %490, %491 : vector<8x32xf32>
    %cst_236 = arith.constant 0.000000e+00 : f32
    %493 = vector.broadcast %cst_236 : f32 to vector<8x16xf32>
    %494 = vector.extract_strided_slice %489 {offsets = [0, 0], sizes = [8, 8], strides = [1, 1]} : vector<8x32xf32> to vector<8x8xf32>
    %495 = vector.extract_strided_slice %476 {offsets = [0, 0], sizes = [16, 8], strides = [1, 1]} : vector<16x32xf32> to vector<16x8xf32>
    %496 = vector.extract_strided_slice %483 {offsets = [0, 0], sizes = [16, 8], strides = [1, 1]} : vector<16x32xf32> to vector<16x8xf32>
    %cst_237 = arith.constant dense<0.000000e+00> : vector<8x16xf32>
    %497 = tpu.matmul %494, %495, %cst_237 {dimension_numbers = #tpu.dot_dimension_numbers<[1], [1], [0], [0], [0, 0, 1, 0], [], []>} : vector<8x8xf32>, vector<16x8xf32>, vector<8x16xf32> -> vector<8x16xf32>
    %cst_238 = arith.constant dense<0xFF800000> : vector<8xf32>
    %498 = vector.multi_reduction <maximumf>, %497, %cst_238 [1] : vector<8x16xf32> to vector<8xf32>
    %499 = vector.shape_cast %498 : vector<8xf32> to vector<8x1xf32>
    %500 = vector.broadcast %499 : vector<8x1xf32> to vector<8x16xf32>
    %501 = arith.subf %497, %500 : vector<8x16xf32>
    %502 = math.exp %501 : vector<8x16xf32>
    %cst_239 = arith.constant dense<0.000000e+00> : vector<8xf32>
    %503 = vector.multi_reduction <add>, %502, %cst_239 [1] : vector<8x16xf32> to vector<8xf32>
    %504 = vector.shape_cast %503 : vector<8xf32> to vector<8x1xf32>
    %505 = tpu.reciprocal %504 {approx = true} : vector<8x1xf32> -> vector<8x1xf32>
    %506 = vector.broadcast %505 : vector<8x1xf32> to vector<8x16xf32>
    %507 = arith.mulf %502, %506 : vector<8x16xf32>
    %508 = arith.addf %493, %507 : vector<8x16xf32>
    %cst_240 = arith.constant dense<0.000000e+00> : vector<8x8xf32>
    %509 = tpu.matmul %507, %496, %cst_240 {dimension_numbers = #tpu.dot_dimension_numbers<[1], [0], [0], [1], [0, 0, 1, 1], [], []>} : vector<8x16xf32>, vector<16x8xf32>, vector<8x8xf32> -> vector<8x8xf32>
    %510 = vector.extract_strided_slice %485 {offsets = [0, 0], sizes = [8, 32], strides = [1, 1]} : vector<32x32xf32> to vector<8x32xf32>
    %cst_241 = arith.constant dense<0.000000e+00> : vector<8x32xf32>
    %511 = tpu.matmul %509, %510, %cst_241 {dimension_numbers = #tpu.dot_dimension_numbers<[1], [0], [0], [1], [0, 0, 1, 1], [], []>} : vector<8x8xf32>, vector<8x32xf32>, vector<8x32xf32> -> vector<8x32xf32>
    %512 = arith.addf %492, %511 : vector<8x32xf32>
    %513 = vector.extract_strided_slice %489 {offsets = [0, 8], sizes = [8, 8], strides = [1, 1]} : vector<8x32xf32> to vector<8x8xf32>
    %514 = vector.extract_strided_slice %476 {offsets = [0, 8], sizes = [16, 8], strides = [1, 1]} : vector<16x32xf32> to vector<16x8xf32>
    %515 = vector.extract_strided_slice %483 {offsets = [0, 8], sizes = [16, 8], strides = [1, 1]} : vector<16x32xf32> to vector<16x8xf32>
    %cst_242 = arith.constant dense<0.000000e+00> : vector<8x16xf32>
    %516 = tpu.matmul %513, %514, %cst_242 {dimension_numbers = #tpu.dot_dimension_numbers<[1], [1], [0], [0], [0, 0, 1, 0], [], []>} : vector<8x8xf32>, vector<16x8xf32>, vector<8x16xf32> -> vector<8x16xf32>
    %cst_243 = arith.constant dense<0xFF800000> : vector<8xf32>
    %517 = vector.multi_reduction <maximumf>, %516, %cst_243 [1] : vector<8x16xf32> to vector<8xf32>
    %518 = vector.shape_cast %517 : vector<8xf32> to vector<8x1xf32>
    %519 = vector.broadcast %518 : vector<8x1xf32> to vector<8x16xf32>
    %520 = arith.subf %516, %519 : vector<8x16xf32>
    %521 = math.exp %520 : vector<8x16xf32>
    %cst_244 = arith.constant dense<0.000000e+00> : vector<8xf32>
    %522 = vector.multi_reduction <add>, %521, %cst_244 [1] : vector<8x16xf32> to vector<8xf32>
    %523 = vector.shape_cast %522 : vector<8xf32> to vector<8x1xf32>
    %524 = tpu.reciprocal %523 {approx = true} : vector<8x1xf32> -> vector<8x1xf32>
    %525 = vector.broadcast %524 : vector<8x1xf32> to vector<8x16xf32>
    %526 = arith.mulf %521, %525 : vector<8x16xf32>
    %527 = arith.addf %508, %526 : vector<8x16xf32>
    %cst_245 = arith.constant dense<0.000000e+00> : vector<8x8xf32>
    %528 = tpu.matmul %526, %515, %cst_245 {dimension_numbers = #tpu.dot_dimension_numbers<[1], [0], [0], [1], [0, 0, 1, 1], [], []>} : vector<8x16xf32>, vector<16x8xf32>, vector<8x8xf32> -> vector<8x8xf32>
    %529 = vector.extract_strided_slice %485 {offsets = [8, 0], sizes = [8, 32], strides = [1, 1]} : vector<32x32xf32> to vector<8x32xf32>
    %cst_246 = arith.constant dense<0.000000e+00> : vector<8x32xf32>
    %530 = tpu.matmul %528, %529, %cst_246 {dimension_numbers = #tpu.dot_dimension_numbers<[1], [0], [0], [1], [0, 0, 1, 1], [], []>} : vector<8x8xf32>, vector<8x32xf32>, vector<8x32xf32> -> vector<8x32xf32>
    %531 = arith.addf %512, %530 : vector<8x32xf32>
    %532 = vector.extract_strided_slice %489 {offsets = [0, 16], sizes = [8, 8], strides = [1, 1]} : vector<8x32xf32> to vector<8x8xf32>
    %533 = vector.extract_strided_slice %476 {offsets = [0, 16], sizes = [16, 8], strides = [1, 1]} : vector<16x32xf32> to vector<16x8xf32>
    %534 = vector.extract_strided_slice %483 {offsets = [0, 16], sizes = [16, 8], strides = [1, 1]} : vector<16x32xf32> to vector<16x8xf32>
    %cst_247 = arith.constant dense<0.000000e+00> : vector<8x16xf32>
    %535 = tpu.matmul %532, %533, %cst_247 {dimension_numbers = #tpu.dot_dimension_numbers<[1], [1], [0], [0], [0, 0, 1, 0], [], []>} : vector<8x8xf32>, vector<16x8xf32>, vector<8x16xf32> -> vector<8x16xf32>
    %cst_248 = arith.constant dense<0xFF800000> : vector<8xf32>
    %536 = vector.multi_reduction <maximumf>, %535, %cst_248 [1] : vector<8x16xf32> to vector<8xf32>
    %537 = vector.shape_cast %536 : vector<8xf32> to vector<8x1xf32>
    %538 = vector.broadcast %537 : vector<8x1xf32> to vector<8x16xf32>
    %539 = arith.subf %535, %538 : vector<8x16xf32>
    %540 = math.exp %539 : vector<8x16xf32>
    %cst_249 = arith.constant dense<0.000000e+00> : vector<8xf32>
    %541 = vector.multi_reduction <add>, %540, %cst_249 [1] : vector<8x16xf32> to vector<8xf32>
    %542 = vector.shape_cast %541 : vector<8xf32> to vector<8x1xf32>
    %543 = tpu.reciprocal %542 {approx = true} : vector<8x1xf32> -> vector<8x1xf32>
    %544 = vector.broadcast %543 : vector<8x1xf32> to vector<8x16xf32>
    %545 = arith.mulf %540, %544 : vector<8x16xf32>
    %546 = arith.addf %527, %545 : vector<8x16xf32>
    %cst_250 = arith.constant dense<0.000000e+00> : vector<8x8xf32>
    %547 = tpu.matmul %545, %534, %cst_250 {dimension_numbers = #tpu.dot_dimension_numbers<[1], [0], [0], [1], [0, 0, 1, 1], [], []>} : vector<8x16xf32>, vector<16x8xf32>, vector<8x8xf32> -> vector<8x8xf32>
    %548 = vector.extract_strided_slice %485 {offsets = [16, 0], sizes = [8, 32], strides = [1, 1]} : vector<32x32xf32> to vector<8x32xf32>
    %cst_251 = arith.constant dense<0.000000e+00> : vector<8x32xf32>
    %549 = tpu.matmul %547, %548, %cst_251 {dimension_numbers = #tpu.dot_dimension_numbers<[1], [0], [0], [1], [0, 0, 1, 1], [], []>} : vector<8x8xf32>, vector<8x32xf32>, vector<8x32xf32> -> vector<8x32xf32>
    %550 = arith.addf %531, %549 : vector<8x32xf32>
    %551 = vector.extract_strided_slice %489 {offsets = [0, 24], sizes = [8, 8], strides = [1, 1]} : vector<8x32xf32> to vector<8x8xf32>
    %552 = vector.extract_strided_slice %476 {offsets = [0, 24], sizes = [16, 8], strides = [1, 1]} : vector<16x32xf32> to vector<16x8xf32>
    %553 = vector.extract_strided_slice %483 {offsets = [0, 24], sizes = [16, 8], strides = [1, 1]} : vector<16x32xf32> to vector<16x8xf32>
    %cst_252 = arith.constant dense<0.000000e+00> : vector<8x16xf32>
    %554 = tpu.matmul %551, %552, %cst_252 {dimension_numbers = #tpu.dot_dimension_numbers<[1], [1], [0], [0], [0, 0, 1, 0], [], []>} : vector<8x8xf32>, vector<16x8xf32>, vector<8x16xf32> -> vector<8x16xf32>
    %cst_253 = arith.constant dense<0xFF800000> : vector<8xf32>
    %555 = vector.multi_reduction <maximumf>, %554, %cst_253 [1] : vector<8x16xf32> to vector<8xf32>
    %556 = vector.shape_cast %555 : vector<8xf32> to vector<8x1xf32>
    %557 = vector.broadcast %556 : vector<8x1xf32> to vector<8x16xf32>
    %558 = arith.subf %554, %557 : vector<8x16xf32>
    %559 = math.exp %558 : vector<8x16xf32>
    %cst_254 = arith.constant dense<0.000000e+00> : vector<8xf32>
    %560 = vector.multi_reduction <add>, %559, %cst_254 [1] : vector<8x16xf32> to vector<8xf32>
    %561 = vector.shape_cast %560 : vector<8xf32> to vector<8x1xf32>
    %562 = tpu.reciprocal %561 {approx = true} : vector<8x1xf32> -> vector<8x1xf32>
    %563 = vector.broadcast %562 : vector<8x1xf32> to vector<8x16xf32>
    %564 = arith.mulf %559, %563 : vector<8x16xf32>
    %565 = arith.addf %546, %564 : vector<8x16xf32>
    %cst_255 = arith.constant dense<0.000000e+00> : vector<8x8xf32>
    %566 = tpu.matmul %564, %553, %cst_255 {dimension_numbers = #tpu.dot_dimension_numbers<[1], [0], [0], [1], [0, 0, 1, 1], [], []>} : vector<8x16xf32>, vector<16x8xf32>, vector<8x8xf32> -> vector<8x8xf32>
    %567 = vector.extract_strided_slice %485 {offsets = [24, 0], sizes = [8, 32], strides = [1, 1]} : vector<32x32xf32> to vector<8x32xf32>
    %cst_256 = arith.constant dense<0.000000e+00> : vector<8x32xf32>
    %568 = tpu.matmul %566, %567, %cst_256 {dimension_numbers = #tpu.dot_dimension_numbers<[1], [0], [0], [1], [0, 0, 1, 1], [], []>} : vector<8x8xf32>, vector<8x32xf32>, vector<8x32xf32> -> vector<8x32xf32>
    %569 = arith.addf %550, %568 : vector<8x32xf32>
    %cst_257 = arith.constant 2.500000e-01 : f32
    %570 = vector.broadcast %cst_257 : f32 to vector<8x16xf32>
    %571 = arith.mulf %565, %570 : vector<8x16xf32>
    %572 = arith.addf %461, %569 : vector<8x32xf32>
    %573 = vector.extract_strided_slice %338 {offsets = [1, 0], sizes = [1, 32], strides = [1, 1]} : vector<4x32xf32> to vector<1x32xf32>
    %574 = vector.extract_strided_slice %340 {offsets = [1, 0], sizes = [1, 32], strides = [1, 1]} : vector<4x32xf32> to vector<1x32xf32>
    %cst_258 = arith.constant dense<0.000000e+00> : vector<8xf32>
    %575 = vector.multi_reduction <add>, %572, %cst_258 [1] : vector<8x32xf32> to vector<8xf32>
    %576 = vector.shape_cast %575 : vector<8xf32> to vector<8x1xf32>
    %cst_259 = arith.constant 3.200000e+01 : f32
    %577 = vector.broadcast %cst_259 : f32 to vector<8x1xf32>
    %578 = arith.divf %576, %577 : vector<8x1xf32>
    %579 = vector.broadcast %578 : vector<8x1xf32> to vector<8x32xf32>
    %580 = arith.subf %572, %579 : vector<8x32xf32>
    %581 = arith.mulf %580, %580 : vector<8x32xf32>
    %cst_260 = arith.constant dense<0.000000e+00> : vector<8xf32>
    %582 = vector.multi_reduction <add>, %581, %cst_260 [1] : vector<8x32xf32> to vector<8xf32>
    %583 = vector.shape_cast %582 : vector<8xf32> to vector<8x1xf32>
    %cst_261 = arith.constant 3.200000e+01 : f32
    %584 = vector.broadcast %cst_261 : f32 to vector<8x1xf32>
    %585 = arith.divf %583, %584 : vector<8x1xf32>
    %cst_262 = arith.constant 9.99999974E-6 : f32
    %586 = vector.broadcast %cst_262 : f32 to vector<8x1xf32>
    %587 = arith.addf %585, %586 : vector<8x1xf32>
    %588 = math.rsqrt %587 : vector<8x1xf32>
    %589 = vector.broadcast %588 : vector<8x1xf32> to vector<8x32xf32>
    %590 = arith.mulf %580, %589 : vector<8x32xf32>
    %591 = vector.broadcast %573 : vector<1x32xf32> to vector<8x32xf32>
    %592 = arith.mulf %590, %591 : vector<8x32xf32>
    %593 = vector.broadcast %574 : vector<1x32xf32> to vector<8x32xf32>
    %594 = arith.addf %592, %593 : vector<8x32xf32>
    %c1_263 = arith.constant 1 : index
    %c0_264 = arith.constant 0 : index
    %c0_265 = arith.constant 0 : index
    %595 = vector.load %arg20[%c1_263, %c0_264, %c0_265] : memref<2x32x64xf32, #tpu.memory_space<vmem>>, vector<1x32x64xf32>
    %596 = vector.shape_cast %595 : vector<1x32x64xf32> to vector<32x64xf32>
    %cst_266 = arith.constant dense<0.000000e+00> : vector<8x64xf32>
    %597 = tpu.matmul %594, %596, %cst_266 {dimension_numbers = #tpu.dot_dimension_numbers<[1], [0], [0], [1], [0, 0, 1, 1], [], []>} : vector<8x32xf32>, vector<32x64xf32>, vector<8x64xf32> -> vector<8x64xf32>
    %c1_267 = arith.constant 1 : index
    %c0_268 = arith.constant 0 : index
    %c0_269 = arith.constant 0 : index
    %598 = vector.load %arg21[%c1_267, %c0_268, %c0_269] : memref<2x1x64xf32, #tpu.memory_space<vmem>>, vector<1x1x64xf32>
    %599 = vector.shape_cast %598 : vector<1x1x64xf32> to vector<1x64xf32>
    %600 = vector.broadcast %599 : vector<1x64xf32> to vector<8x64xf32>
    %601 = arith.addf %597, %600 : vector<8x64xf32>
    %cst_270 = arith.constant 0.000000e+00 : f32
    %602 = vector.broadcast %cst_270 : f32 to vector<8x64xf32>
    %603 = arith.maximumf %601, %602 : vector<8x64xf32>
    %c1_271 = arith.constant 1 : index
    %c0_272 = arith.constant 0 : index
    %c0_273 = arith.constant 0 : index
    %604 = vector.load %arg22[%c1_271, %c0_272, %c0_273] : memref<2x64x32xf32, #tpu.memory_space<vmem>>, vector<1x64x32xf32>
    %605 = vector.shape_cast %604 : vector<1x64x32xf32> to vector<64x32xf32>
    %cst_274 = arith.constant dense<0.000000e+00> : vector<8x32xf32>
    %606 = tpu.matmul %603, %605, %cst_274 {dimension_numbers = #tpu.dot_dimension_numbers<[1], [0], [0], [1], [0, 0, 1, 1], [], []>} : vector<8x64xf32>, vector<64x32xf32>, vector<8x32xf32> -> vector<8x32xf32>
    %c1_275 = arith.constant 1 : index
    %c0_276 = arith.constant 0 : index
    %c0_277 = arith.constant 0 : index
    %607 = vector.load %arg23[%c1_275, %c0_276, %c0_277] : memref<2x1x32xf32, #tpu.memory_space<vmem>>, vector<1x1x32xf32>
    %608 = vector.shape_cast %607 : vector<1x1x32xf32> to vector<1x32xf32>
    %609 = vector.broadcast %608 : vector<1x32xf32> to vector<8x32xf32>
    %610 = arith.addf %606, %609 : vector<8x32xf32>
    %611 = arith.addf %594, %610 : vector<8x32xf32>
    %612 = vector.extract_strided_slice %338 {offsets = [2, 0], sizes = [1, 32], strides = [1, 1]} : vector<4x32xf32> to vector<1x32xf32>
    %613 = vector.extract_strided_slice %340 {offsets = [2, 0], sizes = [1, 32], strides = [1, 1]} : vector<4x32xf32> to vector<1x32xf32>
    %cst_278 = arith.constant dense<0.000000e+00> : vector<8xf32>
    %614 = vector.multi_reduction <add>, %611, %cst_278 [1] : vector<8x32xf32> to vector<8xf32>
    %615 = vector.shape_cast %614 : vector<8xf32> to vector<8x1xf32>
    %cst_279 = arith.constant 3.200000e+01 : f32
    %616 = vector.broadcast %cst_279 : f32 to vector<8x1xf32>
    %617 = arith.divf %615, %616 : vector<8x1xf32>
    %618 = vector.broadcast %617 : vector<8x1xf32> to vector<8x32xf32>
    %619 = arith.subf %611, %618 : vector<8x32xf32>
    %620 = arith.mulf %619, %619 : vector<8x32xf32>
    %cst_280 = arith.constant dense<0.000000e+00> : vector<8xf32>
    %621 = vector.multi_reduction <add>, %620, %cst_280 [1] : vector<8x32xf32> to vector<8xf32>
    %622 = vector.shape_cast %621 : vector<8xf32> to vector<8x1xf32>
    %cst_281 = arith.constant 3.200000e+01 : f32
    %623 = vector.broadcast %cst_281 : f32 to vector<8x1xf32>
    %624 = arith.divf %622, %623 : vector<8x1xf32>
    %cst_282 = arith.constant 9.99999974E-6 : f32
    %625 = vector.broadcast %cst_282 : f32 to vector<8x1xf32>
    %626 = arith.addf %624, %625 : vector<8x1xf32>
    %627 = math.rsqrt %626 : vector<8x1xf32>
    %628 = vector.broadcast %627 : vector<8x1xf32> to vector<8x32xf32>
    %629 = arith.mulf %619, %628 : vector<8x32xf32>
    %630 = vector.broadcast %612 : vector<1x32xf32> to vector<8x32xf32>
    %631 = arith.mulf %629, %630 : vector<8x32xf32>
    %632 = vector.broadcast %613 : vector<1x32xf32> to vector<8x32xf32>
    %633 = arith.addf %631, %632 : vector<8x32xf32>
    %634 = vector.extract_strided_slice %338 {offsets = [3, 0], sizes = [1, 32], strides = [1, 1]} : vector<4x32xf32> to vector<1x32xf32>
    %635 = vector.extract_strided_slice %340 {offsets = [3, 0], sizes = [1, 32], strides = [1, 1]} : vector<4x32xf32> to vector<1x32xf32>
    %cst_283 = arith.constant dense<0.000000e+00> : vector<8xf32>
    %636 = vector.multi_reduction <add>, %633, %cst_283 [1] : vector<8x32xf32> to vector<8xf32>
    %637 = vector.shape_cast %636 : vector<8xf32> to vector<8x1xf32>
    %cst_284 = arith.constant 3.200000e+01 : f32
    %638 = vector.broadcast %cst_284 : f32 to vector<8x1xf32>
    %639 = arith.divf %637, %638 : vector<8x1xf32>
    %640 = vector.broadcast %639 : vector<8x1xf32> to vector<8x32xf32>
    %641 = arith.subf %633, %640 : vector<8x32xf32>
    %642 = arith.mulf %641, %641 : vector<8x32xf32>
    %cst_285 = arith.constant dense<0.000000e+00> : vector<8xf32>
    %643 = vector.multi_reduction <add>, %642, %cst_285 [1] : vector<8x32xf32> to vector<8xf32>
    %644 = vector.shape_cast %643 : vector<8xf32> to vector<8x1xf32>
    %cst_286 = arith.constant 3.200000e+01 : f32
    %645 = vector.broadcast %cst_286 : f32 to vector<8x1xf32>
    %646 = arith.divf %644, %645 : vector<8x1xf32>
    %cst_287 = arith.constant 9.99999974E-6 : f32
    %647 = vector.broadcast %cst_287 : f32 to vector<8x1xf32>
    %648 = arith.addf %646, %647 : vector<8x1xf32>
    %649 = math.rsqrt %648 : vector<8x1xf32>
    %650 = vector.broadcast %649 : vector<8x1xf32> to vector<8x32xf32>
    %651 = arith.mulf %641, %650 : vector<8x32xf32>
    %652 = vector.broadcast %634 : vector<1x32xf32> to vector<8x32xf32>
    %653 = arith.mulf %651, %652 : vector<8x32xf32>
    %654 = vector.broadcast %635 : vector<1x32xf32> to vector<8x32xf32>
    %655 = arith.addf %653, %654 : vector<8x32xf32>
    %c1_288 = arith.constant 1 : index
    %c0_289 = arith.constant 0 : index
    %c0_290 = arith.constant 0 : index
    %c0_291 = arith.constant 0 : index
    %656 = vector.load %arg26[%c1_288, %c0_289, %c0_290, %c0_291] : memref<2x1x8x32xf32, #tpu.memory_space<vmem>>, vector<1x1x8x32xf32>
    %657 = vector.shape_cast %656 : vector<1x1x8x32xf32> to vector<8x32xf32>
    %658 = vector.shape_cast %655 : vector<8x32xf32> to vector<1x1x8x32xf32>
    tpu.vector_store %arg26[%c1_288, %c0_289, %c0_290, %c0_291], %658 {strides = array<i32>} : memref<2x1x8x32xf32, #tpu.memory_space<vmem>>, vector<1x1x8x32xf32>,
    %c1_292 = arith.constant 1 : index
    %c0_293 = arith.constant 0 : index
    %c0_294 = arith.constant 0 : index
    %c0_295 = arith.constant 0 : index
    %659 = vector.load %arg27[%c1_292, %c0_293, %c0_294, %c0_295] : memref<2x1x8x16xf32, #tpu.memory_space<vmem>>, vector<1x1x8x16xf32>
    %660 = vector.shape_cast %659 : vector<1x1x8x16xf32> to vector<8x16xf32>
    %661 = vector.shape_cast %571 : vector<8x16xf32> to vector<1x1x8x16xf32>
    tpu.vector_store %arg27[%c1_292, %c0_293, %c0_294, %c0_295], %661 {strides = array<i32>} : memref<2x1x8x16xf32, #tpu.memory_space<vmem>>, vector<1x1x8x16xf32>,
    return
  }
  func.func @transform_0(%arg0: i32) -> (i32, i32, i32) {
    %c0_i32 = arith.constant 0 : i32
    %c0_i32_0 = arith.constant 0 : i32
    %c0_i32_1 = arith.constant 0 : i32
    return %arg0, %c0_i32, %c0_i32_0 : i32, i32, i32
  }
  func.func @transform_1(%arg0: i32) -> (i32, i32, i32) {
    %c0_i32 = arith.constant 0 : i32
    %c0_i32_0 = arith.constant 0 : i32
    %c0_i32_1 = arith.constant 0 : i32
    return %arg0, %c0_i32, %c0_i32_0 : i32, i32, i32
  }
  func.func @transform_2(%arg0: i32) -> (i32, i32, i32) {
    %c0_i32 = arith.constant 0 : i32
    %c0_i32_0 = arith.constant 0 : i32
    %c0_i32_1 = arith.constant 0 : i32
    return %arg0, %c0_i32, %c0_i32_0 : i32, i32, i32
  }
  func.func @transform_3(%arg0: i32) -> (i32, i32, i32) {
    %c0_i32 = arith.constant 0 : i32
    %c0_i32_0 = arith.constant 0 : i32
    %c0_i32_1 = arith.constant 0 : i32
    return %arg0, %c0_i32, %c0_i32_0 : i32, i32, i32
  }
  func.func @transform_4(%arg0: i32) -> (i32, i32, i32) {
    %c0_i32 = arith.constant 0 : i32
    %c0_i32_0 = arith.constant 0 : i32
    %c0_i32_1 = arith.constant 0 : i32
    return %arg0, %c0_i32, %c0_i32_0 : i32, i32, i32
  }
  func.func @transform_5(%arg0: i32) -> (i32, i32, i32) {
    %c0_i32 = arith.constant 0 : i32
    %c0_i32_0 = arith.constant 0 : i32
    %c0_i32_1 = arith.constant 0 : i32
    %c0_i32_2 = arith.constant 0 : i32
    return %c0_i32, %c0_i32_0, %c0_i32_1 : i32, i32, i32
  }
  func.func @transform_6(%arg0: i32) -> (i32, i32, i32) {
    %c0_i32 = arith.constant 0 : i32
    %c0_i32_0 = arith.constant 0 : i32
    %c0_i32_1 = arith.constant 0 : i32
    %c0_i32_2 = arith.constant 0 : i32
    return %c0_i32, %c0_i32_0, %c0_i32_1 : i32, i32, i32
  }
  func.func @transform_7(%arg0: i32) -> (i32, i32, i32) {
    %c0_i32 = arith.constant 0 : i32
    %c0_i32_0 = arith.constant 0 : i32
    %c0_i32_1 = arith.constant 0 : i32
    %c0_i32_2 = arith.constant 0 : i32
    return %c0_i32, %c0_i32_0, %c0_i32_1 : i32, i32, i32
  }
  func.func @transform_8(%arg0: i32) -> (i32, i32, i32) {
    %c0_i32 = arith.constant 0 : i32
    %c0_i32_0 = arith.constant 0 : i32
    %c0_i32_1 = arith.constant 0 : i32
    %c0_i32_2 = arith.constant 0 : i32
    return %c0_i32, %c0_i32_0, %c0_i32_1 : i32, i32, i32
  }
  func.func @transform_9(%arg0: i32) -> (i32, i32, i32) {
    %c0_i32 = arith.constant 0 : i32
    %c0_i32_0 = arith.constant 0 : i32
    %c0_i32_1 = arith.constant 0 : i32
    %c0_i32_2 = arith.constant 0 : i32
    return %c0_i32, %c0_i32_0, %c0_i32_1 : i32, i32, i32
  }
  func.func @transform_10(%arg0: i32) -> (i32, i32, i32) {
    %c0_i32 = arith.constant 0 : i32
    %c0_i32_0 = arith.constant 0 : i32
    %c0_i32_1 = arith.constant 0 : i32
    %c0_i32_2 = arith.constant 0 : i32
    return %c0_i32, %c0_i32_0, %c0_i32_1 : i32, i32, i32
  }
  func.func @transform_11(%arg0: i32) -> (i32, i32, i32) {
    %c0_i32 = arith.constant 0 : i32
    %c0_i32_0 = arith.constant 0 : i32
    %c0_i32_1 = arith.constant 0 : i32
    %c0_i32_2 = arith.constant 0 : i32
    return %c0_i32, %c0_i32_0, %c0_i32_1 : i32, i32, i32
  }
  func.func @transform_12(%arg0: i32) -> (i32, i32, i32) {
    %c0_i32 = arith.constant 0 : i32
    %c0_i32_0 = arith.constant 0 : i32
    %c0_i32_1 = arith.constant 0 : i32
    %c0_i32_2 = arith.constant 0 : i32
    return %c0_i32, %c0_i32_0, %c0_i32_1 : i32, i32, i32
  }
  func.func @transform_13(%arg0: i32) -> (i32, i32, i32) {
    %c0_i32 = arith.constant 0 : i32
    %c0_i32_0 = arith.constant 0 : i32
    %c0_i32_1 = arith.constant 0 : i32
    %c0_i32_2 = arith.constant 0 : i32
    return %c0_i32, %c0_i32_0, %c0_i32_1 : i32, i32, i32
  }
  func.func @transform_14(%arg0: i32) -> (i32, i32, i32) {
    %c0_i32 = arith.constant 0 : i32
    %c0_i32_0 = arith.constant 0 : i32
    %c0_i32_1 = arith.constant 0 : i32
    %c0_i32_2 = arith.constant 0 : i32
    return %c0_i32, %c0_i32_0, %c0_i32_1 : i32, i32, i32
  }
  func.func @transform_15(%arg0: i32) -> (i32, i32, i32) {
    %c0_i32 = arith.constant 0 : i32
    %c0_i32_0 = arith.constant 0 : i32
    %c0_i32_1 = arith.constant 0 : i32
    %c0_i32_2 = arith.constant 0 : i32
    return %c0_i32, %c0_i32_0, %c0_i32_1 : i32, i32, i32
  }
  func.func @transform_16(%arg0: i32) -> (i32, i32, i32) {
    %c0_i32 = arith.constant 0 : i32
    %c0_i32_0 = arith.constant 0 : i32
    %c0_i32_1 = arith.constant 0 : i32
    %c0_i32_2 = arith.constant 0 : i32
    return %c0_i32, %c0_i32_0, %c0_i32_1 : i32, i32, i32
  }
  func.func @transform_17(%arg0: i32) -> (i32, i32, i32) {
    %c0_i32 = arith.constant 0 : i32
    %c0_i32_0 = arith.constant 0 : i32
    %c0_i32_1 = arith.constant 0 : i32
    %c0_i32_2 = arith.constant 0 : i32
    return %c0_i32, %c0_i32_0, %c0_i32_1 : i32, i32, i32
  }
  func.func @transform_18(%arg0: i32) -> (i32, i32, i32) {
    %c0_i32 = arith.constant 0 : i32
    %c0_i32_0 = arith.constant 0 : i32
    %c0_i32_1 = arith.constant 0 : i32
    %c0_i32_2 = arith.constant 0 : i32
    return %c0_i32, %c0_i32_0, %c0_i32_1 : i32, i32, i32
  }
  func.func @transform_19(%arg0: i32) -> (i32, i32, i32) {
    %c0_i32 = arith.constant 0 : i32
    %c0_i32_0 = arith.constant 0 : i32
    %c0_i32_1 = arith.constant 0 : i32
    %c0_i32_2 = arith.constant 0 : i32
    return %c0_i32, %c0_i32_0, %c0_i32_1 : i32, i32, i32
  }
  func.func @transform_20(%arg0: i32) -> (i32, i32, i32) {
    %c0_i32 = arith.constant 0 : i32
    %c0_i32_0 = arith.constant 0 : i32
    %c0_i32_1 = arith.constant 0 : i32
    %c0_i32_2 = arith.constant 0 : i32
    return %c0_i32, %c0_i32_0, %c0_i32_1 : i32, i32, i32
  }
  func.func @transform_21(%arg0: i32) -> (i32, i32, i32) {
    %c0_i32 = arith.constant 0 : i32
    %c0_i32_0 = arith.constant 0 : i32
    %c0_i32_1 = arith.constant 0 : i32
    %c0_i32_2 = arith.constant 0 : i32
    return %c0_i32, %c0_i32_0, %c0_i32_1 : i32, i32, i32
  }
  func.func @transform_22(%arg0: i32) -> (i32, i32, i32) {
    %c0_i32 = arith.constant 0 : i32
    %c0_i32_0 = arith.constant 0 : i32
    %c0_i32_1 = arith.constant 0 : i32
    %c0_i32_2 = arith.constant 0 : i32
    return %c0_i32, %c0_i32_0, %c0_i32_1 : i32, i32, i32
  }
  func.func @transform_23(%arg0: i32) -> (i32, i32, i32) {
    %c0_i32 = arith.constant 0 : i32
    %c0_i32_0 = arith.constant 0 : i32
    %c0_i32_1 = arith.constant 0 : i32
    %c0_i32_2 = arith.constant 0 : i32
    return %c0_i32, %c0_i32_0, %c0_i32_1 : i32, i32, i32
  }
  func.func @transform_24(%arg0: i32) -> (i32, i32, i32) {
    %c0_i32 = arith.constant 0 : i32
    %c0_i32_0 = arith.constant 0 : i32
    %c0_i32_1 = arith.constant 0 : i32
    %c0_i32_2 = arith.constant 0 : i32
    return %c0_i32, %c0_i32_0, %c0_i32_1 : i32, i32, i32
  }
  func.func @transform_25(%arg0: i32) -> (i32, i32, i32, i32) {
    %c0_i32 = arith.constant 0 : i32
    %c0_i32_0 = arith.constant 0 : i32
    %c0_i32_1 = arith.constant 0 : i32
    %c0_i32_2 = arith.constant 0 : i32
    return %c0_i32, %arg0, %c0_i32_0, %c0_i32_1 : i32, i32, i32, i32
  }
  func.func @transform_26(%arg0: i32) -> (i32, i32, i32, i32) {
    %c0_i32 = arith.constant 0 : i32
    %c0_i32_0 = arith.constant 0 : i32
    %c0_i32_1 = arith.constant 0 : i32
    %c0_i32_2 = arith.constant 0 : i32
    return %c0_i32, %arg0, %c0_i32_0, %c0_i32_1 : i32, i32, i32, i32
  }
}

</mosaic_0001>

<bundles_post_ra>
// kernel: time_decoder_forward.1
= control target key start
LH: loop header
LB: loop body
LE: loop exit
PB: predicated region body
PF: predicated region fallthrough
CT: control target
= control target key end

     0   :  { %s5408_s0 = inlined_call_operand.vmem [shape: f32[2,8,32], index: 0, kind: input, shape index: {}]   ;;  %s5409_s1 = inlined_call_operand.vmem [shape: f32[2,8,32], index: 1, kind: input, shape index: {}]   ;;  %s5410_s2 = inlined_call_operand.vmem [shape: f32[2,8,32], index: 2, kind: input, shape index: {}]   ;;  %s5411_s3 = inlined_call_operand.vmem [shape: f32[2,16,32], index: 3, kind: input, shape index: {}]   ;;  %s5412_s4 = inlined_call_operand.vmem [shape: f32[2,16,32], index: 4, kind: input, shape index: {}]   ;;  %s5413_s5 = inlined_call_operand.vmem [shape: f32[2,32,64], index: 5, kind: input, shape index: {}]   ;;  %s5414_s6 = inlined_call_operand.vmem [shape: f32[2,1,64], index: 6, kind: input, shape index: {}]   ;;  %s5415_s7 = inlined_call_operand.vmem [shape: f32[2,32,32], index: 7, kind: input, shape index: {}]   ;;  %s5416_s8 = inlined_call_operand.vmem [shape: f32[2,1,32], index: 8, kind: input, shape index: {}]   ;;  %s5417_s9 = inlined_call_operand.vmem [shape: f32[2,32,32], index: 9, kind: input, shape index: {}]   ;;  %s5418_s10 = inlined_call_operand.vmem [shape: f32[2,1,32], index: 10, kind: input, shape index: {}]   ;;  %s5419_s11 = inlined_call_operand.vmem [shape: f32[2,32,32], index: 11, kind: input, shape index: {}]   ;;  %s5420_s12 = inlined_call_operand.hbm [shape: f32[2,1,32], index: 12, kind: input, shape index: {}]   ;;  %s5421_s13 = inlined_call_operand.hbm [shape: f32[2,32,32], index: 13, kind: input, shape index: {}]   ;;  %s5422_s14 = inlined_call_operand.hbm [shape: f32[2,1,32], index: 14, kind: input, shape index: {}]   ;;  %s5423_s15 = inlined_call_operand.hbm [shape: f32[2,32,32], index: 15, kind: input, shape index: {}]   ;;  %s5424_s16 = inlined_call_operand.hbm [shape: f32[2,1,32], index: 16, kind: input, shape index: {}]   ;;  %s5425_s17 = inlined_call_operand.hbm [shape: f32[2,32,32], index: 17, kind: input, shape index: {}]   ;;  %s5426_s18 = inlined_call_operand.hbm [shape: f32[2,1,32], index: 18, kind: input, shape index: {}]   ;;  %s5427_s19 = inlined_call_operand.hbm [shape: f32[2,32,64], index: 19, kind: input, shape index: {}]   ;;  %s5428_s20 = inlined_call_operand.hbm [shape: f32[2,1,64], index: 20, kind: input, shape index: {}]   ;;  %s5429_s21 = inlined_call_operand.vmem [shape: f32[2,64,32], index: 21, kind: input, shape index: {}]   ;;  %s5430_s22 = inlined_call_operand.hbm [shape: f32[2,1,32], index: 22, kind: input, shape index: {}]   ;;  %s5431_s23 = inlined_call_operand.vmem [shape: f32[2,4,32], index: 23, kind: input, shape index: {}]   ;;  %s5432_s24 = inlined_call_operand.hbm [shape: f32[2,4,32], index: 24, kind: input, shape index: {}]   ;;  %s5433_s25 = inlined_call_operand.hbm [shape: f32[2,2,8,32], index: 25, kind: output, shape index: {0}]   ;;  %s5434_s26 = inlined_call_operand.hbm [shape: f32[2,2,8,16], index: 26, kind: output, shape index: {1}]  }
   0x1   :  { %5468 = sst [smem:[#allocation38_spill]] %s5408_s0 }
   0x2   :  { %5469 = sst [smem:[#allocation39_spill]] %s5409_s1 }
   0x3   :  { %5470 = sst [smem:[#allocation40_spill]] %s5410_s2 }
   0x4   :  { %5471 = sst [smem:[#allocation41_spill]] %s5411_s3 }
   0x5   :  { %5472 = sst [smem:[#allocation42_spill]] %s5412_s4 }
   0x6   :  { %5473 = sst [smem:[#allocation43_spill]] %s5413_s5 }
   0x7   :  { %5474 = sst [smem:[#allocation44_spill]] %s5414_s6 }
   0x8   :  { %5475 = sst [smem:[#allocation45_spill]] %s5415_s7 }
   0x9   :  { %5476 = sst [smem:[#allocation46_spill]] %s5416_s8 }
   0xa   :  { %5477 = sst [smem:[#allocation47_spill]] %s5417_s9 }
   0xb   :  { %5478 = sst [smem:[#allocation48_spill]] %s5418_s10 }
   0xc   :  { %5479 = sst [smem:[#allocation49_spill]] %s5420_s12 }
   0xd   :  { %5480 = sst [smem:[#allocation50_spill]] %s5421_s13 }
   0xe   :  { %5481 = sst [smem:[#allocation51_spill]] %s5422_s14 }
   0xf   :  { %5482 = sst [smem:[#allocation52_spill]] %s5423_s15 }
  0x10   :  { %5483 = sst [smem:[#allocation53_spill]] %s5424_s16 }
  0x11   :  { %5484 = sst [smem:[#allocation54_spill]] %s5433_s25 }
  0x12   :  { %5485 = sst [smem:[#allocation55_spill]] %s5434_s26 }
  0x13   :  { %32 = vsyncpa [#allocation3], 0 }
  0x14   :  { %33 = vsyncpa [#allocation6], 0 }
  0x15   :  { %34 = vsyncpa [#allocation9], 0 }
  0x16   :  { %35 = vsyncpa [#allocation12], 0 }
  0x17   :  { %36 = vsyncpa [#allocation15], 0 }
  0x18   :  { %37 = vsyncpa [#allocation18], 0 }
  0x19   :  { %38 = vsyncpa [#allocation4], 0 }
  0x1a   :  { %40 = vsyncpa [#allocation4 + $0x1], 0 }
  0x1b   :  { %41 = vsyncpa [#allocation22], 0 }
  0x1c   :  { %43 = vsyncpa [#allocation22 + $0x1], 0  ;;  %s4658_s27 = smov 0   ;;  %s4660_s3 = smov 0  }
  0x1d   :  { %s4662_s7 = smov 0   ;;  %s4664_s28 = smov 0  }
  0x1e LB: > { %5486 = sst [smem:[#allocation31_spill]] %s4481_s27  ;;  %s4679_s8 = sadd.s32 4294967295, %s4493_s28   ;;  %s4493_s28 = sphi %s4664_s28, %s5529_s28   ;;  %s4489_s7 = sphi %s4662_s7, %s5531_s7   ;;  %s4485_s3 = sphi %s4660_s3, %s5533_s3   ;;  %s4481_s27 = sphi %s4658_s27, %s5532_s27  }
  0x1f   : > { %5487 = sst [smem:[#allocation32_spill]] %s4489_s7  ;;  %s3577_s4 = sadd.s32 4294967294, %s4493_s28  }
  0x20   : > { %5488 = sst [smem:[#allocation33_spill]] %s4493_s28  ;;  %s4683_s29 = sadd.s32 1, %s4493_s28  }
  0x21   : > { %5489 = sst [smem:[#allocation34_spill]] %s4683_s29  ;;  %s606_s0 = sadd.s32 1, %s4489_s7 }
  0x22   : > { %s603_s9 = ssub.s32 %s4493_s28, %s4683_s29  ;;  %p616_p0 = scmp.ne.s32.totalorder %s4489_s7, %s4485_s3 }
  0x23   : > { %p604_p1 = scmp.eq.s32.totalorder %s603_s9, 0  ;;  %p617_p2 = scmp.eq.s32.totalorder %s4679_s8, 1 }
  0x24   : > { %p622_p3 = scmp.ne.s32.totalorder %s4485_s3, %s4481_s27  ;;  %p623_p4 = scmp.eq.s32.totalorder %s3577_s4, 1 }
  0x25   : > { %s4694_s30 = scalar_select %p604_p1, %s4489_s7, %s606_s0  }
  0x26   : > { %p4696_p5 = por %p617_p2, %p616_p0  ;;  %p4700_p6 = por %p623_p4, %p622_p3 }
  0x27   : > { %5490 = sst [smem:[#allocation35_spill]] %s4694_s30  ;;  %p3578_p7 = scmp.ge.s32.totalorder %s4493_s28, 1 }
  0x28   : > { %s5491_s2 = scalar_select %p4696_p5, 1, 0 }
  0x29   : > { %s5493_s5 = scalar_select %p4700_p6, 1, 0 }
  0x2a   : > { %5492 = sst [smem:[#allocation36_spill]] %s5491_s2  ;;  %p656_p8 = scmp.lt.s32.totalorder %s4493_s28, 3 }
  0x2b   : > { %5494 = sst [smem:[#allocation37_spill]] %s5493_s5  ;;  %p3829_p9 = scmp.eq.s32.totalorder %s4679_s8, 0 }
  0x2c   : > { %p4707_p10 = pnand %p3578_p7, %p656_p8  ;;  %s5496_s13 = sld [smem:[#allocation50_spill]] }
  0x2d   : > { %s4495_s0 = smov [#allocation5]   ;;  %s5498_s15 = sld [smem:[#allocation52_spill]] }
  0x2e   : > { %p3788_p11 = pneg %p4707_p10  ;;  %s704_s9 = sshll.u32 %s4495_s0, 4  ;;  %s705_s9 = int_to_ptr.vmem [resolvable:$true] %s704_s9 }
  0x2f   : > { %s4496_s6 = smov 128   ;;  %s4497_s1 = smov 8  }
  0x30   : > { %p4718_p12 = pnand %p3829_p9, %p3788_p11  ;;  %s4498_s0 = smov [#allocation8]  }
  0x31   : > { %s758_s25 = sshll.u32 %s5425_s17, 4  ;;  %s4499_s2 = smov [#allocation11]   ;;  %s759_s25 = int_to_ptr.hbm [resolvable:$true] %s758_s25 }
  0x32   : > { %s702_s4 = sshll.u32 %s5496_s13, 4  ;;  %s732_s13 = sshll.u32 %s4498_s0, 4  ;;  %s703_s4 = int_to_ptr.hbm [resolvable:$true] %s702_s4  ;;  %s733_s13 = int_to_ptr.vmem [resolvable:$true] %s732_s13 }
  0x33   : > { %s730_s5 = sshll.u32 %s5498_s15, 4  ;;  %s786_s15 = sshll.u32 %s5427_s19, 4  ;;  %s731_s5 = int_to_ptr.hbm [resolvable:$true] %s730_s5  ;;  %s787_s15 = int_to_ptr.hbm [resolvable:$true] %s786_s15 }
  0x34   : > { %3794 = dma.hbm_to_vmem [thread:$0]  (!%p4718_p12), %s703_s4, 1024, %s705_s9, [#allocation6], %s4496_s6, %s4496_s6, %s4497_s1  }
  0x35   : > { %3800 = dma.hbm_to_vmem [thread:$0]  (!%p4718_p12), %s731_s5, 1024, %s733_s13, [#allocation9], %s4496_s6, %s4496_s6, %s4497_s1  }
  0x36   : > { %s760_s26 = sshll.u32 %s4499_s2, 4  ;;  %s4500_s4 = smov [#allocation14]   ;;  %s761_s26 = int_to_ptr.vmem [resolvable:$true] %s760_s26 }
  0x37   : > { %3806 = dma.hbm_to_vmem [thread:$0]  (!%p4718_p12), %s759_s25, 1024, %s761_s26, [#allocation12], %s4496_s6, %s4496_s6, %s4497_s1  }
  0x38   : > { %s788_s9 = sshll.u32 %s4500_s4, 4  ;;  %s817_s13 = sshll.u32 %s5430_s22, 4  ;;  %s789_s9 = int_to_ptr.vmem [resolvable:$true] %s788_s9  ;;  %s818_s13 = int_to_ptr.hbm [resolvable:$true] %s817_s13 }
  0x39   : > { %3812 = dma.hbm_to_vmem [thread:$0]  (!%p4718_p12), %s787_s15, 1024, %s789_s9, [#allocation15], %s4496_s6, %s4496_s6, %s4497_s1  }
  0x3a   : > { %s4501_s5 = smov [#allocation17]   ;;  %s5499_s12 = sld [smem:[#allocation49_spill]] }
  0x3b   : > { %s819_s0 = sshll.u32 %s4501_s5, 4  ;;  %s4502_s25 = smov 16   ;;  %s820_s0 = int_to_ptr.vmem [resolvable:$true] %s819_s0 }
  0x3c   : > { %s4503_s26 = smov 1   ;;  %s4504_s15 = smov [#allocation2]  }
  0x3d   : > { %3818 = dma.hbm_to_vmem [thread:$0]  (!%p4718_p12), %s818_s13, 32, %s820_s0, [#allocation18], %s4502_s25, %s4502_s25, %s4503_s26  }
  0x3e   : > { %s690_s6 = sshll.u32 %s4504_s15, 4  ;;  %s5500_s14 = sld [smem:[#allocation51_spill]]  ;;  %s691_s6 = int_to_ptr.vmem [resolvable:$true] %s690_s6 }
  0x3f   : > { %s5501_s16 = sld [smem:[#allocation53_spill]]  ;;  %s4505_s13 = smov [#allocation7]  }
  0x40   : > { %s688_s29 = sshll.u32 %s5499_s12, 4  ;;  %s718_s0 = sshll.u32 %s4505_s13, 4  ;;  %s689_s29 = int_to_ptr.hbm [resolvable:$true] %s688_s29  ;;  %s719_s0 = int_to_ptr.vmem [resolvable:$true] %s718_s0 }
  0x41   : > { %3791 = dma.hbm_to_vmem [thread:$0]  (!%p4718_p12), %s689_s29, 32, %s691_s6, [#allocation3], %s4502_s25, %s4502_s25, %s4503_s26  }
  0x42   : > { %s4506_s2 = smov [#allocation10]   ;;  %s772_s29 = sshll.u32 %s5426_s18, 4  ;;  %s773_s29 = int_to_ptr.hbm [resolvable:$true] %s772_s29 }
  0x43   : > { %s746_s7 = sshll.u32 %s4506_s2, 4  ;;  %s800_s27 = sshll.u32 %s5428_s20, 4  ;;  %s747_s7 = int_to_ptr.vmem [resolvable:$true] %s746_s7  ;;  %s801_s27 = int_to_ptr.hbm [resolvable:$true] %s800_s27 }
  0x44   : > { %s716_s9 = sshll.u32 %s5500_s14, 4  ;;  %s4507_s28 = smov [#allocation13]   ;;  %s717_s9 = int_to_ptr.hbm [resolvable:$true] %s716_s9 }
  0x45   : > { %s744_s5 = sshll.u32 %s5501_s16, 4  ;;  %s4508_s13 = smov [#allocation16]   ;;  %s745_s5 = int_to_ptr.hbm [resolvable:$true] %s744_s5 }
  0x46   : > { %3797 = dma.hbm_to_vmem [thread:$0]  (!%p4718_p12), %s717_s9, 32, %s719_s0, [#allocation6], %s4502_s25, %s4502_s25, %s4503_s26  }
  0x47   : > { %3803 = dma.hbm_to_vmem [thread:$0]  (!%p4718_p12), %s745_s5, 32, %s747_s7, [#allocation9], %s4502_s25, %s4502_s25, %s4503_s26  }
  0x48   : > { %s774_s9 = sshll.u32 %s4507_s28, 4  ;;  %s802_s0 = sshll.u32 %s4508_s13, 4  ;;  %s775_s9 = int_to_ptr.vmem [resolvable:$true] %s774_s9  ;;  %s803_s0 = int_to_ptr.vmem [resolvable:$true] %s802_s0 }
  0x49   : > { %3809 = dma.hbm_to_vmem [thread:$0]  (!%p4718_p12), %s773_s29, 32, %s775_s9, [#allocation12], %s4502_s25, %s4502_s25, %s4503_s26  }
  0x4a   : > { %s834_s5 = sshll.u32 %s5432_s24, 4  ;;  %s4509_s7 = smov [#allocation19]   ;;  %s835_s5 = int_to_ptr.hbm [resolvable:$true] %s834_s5 }
  0x4b   : > { %3815 = dma.hbm_to_vmem [thread:$0]  (!%p4718_p12), %s801_s27, 32, %s803_s0, [#allocation15], %s4502_s25, %s4502_s25, %s4503_s26  }
  0x4c   : > { %s836_s1 = sshll.u32 %s4509_s7, 4  ;;  %s4510_s6 = smov 64   ;;  %s837_s1 = int_to_ptr.vmem [resolvable:$true] %s836_s1 }
  0x4d   : > { %s4511_s4 = smov 4   ;;  %889 = sbr.rel (%p4707_p10) target bundleno = 8780 (0x224c), region = 120 }
  0x4e   : > { %3821 = dma.hbm_to_vmem [thread:$0]  (!%p4718_p12), %s835_s5, 128, %s837_s1, [#allocation18], %s4510_s6, %s4510_s6, %s4511_s4  }
  0x52   : > { %4448 = dma.done.wait (%p3829_p9), [#allocation3], 32  }
  0x53   : > { %4450 = vsyncadd (%p3829_p9), [#allocation3], 4294967264 }
  0x54   : > { %4452 = dma.done.wait (%p3829_p9), [#allocation6], 1056  }
  0x55   : > { %4454 = vsyncadd (%p3829_p9), [#allocation6], 4294966240 }
  0x56   : > { %4456 = dma.done.wait (%p3829_p9), [#allocation9], 1056  }
  0x57   : > { %4458 = vsyncadd (%p3829_p9), [#allocation9], 4294966240 }
  0x58   : > { %4460 = dma.done.wait (%p3829_p9), [#allocation12], 1056  }
  0x59   : > { %4462 = vsyncadd (%p3829_p9), [#allocation12], 4294966240 }
  0x5a   : > { %4464 = dma.done.wait (%p3829_p9), [#allocation15], 1056  }
  0x5b   : > { %4466 = vsyncadd (%p3829_p9), [#allocation15], 4294966240 }
  0x5c   : > { %4468 = dma.done.wait (%p3829_p9), [#allocation18], 160  }
  0x5d   : > { %4470 = vsyncadd (%p3829_p9), [#allocation18], 4294967136  ;;  %p1032_p13 = scmp.lt.s32.totalorder %s4679_s8, 1  ;;  %s5502_s29 = sld [smem:[#allocation39_spill]]  ;;  %vm1075_vm0 = vcmask 261120   ;;  %vm1143_vm1 = vcmask 64512  }
  0x5e   : > { %s5503_s13 = sld [smem:[#allocation38_spill]]  ;;  %s5453_s9 = smov 96   ;;  %vm1674_vm6 = vcmask 130048   ;;  %vm2099_vm10 = vcmask 523264  }
  0x5f   : > { %s4820_s30 = scalar_select %p1032_p13, %s4679_s8, 1 }
  0x60   : > { %s5504_s5 = sld [smem:[#allocation40_spill]]  ;;  %s5455_s28 = smov 112  }
  0x61   : > { %s3605_s10 = sshll.u32 %s4820_s30, 3  ;;  %s5505_s4 = sld [smem:[#allocation43_spill]] }
  0x62   : > { %s5508_s2 = sld [smem:[#allocation46_spill]]  ;;  %s5458_s15 = smov 104  }
  0x63   : > { %s4826_s27 = scalar_lea.vmem %s5502_s29, %s3605_s10  ;;  %s5451_s1 = smov 72  }
  0x64   : > { %s1035_s0 = scalar_lea.vmem %s5503_s13, %s3605_s10  ;;  %v4844_v3 = vld [vmem:[%s4826_s27] sm:$0xff]  ;;  %s5460_s13 = smov 120  }
  0x65   : > { %v4849_v5 = vld [vmem:[%s1035_s0] sm:$0xff]  ;;  %s5454_s0 = smov 88   ;;  %s5509_s26 = sld [smem:[#allocation47_spill]] }
  0x66   : > { %s1043_s7 = scalar_lea.vmem %s5504_s5, %s3605_s10  ;;  %s5506_s10 = sld [smem:[#allocation44_spill]] }
  0x67   : > { %v1070_v0 = vld [vmem:[%s5505_s4 + $0x18] sm:$0xff]  ;;  %v1069_v1 = vld [vmem:[%s5505_s4 + $0x10] sm:$0xff]  ;;  %v1068_v2 = vld [vmem:[%s5505_s4 + $0x8] sm:$0xff]  ;;  %s5507_s5 = sld [smem:[#allocation45_spill]]  ;;  %s3738_s29 = sshll.u32 %s4820_s30, 4 }
  0x68   : > { %1091 = vmatpush.msra.mxu1 %v1070_v0  ;;  %v1067_v4 = vld [vmem:[%s5505_s4] sm:$0xff]  ;;  %s5510_s25 = sld [smem:[#allocation48_spill]]  ;;  %s5513_s30 = smov 112  }
  0x69   : > { %v1056_v6 = vld [vmem:[%s1043_s7] sm:$0xff]  ;;  %s5452_s7 = smov 80   ;;  %s5511_s6 = sld [smem:[#allocation41_spill]] }
  0x6a   : > { %1092 = vmatpush.msra.mxu1 %v1069_v1  ;;  %v4852_v7 = vadd.f32 %v1056_v6, %v4844_v3  ;;  %v3943_v24 = vld [vmem:[%s5508_s2] ss:$0 sm:$0xff]  ;;  %s5519_s12 = smov 72  }
  0x6b   : > { %v1130_v37 = vld [vmem:[%s5509_s26] sm:$0xff]  ;;  %v1131_v38 = vld [vmem:[%s5509_s26 + $0x8] sm:$0xff] }
  0x6c   : > { %1093 = vmatpush.msra.mxu1 %v1068_v2  ;;  %v1066_v8 = vadd.f32 %v4852_v7, %v4849_v5  ;;  %v3942_v9 = vld [vmem:[%s5506_s10] ss:$0 sm:$0xff] }
  0x6d   : > { %v1102_v16 = vld [vmem:[%s5507_s5 + $0x18] sm:$0xff]  ;;  %v1101_v17 = vld [vmem:[%s5507_s5 + $0x10] sm:$0xff]  ;;  %v1100_v18 = vld [vmem:[%s5507_s5 + $0x8] sm:$0xff] }
  0x6e   : > { %1094 = vmatpush.msra.mxu1 %v1067_v4  ;;  %v1099_v19 = vld [vmem:[%s5507_s5] sm:$0xff] }
  0x6f   : > { %3612 = vmatmul.msk.f32.vlgmr.msra.gmra.mxu1 %vm1075_vm0, %v1066_v8  ;;  %v3944_v54 = vld [vmem:[%s5510_s25] ss:$0 sm:$0xff] }
  0x70   : > { %1122 = vmatpush.msrb.mxu1 %v1102_v16 }
  0x72   : > { %1123 = vmatpush.msrb.mxu1 %v1101_v17 }
  0x74   : > { %1124 = vmatpush.msrb.mxu1 %v1100_v18  ;;  %v1133_v18 = vld [vmem:[%s5509_s26 + $0x18] sm:$0xff] }
  0x76   : > { %1125 = vmatpush.msrb.mxu1 %v1099_v19  ;;  %v1132_v19 = vld [vmem:[%s5509_s26 + $0x10] sm:$0xff] }
  0x77   : > { %3613 = vmatmul.msk.f32.vlgmr.msrb.gmra.mxu1 %vm1075_vm0, %v4849_v5 }
  0x78   : > { %1311 = vmatpush.msra.mxu1 %v1131_v38 }
  0xec   : > { %v1096_v10 = vpop.f32.mrf.mxu1 }
  0xed   : > { %v1097_v11 = vadd.f32 %v3942_v9, %v1096_v10 }
  0xef   : > { %1141 = vrot.lane.b32.xlu0 %v1097_v11, %s5453_s9  ;;  %v1135_v12 = vmul.f32 0.35355338, %v1097_v11  ;;  %s5043_s9 = sand.u32 1, %s4485_s3  }
  0xf1   : > { %1227 = vrot.lane.b32.xlu1 %v1135_v12, %s5460_s13 }
  0xf4   : > { %v1127_v25 = vpop.f32.mrf.mxu1 }
  0xf5   : > { %v4887_v26 = vadd.f32 %v3943_v24, %v1127_v25 }
  0xf7   : > { %1229 = vrot.lane.b32.xlu0 %v1097_v11, %s5454_s0  ;;  %1198 = vmatpush.msra.mxu3 %v4887_v26  ;;  %s5512_s0 = sld [smem:[#allocation42_spill]] }
  0xf9   : > { %1221 = vmatpush.msrb.mxu3 %v1130_v37 }
 0x161   : > { %v1142_v13 = vpop.permute.xlu0 %1141 }
 0x162   : > { %3614 = vmatpush.xpose.msk.msra.mxu2 %vm1143_vm1, %v1142_v13 }
 0x163   : > { %v1228_v15 = vpop.permute.xlu1 %1227 }
 0x165   : > { %3615 = vmatmul.msk.f32.vlgmr.msra.gmra.mxu2 %vm1143_vm1, %v1135_v12 }
 0x169   : > { %v1230_v14 = vpop.permute.xlu0 %1229 }
 0x16a   : > { %3618 = vmatpush.xpose.msk.msrb.mxu2 %vm1143_vm1, %v1230_v14 }
 0x16d   : > { %3619 = vmatmul.msk.f32.vlgmr.msrb.gmra.mxu2 %vm1143_vm1, %v1228_v15 }
 0x1e8   : > { %v1166_v20 = vpop.f32.mrf.mxu2 }
 0x1e9   : > { %v1169_v21 = vsel %vm1143_vm1, %v1166_v20, -inf }
 0x1ea   : > { %1170 = vmax.xlane.f32.xlu1 %v1169_v21 }
 0x1f0   : > { %v1252_v22 = vpop.f32.mrf.mxu2 }
 0x1f1   : > { %v1255_v23 = vsel %vm1143_vm1, %v1252_v22, -inf }
 0x1f2   : > { %1256 = vmax.xlane.f32.xlu2 %v1255_v23 }
 0x203   : > { %1317 = vrot.lane.b32.xlu1 %v1135_v12, %s5455_s28 }
 0x20b   : > { %1445 = vrot.lane.b32.xlu1 %v4887_v26, %s5458_s15 }
 0x25d   : > { %v1171_v27 = vpop.xlane.xlu1 %1170 }
 0x25e   : > { %v1172_v28 = vsub.f32 %v1166_v20, %v1171_v27 }
 0x260   : > { %v1173_v29 = vmul.f32 1.442695, %v1172_v28  ;;  %v4519_v28 = vmov 32.0  }
 0x262   : > { %3960 = vpow2.f32 %v1173_v29  ;;  %v1564_v29 = vld [vmem:[#allocation5 + $0x18] sm:$0xff] }
 0x265   : > { %v1257_v30 = vpop.xlane.xlu2 %1256 }
 0x266   : > { %v1258_v31 = vsub.f32 %v1252_v22, %v1257_v30 }
 0x268   : > { %v3961_v32 = vpop.eup %3960  ;;  %v1259_v33 = vmul.f32 1.442695, %v1258_v31 }
 0x269   : > { %v1175_v34 = vsel %vm1143_vm1, %v3961_v32, 0.0 }
 0x26a   : > { %3962 = vpow2.f32 %v1259_v33  ;;  %1176 = vadd.xlane.f32.xlu2 %v1175_v34 }
 0x270   : > { %v3963_v35 = vpop.eup %3962 }
 0x271   : > { %v1261_v36 = vsel %vm1143_vm1, %v3963_v35, 0.0 }
 0x272   : > { %1262 = vadd.xlane.f32.xlu0 %v1261_v36 }
 0x275   : > { %v1318_v48 = vpop.permute.xlu1 %1317 }
 0x27d   : > { %v1446_v50 = vpop.permute.xlu1 %1445 }
 0x282   : > { %1267 = vrot.lane.b32.xlu2 %v4887_v26, %s5460_s13 }
 0x28a   : > { %1319 = vrot.lane.b32.xlu2 %v1097_v11, %s5452_s7  ;;  %s5514_s7 = smov 88  }
 0x292   : > { %1408 = vrot.lane.b32.xlu2 %v1097_v11, %s5451_s1  ;;  %s1048_s1 = scalar_lea.vmem %s5511_s6, %s3738_s29 }
 0x29a   : > { %1406 = vrot.lane.b32.xlu2 %v1135_v12, %s5458_s15 }
 0x2dd   : > { %v1177_v39 = vpop.xlane.xlu2 %1176 }
 0x2de   : > { %3964 = vrcp.f32 %v1177_v39 }
 0x2e4   : > { %v3965_v40 = vpop.eup %3964 }
 0x2e5   : > { %v1263_v41 = vpop.xlane.xlu0 %1262  ;;  %v1268_v42 = vpop.permute.xlu2 %1267  ;;  %v1179_v43 = vmul.f32 %v3965_v40, %v3961_v32  ;;  %v1563_v40 = vld [vmem:[#allocation5 + $0x10] sm:$0xff] }
 0x2e6   : > { %3966 = vrcp.f32 %v1263_v41  ;;  %1288 = vmatpush.msra.mxu0 %v1268_v42  ;;  %v1562_v41 = vld [vmem:[#allocation5 + $0x8] sm:$0xff]  ;;  %v4945_v42 = vld [vmem:[%s1048_s1] sm:$0xff] }
 0x2e7   : > { %3616 = vmatmul.msk.f32.vlgmr.msra.gmra.mxu3 %vm1143_vm1, %v1179_v43 }
 0x2e8   : > { %1400 = vmatpush.msrb.mxu0 %v1132_v19 }
 0x2ec   : > { %v3967_v44 = vpop.eup %3966 }
 0x2ed   : > { %v1320_v45 = vpop.permute.xlu2 %1319  ;;  %v1265_v46 = vmul.f32 %v3967_v44, %v3963_v35  ;;  %v1561_v44 = vld [vmem:[#allocation5] sm:$0xff] }
 0x2ee   : > { %3622 = vmatpush.xpose.msk.msra.mxu3 %vm1143_vm1, %v1320_v45 }
 0x2ef   : > { %3620 = vmatmul.msk.f32.vlgmr.msra.gmra.mxu0 %vm1143_vm1, %v1265_v46  ;;  %v4952_v46 = vld [vmem:[%s1048_s1 + $0x8] sm:$0xff]  ;;  %s5515_s1 = smov 96  }
 0x2f5   : > { %v1409_v47 = vpop.permute.xlu2 %1408 }
 0x2f6   : > { %3626 = vmatpush.xpose.msk.msrb.mxu1 %vm1143_vm1, %v1409_v47 }
 0x2fd   : > { %v1407_v52 = vpop.permute.xlu2 %1406 }
 0x36a   : > { %v1200_v49 = vpop.f32.mrf.mxu3 }
 0x36b   : > { %3617 = vmatmul.msk.f32.vlgmr.msrb.gmra.mxu3 %vm1143_vm1, %v1200_v49  ;;  %v1601_v49 = vld [vmem:[#allocation8 + $0x18] sm:$0xff] }
 0x36c   : > { %1466 = vmatpush.msrb.mxu3 %v1446_v50  ;;  %v1290_v51 = vpop.f32.mrf.mxu0  ;;  %v1600_v50 = vld [vmem:[#allocation8 + $0x10] sm:$0xff] }
 0x36d   : > { %3621 = vmatmul.msk.f32.vlgmr.msra.gmra.mxu1 %vm1143_vm1, %v1290_v51  ;;  %v1599_v51 = vld [vmem:[#allocation8 + $0x8] sm:$0xff] }
 0x36e   : > { %1587 = vmatpush.msra.mxu1 %v1564_v29  ;;  %v1635_v29 = vld [vmem:[#allocation11] sm:$0xff] }
 0x370   : > { %1588 = vmatpush.msra.mxu1 %v1563_v40 }
 0x372   : > { %1589 = vmatpush.msra.mxu1 %v1562_v41 }
 0x373   : > { %3623 = vmatmul.msk.f32.vlgmr.msra.gmra.mxu3 %vm1143_vm1, %v1318_v48 }
 0x374   : > { %1590 = vmatpush.msra.mxu1 %v1561_v44  ;;  %1624 = vmatpush.msra.mxu3 %v1601_v49 }
 0x375   : > { %3627 = vmatmul.msk.f32.vlgmr.msrb.gmra.mxu1 %vm1143_vm1, %v1407_v52  ;;  %v1533_v52 = vld [vmem:[%s5419_s11 + $0x18] sm:$0xff] }
 0x376   : > { %1625 = vmatpush.msra.mxu3 %v1600_v50  ;;  %1553 = vmatpush.msra.mxu0 %v1533_v52 }
 0x378   : > { %1626 = vmatpush.msra.mxu3 %v1599_v51 }
 0x3ea   : > { %v1313_v53 = vpop.f32.mrf.mxu1 }
 0x3ee   : > { %v1223_v55 = vpop.f32.mrf.mxu3 }
 0x3ef   : > { %v1226_v56 = vadd.f32 %v3944_v54, %v1223_v55  ;;  %v1532_v54 = vld [vmem:[%s5419_s11 + $0x10] sm:$0xff]  ;;  %v1531_v55 = vld [vmem:[%s5419_s11 + $0x8] sm:$0xff] }
 0x3f0   : > { %1554 = vmatpush.msra.mxu0 %v1532_v54 }
 0x3f1   : > { %v1316_v57 = vadd.f32 %v1313_v53, %v1226_v56  ;;  %v1598_v53 = vld [vmem:[#allocation8] sm:$0xff] }
 0x3f2   : > { %v1431_v58 = vpop.f32.mrf.mxu1  ;;  %1627 = vmatpush.msra.mxu3 %v1598_v53  ;;  %v1530_v56 = vld [vmem:[%s5419_s11] sm:$0xff]  ;;  %1555 = vmatpush.msra.mxu0 %v1531_v55 }
 0x3f3   : > { %v1434_v59 = vsel %vm1143_vm1, %v1431_v58, -inf }
 0x3f4   : > { %1435 = vmax.xlane.f32.xlu0 %v1434_v59  ;;  %1556 = vmatpush.msra.mxu0 %v1530_v56 }
 0x3f6   : > { %v1342_v60 = vpop.f32.mrf.mxu3 }
 0x3f7   : > { %v1345_v61 = vsel %vm1143_vm1, %v1342_v60, -inf }
 0x3f8   : > { %1346 = vmax.xlane.f32.xlu2 %v1345_v61 }
 0x467   : > { %v1436_v62 = vpop.xlane.xlu0 %1435 }
 0x468   : > { %v1437_v63 = vsub.f32 %v1431_v58, %v1436_v62 }
 0x46a   : > { %v1438_v0 = vmul.f32 1.442695, %v1437_v63 }
 0x46b   : > { %v1347_v1 = vpop.xlane.xlu2 %1346 }
 0x46c   : > { %3968 = vpow2.f32 %v1438_v0  ;;  %v1348_v2 = vsub.f32 %v1342_v60, %v1347_v1  ;;  %v4979_v0 = vld [vmem:[%s5431_s23] sm:$0xf] }
 0x46e   : > { %v1349_v4 = vmul.f32 1.442695, %v1348_v2  ;;  %v4981_v2 = vld [vmem:[#allocation19] sm:$0xf] }
 0x470   : > { %3970 = vpow2.f32 %v1349_v4 }
 0x472   : > { %v3969_v6 = vpop.eup %3968 }
 0x473   : > { %v1440_v8 = vsel %vm1143_vm1, %v3969_v6, 0.0 }
 0x474   : > { %1441 = vadd.xlane.f32.xlu0 %v1440_v8 }
 0x476   : > { %v3971_v9 = vpop.eup %3970 }
 0x477   : > { %v1351_v10 = vsel %vm1143_vm1, %v3971_v9, 0.0 }
 0x47c   : > { %1352 = vadd.xlane.f32.xlu0 %v1351_v10 }
 0x490   : > { %1356 = vrot.lane.b32.xlu0 %v4887_v26, %s5455_s28  ;;  %s1053_s28 = scalar_lea.vmem %s5512_s0, %s3738_s29  ;;  %s5457_s0 = sshll.u32 %s5043_s9, 4 }
 0x491   : > { %v1060_v43 = vld [vmem:[%s1053_s28] sm:$0xff]  ;;  %v1061_v47 = vld [vmem:[%s1053_s28 + $0x8] sm:$0xff]  ;;  %s5049_s28 = scalar_lea.vmem [#allocation21], %s5457_s0  ;;  %s5517_s0 = smov 80  }
 0x492   : > { %v4948_v45 = vadd.f32 %v1060_v43, %v4945_v42  ;;  %v4955_v48 = vadd.f32 %v1061_v47, %v4952_v46  ;;  %s5518_s29 = smov 104  }
 0x494   : > { %3631 = vmatmul.msk.f32.vlgmr.msra.gmra.mxu1 %vm1075_vm0, %v4948_v45 }
 0x49c   : > { %3632 = vmatmul.msk.f32.gmra.mxu1 %vm1075_vm0, %v4955_v48 }
 0x4e7   : > { %v1442_v11 = vpop.xlane.xlu0 %1441 }
 0x4e8   : > { %3972 = vrcp.f32 %v1442_v11 }
 0x4ee   : > { %v3973_v12 = vpop.eup %3972 }
 0x4ef   : > { %v1444_v13 = vmul.f32 %v3973_v12, %v3969_v6  ;;  %v1353_v14 = vpop.xlane.xlu0 %1352  ;;  %v1525_v6 = vperm.slane %v4979_v0, 0 }
 0x4f0   : > { %3974 = vrcp.f32 %v1353_v14  ;;  %v3945_v14 = vld [vmem:[#allocation7] ss:$0 sm:$0xff] }
 0x4f1   : > { %3628 = vmatmul.msk.f32.vlgmr.msrb.gmra.mxu3 %vm1143_vm1, %v1444_v13  ;;  %3976 = vrcp.f32 %v4519_v28  ;;  %v1636_v28 = vld [vmem:[#allocation11 + $0x8] sm:$0xff] }
 0x4f2   : > { %1827 = vmatpush.msrb.mxu3 %v1636_v28 }
 0x4f6   : > { %v3975_v15 = vpop.eup %3974 }
 0x4f7   : > { %v1355_v16 = vmul.f32 %v3975_v15, %v3971_v9  ;;  %v3977_v30 = vpop.eup %3976  ;;  %v1527_v9 = vperm.slane %v4981_v2, 0 }
 0x4f8   : > { %v1500_v31 = vmul.f32 32.0, %v3977_v30  ;;  %vm1504_vm2 = vweird.f32 %v3977_v30 }
 0x4f9   : > { %3633 = vmatmul.msk.f32.vlgmr.msra.gmra.mxu3 %vm1075_vm0, %v4945_v42 }
 0x4fa   : > { %v1501_v32 = vsub.f32 1.0, %v1500_v31 }
 0x4fc   : > { %v1502_v33 = vmul.f32 %v3977_v30, %v1501_v32 }
 0x4fe   : > { %v1503_v34 = vadd.f32 %v3977_v30, %v1502_v33 }
 0x500   : > { %v4934_v35 = vsel %vm1504_vm2, %v3977_v30, %v1503_v34 }
 0x501   : > { %3634 = vmatmul.msk.f32.gmra.mxu3 %vm1075_vm0, %v4952_v46 }
 0x502   : > { %v1357_v17 = vpop.permute.xlu0 %1356 }
 0x503   : > { %1377 = vmatpush.msra.mxu2 %v1357_v17 }
 0x504   : > { %3624 = vmatmul.msk.f32.vlgmr.msra.gmra.mxu2 %vm1143_vm1, %v1355_v16 }
 0x505   : > { %1489 = vmatpush.msrb.mxu2 %v1133_v18 }
 0x511   : > { %v1592_v15 = vpop.f32.mrf.mxu1 }
 0x512   : > { %v4990_v16 = vadd.f32 %v3945_v14, %v1592_v15 }
 0x519   : > { %v1595_v17 = vpop.f32.mrf.mxu1 }
 0x51a   : > { %v1596_v18 = vadd.f32 %v3945_v14, %v1595_v17 }
 0x51c   : > { %3635 = vmatpush.xpose.msk.msra.mxu2 %vm1143_vm1, %v1596_v18 }
 0x520   : > { %3636 = vmatpush.xpose.msk.msra.mxu2 %vm1143_vm1, %v4990_v16 }
 0x574   : > { %v1468_v20 = vpop.f32.mrf.mxu3 }
 0x575   : > { %3629 = vmatmul.msk.f32.vlgmr.msrb.gmra.mxu2 %vm1143_vm1, %v1468_v20  ;;  %v3947_v20 = vld [vmem:[#allocation10] ss:$0 sm:$0xff] }
 0x576   : > { %1728 = vmatpush.msrb.mxu2 %v1635_v29 }
 0x57c   : > { %v1629_v19 = vpop.f32.mrf.mxu3 }
 0x587   : > { %v1379_v21 = vpop.f32.mrf.mxu2 }
 0x588   : > { %3625 = vmatmul.msk.f32.vlgmr.msrb.gmra.mxu0 %vm1143_vm1, %v1379_v21  ;;  %v1632_v21 = vpop.f32.mrf.mxu3 }
 0x5f8   : > { %v1491_v24 = vpop.f32.mrf.mxu2 }
 0x605   : > { %v1402_v22 = vpop.f32.mrf.mxu0 }
 0x606   : > { %v1405_v23 = vadd.f32 %v1402_v22, %v1316_v57  ;;  %v1630_v22 = vadd.f32 %v3947_v20, %v1629_v19 }
 0x608   : > { %v1494_v25 = vadd.f32 %v1491_v24, %v1405_v23  ;;  %v3946_v23 = vld [vmem:[#allocation2] ss:$0 sm:$0xff] }
 0x60a   : > { %v1495_v26 = vadd.f32 %v1494_v25, %v4849_v5 }
 0x60c   : > { %v1496_v27 = vsel %vm1075_vm0, %v1495_v26, 0.0 }
 0x60d   : > { %1497 = vadd.xlane.f32.xlu1 %v1496_v27 }
 0x626   : > { %1736 = vrot.lane.b32.xlu1 %v4990_v16, %s5460_s13 }
 0x680   : > { %v1498_v36 = vpop.xlane.xlu1 %1497 }
 0x681   : > { %v1506_v37 = vmul.f32 %v4934_v35, %v1498_v36 }
 0x683   : > { %v1507_v5 = vsub.f32 %v1495_v26, %v1506_v37 }
 0x685   : > { %v1508_v38 = vmul.f32 %v1507_v5, %v1507_v5 }
 0x687   : > { %v1509_v39 = vsel %vm1075_vm0, %v1508_v38, 0.0 }
 0x688   : > { %1510 = vadd.xlane.f32.xlu0 %v1509_v39 }
 0x698   : > { %v1737_v51 = vpop.permute.xlu1 %1736 }
 0x6fb   : > { %v1511_v57 = vpop.xlane.xlu0 %1510 }
 0x6fc   : > { %v1512_v58 = vmul.f32 %v1511_v57, %v4934_v35 }
 0x6fe   : > { %v1513_v59 = vadd.f32 1e-05, %v1512_v58 }
 0x700   : > { %3978 = vrsqrt.f32 %v1513_v59  ;;  %vm1520_vm4 = vweird.f32 %v1513_v59 }
 0x706   : > { %v3979_v60 = vpop.eup %3978 }
 0x707   : > { %v1515_v61 = vmul.f32 %v3979_v60, %v1513_v59  ;;  %vm1521_vm3 = vweird.f32 %v3979_v60 }
 0x708   : > { %vm1522_vm5 = vmor %vm1520_vm4, %vm1521_vm3 }
 0x709   : > { %v1516_v62 = vmul.f32 %v3979_v60, %v1515_v61 }
 0x70b   : > { %v1517_v63 = vmul.f32 0.5, %v1516_v62 }
 0x70d   : > { %v1518_v1 = vsub.f32 1.5, %v1517_v63 }
 0x70f   : > { %v1519_v4 = vmul.f32 %v3979_v60, %v1518_v1 }
 0x711   : > { %v1523_v8 = vsel %vm1522_vm5, %v3979_v60, %v1519_v4 }
 0x712   : > { %v1524_v10 = vmul.f32 %v1523_v8, %v1507_v5 }
 0x714   : > { %v1526_v11 = vmul.f32 %v1525_v6, %v1524_v10 }
 0x716   : > { %v4985_v12 = vadd.f32 %v1527_v9, %v1526_v11 }
 0x718   : > { %v1529_v13 = vadd.f32 %v4985_v12, %v4844_v3  ;;  %v1633_v3 = vadd.f32 %v3947_v20, %v1632_v21 }
 0x71a   : > { %3630 = vmatmul.msk.f32.vlgmr.msra.gmra.mxu0 %vm1075_vm0, %v1529_v13  ;;  %v4999_v27 = vpack.i.bf16 %v1630_v22, %v1633_v3 }
 0x71b   : > { %1704 = vmatpush.msrb.mxu0 %v1633_v3 }
 0x71d   : > { %1705 = vmatpush.msrb.mxu0 %v1630_v22 }
 0x797   : > { %v1558_v24 = vpop.f32.mrf.mxu0 }
 0x798   : > { %v1559_v25 = vadd.f32 %v3946_v23, %v1558_v24 }
 0x79a   : > { %v1640_v26 = vmul.f32 0.35355338, %v1559_v25 }
 0x79c   : > { %1734 = vrot.lane.b32.xlu0 %v1640_v26, %s5460_s13  ;;  %3637 = vmatmul.msk.f32.vlgmr.msra.gmra.mxu2 %vm1143_vm1, %v1640_v26 }
 0x7a4   : > { %3913 = vrot.lane.b32.xlu0 %v4999_v27, %s5460_s13 }
 0x7ac   : > { %1934 = vrot.lane.b32.xlu0 %v1596_v18, %s5458_s15 }
 0x7b4   : > { %1837 = vrot.lane.b32.xlu0 %v1596_v18, %s5513_s30 }
 0x7bc   : > { %1930 = vrot.lane.b32.xlu0 %v1640_v26, %s5458_s15 }
 0x7c4   : > { %1833 = vrot.lane.b32.xlu0 %v1640_v26, %s5513_s30 }
 0x80e   : > { %v1735_v30 = vpop.permute.xlu0 %1734 }
 0x816   : > { %v3914_v31 = vpop.permute.xlu0 %3913 }
 0x817   : > { %v3916_v32 = vunpack.i.h.bf16 %v3914_v31  ;;  %v3915_v33 = vunpack.i.l.bf16 %v3914_v31 }
 0x819   : > { %1803 = vmatpush.msrb.mxu1 %v3915_v33 }
 0x81b   : > { %1804 = vmatpush.msrb.mxu1 %v3916_v32 }
 0x81e   : > { %v1935_v34 = vpop.permute.xlu0 %1934 }
 0x81f   : > { %v1671_v36 = vpop.f32.mrf.mxu2  ;;  %3650 = vmatpush.xpose.msk.msra.mxu3 %vm1143_vm1, %v1935_v34 }
 0x820   : > { %v1675_v37 = vsel %vm1674_vm6, %v1671_v36, -inf }
 0x821   : > { %1676 = vmax.xlane.f32.xlu2 %v1675_v37 }
 0x826   : > { %v1838_v5 = vpop.permute.xlu0 %1837 }
 0x827   : > { %3645 = vmatpush.xpose.msk.msra.mxu2 %vm1143_vm1, %v1838_v5  ;;  %v1637_v5 = vld [vmem:[#allocation11 + $0x10] sm:$0xff] }
 0x828   : > { %1924 = vmatpush.msra.mxu1 %v1637_v5 }
 0x82e   : > { %v1931_v1 = vpop.permute.xlu0 %1930 }
 0x836   : > { %v1834_v6 = vpop.permute.xlu0 %1833 }
 0x894   : > { %v1677_v38 = vpop.xlane.xlu2 %1676 }
 0x895   : > { %v1678_v39 = vsub.f32 %v1671_v36, %v1677_v38 }
 0x897   : > { %v1679_v40 = vmul.f32 1.442695, %v1678_v39 }
 0x899   : > { %3980 = vpow2.f32 %v1679_v40 }
 0x89f   : > { %v3981_v41 = vpop.eup %3980 }
 0x8a0   : > { %v1681_v43 = vsel %vm1674_vm6, %v3981_v41, 0.0 }
 0x8a1   : > { %1682 = vadd.xlane.f32.xlu2 %v1681_v43 }
 0x8b9   : > { %1738 = vrot.lane.b32.xlu2 %v1596_v18, %s5460_s13  ;;  %s3324_s13 = sshll.u32 %s5049_s28, 4  ;;  %s3325_s13 = int_to_ptr.vmem [resolvable:$true] %s3324_s13 }
 0x914   : > { %v1683_v44 = vpop.xlane.xlu2 %1682 }
 0x915   : > { %3982 = vrcp.f32 %v1683_v44  ;;  %v1638_v44 = vld [vmem:[#allocation11 + $0x18] sm:$0xff] }
 0x91b   : > { %v3983_v47 = vpop.eup %3982 }
 0x91c   : > { %v5012_v49 = vmul.f32 %v3983_v47, %v3981_v41  ;;  %v1739_v50 = vpop.permute.xlu2 %1738 }
 0x91d   : > { %3640 = vmatpush.xpose.msk.msra.mxu0 %vm1143_vm1, %v1739_v50 }
 0x91e   : > { %3638 = vmatmul.msk.f32.vlgmr.msrb.gmra.mxu0 %vm1674_vm6, %v5012_v49 }
 0x921   : > { %3641 = vmatpush.xpose.msk.msra.mxu0 %vm1143_vm1, %v1737_v51 }
 0x926   : > { %3642 = vmatmul.msk.f32.vlgmr.msra.gmra.mxu0 %vm1143_vm1, %v1735_v30 }
 0x99b   : > { %v1707_v52 = vpop.f32.mrf.mxu0 }
 0x99c   : > { %3639 = vmatmul.msk.f32.vlgmr.msrb.gmra.mxu2 %vm1143_vm1, %v1707_v52 }
 0x9a3   : > { %v1763_v53 = vpop.f32.mrf.mxu0 }
 0x9a4   : > { %v1766_v54 = vsel %vm1674_vm6, %v1763_v53, -inf }
 0x9a5   : > { %1767 = vmax.xlane.f32.xlu2 %v1766_v54 }
 0x9bd   : > { %1932 = vrot.lane.b32.xlu2 %v4990_v16, %s5458_s15 }
 0xa18   : > { %v1768_v55 = vpop.xlane.xlu2 %1767 }
 0xa19   : > { %v1769_v56 = vsub.f32 %v1763_v53, %v1768_v55 }
 0xa1b   : > { %v1770_v57 = vmul.f32 1.442695, %v1769_v56 }
 0xa1d   : > { %3984 = vpow2.f32 %v1770_v57 }
 0xa1f   : > { %v1730_v9 = vpop.f32.mrf.mxu2 }
 0xa20   : > { %v1933_v58 = vpop.permute.xlu2 %1932 }
 0xa21   : > { %3651 = vmatpush.xpose.msk.msra.mxu3 %vm1143_vm1, %v1933_v58 }
 0xa23   : > { %v3985_v59 = vpop.eup %3984 }
 0xa24   : > { %v1772_v60 = vsel %vm1674_vm6, %v3985_v59, 0.0 }
 0xa25   : > { %1773 = vadd.xlane.f32.xlu1 %v1772_v60 }
 0xa3e   : > { %1835 = vrot.lane.b32.xlu1 %v4990_v16, %s5513_s30 }
 0xa98   : > { %v1774_v61 = vpop.xlane.xlu1 %1773 }
 0xa99   : > { %3986 = vrcp.f32 %v1774_v61 }
 0xa9f   : > { %v3987_v62 = vpop.eup %3986 }
 0xaa0   : > { %v1776_v63 = vmul.f32 %v3987_v62, %v3985_v59 }
 0xaa2   : > { %3643 = vmatmul.msk.f32.vlgmr.msrb.gmra.mxu1 %vm1674_vm6, %v1776_v63  ;;  %v1777_v31 = vadd.f32 %v1776_v63, %v5012_v49  ;;  %v3948_v49 = vld [vmem:[#allocation13] ss:$0 sm:$0xff] }
 0xaa3   : > { %v1733_v50 = vadd.f32 %v3948_v49, %v1730_v9  ;;  %v2058_v63 = vld [vmem:[#allocation14 + $0x18] sm:$0xff]  ;;  %v2092_v9 = vld [vmem:[%s5429_s21 + $0x28] sm:$0xff]  ;;  %v3661_v49 = vld [vmem:[%s5505_s4 + $0x38] sm:$0xff] }
 0xaa4   : > { %2078 = vmatpush.msrb.mxu1 %v2058_v63 }
 0xab0   : > { %v1836_v4 = vpop.permute.xlu1 %1835 }
 0xab1   : > { %3646 = vmatpush.xpose.msk.msra.mxu2 %vm1143_vm1, %v1836_v4  ;;  %v2056_v4 = vld [vmem:[#allocation14 + $0x8] sm:$0xff] }
 0xab4   : > { %3647 = vmatmul.msk.f32.vlgmr.msra.gmra.mxu2 %vm1143_vm1, %v1834_v6  ;;  %v2055_v6 = vld [vmem:[#allocation14] sm:$0xff] }
 0xb1f   : > { %v1806_v8 = vpop.f32.mrf.mxu1 }
 0xb20   : > { %3644 = vmatmul.msk.f32.vlgmr.msrb.gmra.mxu3 %vm1143_vm1, %v1806_v8  ;;  %v2093_v8 = vld [vmem:[%s5429_s21 + $0x30] sm:$0xff] }
 0xb28   : > { %3652 = vmatmul.msk.f32.vlgmr.msra.gmra.mxu3 %vm1143_vm1, %v1931_v1  ;;  %v2057_v1 = vld [vmem:[#allocation14 + $0x10] sm:$0xff] }
 0xb29   : > { %2079 = vmatpush.msrb.mxu1 %v2057_v1 }
 0xb2b   : > { %2080 = vmatpush.msrb.mxu1 %v2056_v4  ;;  %v2146_v4 = vperm.slane %v4979_v0, 2 }
 0xb2d   : > { %2081 = vmatpush.msrb.mxu1 %v2055_v6 }
 0xb37   : > { %v1862_v10 = vpop.f32.mrf.mxu2 }
 0xb38   : > { %v1865_v11 = vsel %vm1674_vm6, %v1862_v10, -inf }
 0xb39   : > { %1866 = vmax.xlane.f32.xlu2 %v1865_v11 }
 0xb51   : > { %3918 = vrot.lane.b32.xlu2 %v4999_v27, %s5458_s15  ;;  %s5516_s15 = smov 120  }
 0xba3   : > { %v1829_v13 = vpop.f32.mrf.mxu3 }
 0xba4   : > { %v1832_v52 = vadd.f32 %v1829_v13, %v1733_v50  ;;  %v2091_v13 = vld [vmem:[%s5429_s21 + $0x20] sm:$0xff]  ;;  %v3666_v50 = vld [vmem:[%s5507_s5 + $0x30] sm:$0xff] }
 0xbab   : > { %v1959_v14 = vpop.f32.mrf.mxu3 }
 0xbac   : > { %v1867_v15 = vpop.xlane.xlu2 %1866  ;;  %v1962_v16 = vsel %vm1674_vm6, %v1959_v14, -inf }
 0xbad   : > { %v1868_v17 = vsub.f32 %v1862_v10, %v1867_v15  ;;  %1963 = vmax.xlane.f32.xlu0 %v1962_v16  ;;  %v2090_v15 = vld [vmem:[%s5429_s21 + $0x18] sm:$0xff] }
 0xbaf   : > { %v1869_v18 = vmul.f32 1.442695, %v1868_v17 }
 0xbb1   : > { %3988 = vpow2.f32 %v1869_v18 }
 0xbb4   : > { %v3919_v19 = vpop.permute.xlu2 %3918 }
 0xbb5   : > { %v3920_v20 = vunpack.i.l.bf16 %v3919_v19  ;;  %v3921_v3 = vunpack.i.h.bf16 %v3919_v19 }
 0xbb7   : > { %v3989_v21 = vpop.eup %3988  ;;  %1997 = vmatpush.msrb.mxu2 %v3920_v20 }
 0xbb8   : > { %v1871_v22 = vsel %vm1674_vm6, %v3989_v21, 0.0 }
 0xbb9   : > { %1872 = vadd.xlane.f32.xlu0 %v1871_v22  ;;  %1998 = vmatpush.msrb.mxu2 %v3921_v3  ;;  %v2051_v3 = vperm.slane %v4979_v0, 1  ;;  %v3951_v0 = vld [vmem:[%s5508_s2 + $0x1] ss:$0 sm:$0xff] }
 0xbbb   : > { %2208 = vmatpush.msra.mxu2 %v3661_v49 }
 0xbcd   : > { %3923 = vrot.lane.b32.xlu0 %v4999_v27, %s5513_s30 }
 0xc20   : > { %v1964_v23 = vpop.xlane.xlu0 %1963 }
 0xc21   : > { %v1965_v24 = vsub.f32 %v1959_v14, %v1964_v23 }
 0xc23   : > { %v1966_v25 = vmul.f32 1.442695, %v1965_v24  ;;  %v2053_v24 = vperm.slane %v4981_v2, 1 }
 0xc25   : > { %3990 = vpow2.f32 %v1966_v25 }
 0xc2b   : > { %v3991_v26 = vpop.eup %3990 }
 0xc2c   : > { %v1873_v28 = vpop.xlane.xlu0 %1872  ;;  %v1968_v29 = vsel %vm1674_vm6, %v3991_v26, 0.0 }
 0xc2d   : > { %3992 = vrcp.f32 %v1873_v28  ;;  %1969 = vadd.xlane.f32.xlu1 %v1968_v29  ;;  %v2089_v28 = vld [vmem:[%s5429_s21 + $0x10] sm:$0xff]  ;;  %v2088_v29 = vld [vmem:[%s5429_s21 + $0x8] sm:$0xff] }
 0xc33   : > { %v3993_v30 = vpop.eup %3992 }
 0xc34   : > { %v1875_v32 = vmul.f32 %v3993_v30, %v3989_v21  ;;  %v2087_v30 = vld [vmem:[%s5429_s21] sm:$0xff] }
 0xc36   : > { %v1876_v33 = vadd.f32 %v1875_v32, %v1777_v31  ;;  %v3949_v31 = vld [vmem:[#allocation16] ss:$0 sm:$0xff] }
 0xc3f   : > { %v3924_v34 = vpop.permute.xlu0 %3923 }
 0xc40   : > { %v3925_v36 = vunpack.i.l.bf16 %v3924_v34  ;;  %v3926_v37 = vunpack.i.h.bf16 %v3924_v34 }
 0xc42   : > { %1900 = vmatpush.msrb.mxu0 %v3925_v36  ;;  %v3950_v36 = vld [vmem:[#allocation17] ss:$0 sm:$0xff] }
 0xc44   : > { %1901 = vmatpush.msrb.mxu0 %v3926_v37 }
 0xc45   : > { %3648 = vmatmul.msk.f32.vlgmr.msrb.gmra.mxu0 %vm1674_vm6, %v1875_v32 }
 0xc46   : > { %2021 = vmatpush.msra.mxu0 %v1638_v44 }
 0xca0   : > { %v1970_v27 = vpop.xlane.xlu1 %1969 }
 0xca1   : > { %3994 = vrcp.f32 %v1970_v27 }
 0xca7   : > { %v3995_v38 = vpop.eup %3994 }
 0xca8   : > { %v1972_v39 = vmul.f32 %v3995_v38, %v3991_v26 }
 0xcaa   : > { %v1973_v40 = vadd.f32 %v1972_v39, %v1876_v33  ;;  %3653 = vmatmul.msk.f32.vlgmr.msrb.gmra.mxu2 %vm1674_vm6, %v1972_v39 }
 0xcac   : > { %v2027_v41 = vmul.f32 0.25, %v1973_v40 }
 0xcae   : > { %2177 = vst.msk [vmem:[%s5049_s28] sm:$0xff] %vm1674_vm6, %v2027_v41 }
 0xcc2   : > { %v1903_v43 = vpop.f32.mrf.mxu0 }
 0xcc3   : > { %3649 = vmatmul.msk.f32.vlgmr.msra.gmra.mxu1 %vm1143_vm1, %v1903_v43 }
 0xd2d   : > { %v2000_v47 = vpop.f32.mrf.mxu2 }
 0xd2e   : > { %3654 = vmatmul.msk.f32.vlgmr.msra.gmra.mxu0 %vm1143_vm1, %v2000_v47  ;;  %v3667_v47 = vld [vmem:[%s5507_s5 + $0x38] sm:$0xff] }
 0xd2f   : > { %2241 = vmatpush.msrb.mxu0 %v3667_v47 }
 0xd31   : > { %2242 = vmatpush.msrb.mxu0 %v3666_v50 }
 0xd40   : > { %v1926_v51 = vpop.f32.mrf.mxu1 }
 0xd41   : > { %v1929_v53 = vadd.f32 %v1926_v51, %v1832_v52  ;;  %v3660_v51 = vld [vmem:[%s5505_s4 + $0x30] sm:$0xff]  ;;  %v3665_v52 = vld [vmem:[%s5507_s5 + $0x28] sm:$0xff] }
 0xd42   : > { %2209 = vmatpush.msra.mxu2 %v3660_v51  ;;  %2243 = vmatpush.msrb.mxu0 %v3665_v52 }
 0xdab   : > { %v2023_v54 = vpop.f32.mrf.mxu0 }
 0xdac   : > { %v2026_v55 = vadd.f32 %v2023_v54, %v1929_v53  ;;  %v3659_v53 = vld [vmem:[%s5505_s4 + $0x28] sm:$0xff]  ;;  %v3664_v54 = vld [vmem:[%s5507_s5 + $0x20] sm:$0xff] }
 0xdad   : > { %2210 = vmatpush.msra.mxu2 %v3659_v53  ;;  %2244 = vmatpush.msrb.mxu0 %v3664_v54 }
 0xdae   : > { %v2028_v56 = vadd.f32 %v2026_v55, %v4985_v12  ;;  %v2094_v12 = vld [vmem:[%s5429_s21 + $0x38] sm:$0xff]  ;;  %v3658_v55 = vld [vmem:[%s5505_s4 + $0x20] sm:$0xff] }
 0xdaf   : > { %2111 = vmatpush.msrb.mxu3 %v2094_v12  ;;  %2211 = vmatpush.msra.mxu2 %v3658_v55  ;;  %v3953_v55 = vld [vmem:[%s5510_s25 + $0x1] ss:$0 sm:$0xff] }
 0xdb0   : > { %v2029_v57 = vsel %vm1075_vm0, %v2028_v56, 0.0 }
 0xdb1   : > { %2030 = vadd.xlane.f32.xlu1 %v2029_v57  ;;  %2112 = vmatpush.msrb.mxu3 %v2093_v8  ;;  %v2148_v8 = vperm.slane %v4981_v2, 2  ;;  %v3952_v2 = vld [vmem:[%s5506_s10 + $0x1] ss:$0 sm:$0xff] }
 0xdb3   : > { %2113 = vmatpush.msrb.mxu3 %v2092_v9 }
 0xdb5   : > { %2114 = vmatpush.msrb.mxu3 %v2091_v13 }
 0xdb7   : > { %2115 = vmatpush.msrb.mxu3 %v2090_v15 }
 0xdb9   : > { %2116 = vmatpush.msrb.mxu3 %v2089_v28 }
 0xdbb   : > { %2117 = vmatpush.msrb.mxu3 %v2088_v29 }
 0xdbd   : > { %2118 = vmatpush.msrb.mxu3 %v2087_v30 }
 0xe24   : > { %v2031_v58 = vpop.xlane.xlu1 %2030 }
 0xe25   : > { %v2032_v59 = vmul.f32 %v2031_v58, %v4934_v35 }
 0xe27   : > { %v2033_v60 = vsub.f32 %v2028_v56, %v2032_v59 }
 0xe29   : > { %v2034_v61 = vmul.f32 %v2033_v60, %v2033_v60 }
 0xe2b   : > { %v2035_v62 = vsel %vm1075_vm0, %v2034_v61, 0.0 }
 0xe2c   : > { %2036 = vadd.xlane.f32.xlu1 %v2035_v62 }
 0xe9f   : > { %v2037_v10 = vpop.xlane.xlu1 %2036 }
 0xea0   : > { %v2038_v11 = vmul.f32 %v2037_v10, %v4934_v35 }
 0xea2   : > { %v2039_v14 = vadd.f32 1e-05, %v2038_v11 }
 0xea4   : > { %3996 = vrsqrt.f32 %v2039_v14  ;;  %vm2046_vm8 = vweird.f32 %v2039_v14 }
 0xeaa   : > { %v3997_v16 = vpop.eup %3996 }
 0xeab   : > { %v2041_v17 = vmul.f32 %v3997_v16, %v2039_v14  ;;  %vm2047_vm7 = vweird.f32 %v3997_v16 }
 0xeac   : > { %vm2048_vm9 = vmor %vm2046_vm8, %vm2047_vm7 }
 0xead   : > { %v2042_v18 = vmul.f32 %v3997_v16, %v2041_v17 }
 0xeaf   : > { %v2043_v19 = vmul.f32 0.5, %v2042_v18 }
 0xeb1   : > { %v2044_v20 = vsub.f32 1.5, %v2043_v19 }
 0xeb3   : > { %v2045_v21 = vmul.f32 %v3997_v16, %v2044_v20 }
 0xeb5   : > { %v2049_v22 = vsel %vm2048_vm9, %v3997_v16, %v2045_v21 }
 0xeb6   : > { %v2050_v23 = vmul.f32 %v2049_v22, %v2033_v60 }
 0xeb8   : > { %v2052_v25 = vmul.f32 %v2051_v3, %v2050_v23  ;;  %v3670_v23 = vld [vmem:[%s5509_s26 + $0x20] sm:$0xff] }
 0xeb9   : > { %2341 = vmatpush.msra.mxu0 %v3670_v23 }
 0xeba   : > { %v2054_v26 = vadd.f32 %v2053_v24, %v2052_v25 }
 0xebc   : > { %3655 = vmatmul.msk.f32.vlgmr.msrb.gmra.mxu1 %vm1075_vm0, %v2054_v26 }
 0xf39   : > { %v2083_v32 = vpop.f32.mrf.mxu1 }
 0xf3a   : > { %v2084_v33 = vadd.f32 %v3949_v31, %v2083_v32 }
 0xf3c   : > { %v2086_v34 = vmax.f32 %v2084_v33, 0.0 }
 0xf3e   : > { %3656 = vmatmul.msk.f32.vlgmr.msrb.gmra.mxu3 %vm2099_vm10, %v2086_v34 }
 0xfc1   : > { %v2120_v37 = vpop.f32.mrf.mxu3 }
 0xfc2   : > { %v2121_v27 = vadd.f32 %v3950_v36, %v2120_v37  ;;  %v3671_v37 = vld [vmem:[%s5509_s26 + $0x28] sm:$0xff] }
 0xfc4   : > { %v2123_v5 = vadd.f32 %v2121_v27, %v2054_v26 }
 0xfc6   : > { %v2124_v38 = vsel %vm1075_vm0, %v2123_v5, 0.0 }
 0xfc7   : > { %2125 = vadd.xlane.f32.xlu0 %v2124_v38 }
0x103a   : > { %v2126_v39 = vpop.xlane.xlu0 %2125 }
0x103b   : > { %v2127_v40 = vmul.f32 %v2126_v39, %v4934_v35 }
0x103d   : > { %v2128_v41 = vsub.f32 %v2123_v5, %v2127_v40 }
0x103f   : > { %v2129_v43 = vmul.f32 %v2128_v41, %v2128_v41 }
0x1041   : > { %v2130_v44 = vsel %vm1075_vm0, %v2129_v43, 0.0 }
0x1042   : > { %2131 = vadd.xlane.f32.xlu1 %v2130_v44 }
0x10b5   : > { %v2132_v56 = vpop.xlane.xlu1 %2131 }
0x10b6   : > { %v2133_v57 = vmul.f32 %v2132_v56, %v4934_v35 }
0x10b8   : > { %v2134_v58 = vadd.f32 1e-05, %v2133_v57 }
0x10ba   : > { %3998 = vrsqrt.f32 %v2134_v58  ;;  %vm2141_vm12 = vweird.f32 %v2134_v58 }
0x10c0   : > { %v3999_v59 = vpop.eup %3998 }
0x10c1   : > { %v2136_v60 = vmul.f32 %v3999_v59, %v2134_v58  ;;  %vm2142_vm11 = vweird.f32 %v3999_v59 }
0x10c2   : > { %vm2143_vm13 = vmor %vm2141_vm12, %vm2142_vm11 }
0x10c3   : > { %v2137_v61 = vmul.f32 %v3999_v59, %v2136_v60 }
0x10c5   : > { %v2138_v62 = vmul.f32 0.5, %v2137_v61 }
0x10c7   : > { %v2139_v63 = vsub.f32 1.5, %v2138_v62 }
0x10c9   : > { %v2140_v1 = vmul.f32 %v3999_v59, %v2139_v63 }
0x10cb   : > { %v2144_v6 = vsel %vm2143_vm13, %v3999_v59, %v2140_v1 }
0x10cc   : > { %v2145_v12 = vmul.f32 %v2144_v6, %v2128_v41 }
0x10ce   : > { %v2147_v9 = vmul.f32 %v2146_v4, %v2145_v12 }
0x10d0   : > { %v5118_v10 = vadd.f32 %v2148_v8, %v2147_v9 }
0x10d2   : > { %3669 = vmatmul.msk.f32.vlgmr.msrb.gmra.mxu0 %vm1075_vm0, %v5118_v10  ;;  %v2182_v11 = vadd.f32 %v5118_v10, %v4852_v7 }
0x10d4   : > { %3663 = vmatmul.msk.f32.vlgmr.msra.gmra.mxu2 %vm1075_vm0, %v2182_v11 }
0x114f   : > { %v2246_v13 = vpop.f32.mrf.mxu0 }
0x1150   : > { %v5128_v14 = vadd.f32 %v3951_v0, %v2246_v13 }
0x1152   : > { %2318 = vmatpush.msrb.mxu2 %v5128_v14 }
0x1154   : > { %2431 = vmatpush.msra.mxu2 %v3671_v37  ;;  %v2677_v37 = vld [vmem:[#allocation5 + $0x20] sm:$0xff] }
0x1157   : > { %v2213_v15 = vpop.f32.mrf.mxu2 }
0x1158   : > { %v2214_v16 = vadd.f32 %v3952_v2, %v2213_v15 }
0x115a   : > { %2349 = vrot.lane.b32.xlu1 %v2214_v16, %s5514_s7  ;;  %2262 = vrot.lane.b32.xlu2 %v2214_v16, %s5515_s1  ;;  %v2256_v7 = vmul.f32 0.35355338, %v2214_v16  ;;  %s5462_s7 = sshll.u32 %s4679_s8, 3 }
0x1162   : > { %2347 = vrot.lane.b32.xlu2 %v2256_v7, %s5516_s15 }
0x11b4   : > { %v2263_v17 = vpop.permute.xlu2 %2262 }
0x11b5   : > { %3675 = vmatpush.xpose.msk.msra.mxu1 %vm1143_vm1, %v2263_v17 }
0x11b8   : > { %3676 = vmatmul.msk.f32.vlgmr.msra.gmra.mxu1 %vm1143_vm1, %v2256_v7 }
0x11bc   : > { %v2348_v19 = vpop.permute.xlu2 %2347 }
0x11cc   : > { %v2350_v18 = vpop.permute.xlu1 %2349 }
0x11cd   : > { %3679 = vmatpush.xpose.msk.msrb.mxu1 %vm1143_vm1, %v2350_v18 }
0x11d0   : > { %3680 = vmatmul.msk.f32.vlgmr.msrb.gmra.mxu1 %vm1143_vm1, %v2348_v19  ;;  %v3672_v19 = vld [vmem:[%s5509_s26 + $0x30] sm:$0xff] }
0x1235   : > { %v2286_v20 = vpop.f32.mrf.mxu1 }
0x1236   : > { %v2289_v21 = vsel %vm1143_vm1, %v2286_v20, -inf }
0x1237   : > { %2290 = vmax.xlane.f32.xlu2 %v2289_v21 }
0x124d   : > { %v2372_v3 = vpop.f32.mrf.mxu1 }
0x124e   : > { %v2375_v22 = vsel %vm1143_vm1, %v2372_v3, -inf }
0x124f   : > { %2376 = vmax.xlane.f32.xlu1 %v2375_v22  ;;  %2439 = vrot.lane.b32.xlu2 %v2214_v16, %s5517_s0 }
0x1257   : > { %2526 = vrot.lane.b32.xlu2 %v2256_v7, %s5518_s29 }
0x1268   : > { %2528 = vrot.lane.b32.xlu1 %v2214_v16, %s5519_s12  ;;  %s5520_s12 = sld [smem:[#allocation55_spill]] }
0x126e   : > { %s3323_s16 = scalar_lea.hbm %s5520_s12, %s5462_s7  ;;  %s4395_s14 = scalar_lea.hbm %s5520_s12, 32 }
0x12aa   : > { %v2291_v24 = vpop.xlane.xlu2 %2290 }
0x12ab   : > { %v2292_v25 = vsub.f32 %v2286_v20, %v2291_v24  ;;  %v3673_v20 = vld [vmem:[%s5509_s26 + $0x38] sm:$0xff] }
0x12ad   : > { %v2293_v26 = vmul.f32 1.442695, %v2292_v25 }
0x12af   : > { %4000 = vpow2.f32 %v2293_v26 }
0x12b2   : > { %v2440_v28 = vpop.permute.xlu2 %2439 }
0x12b3   : > { %3683 = vmatpush.xpose.msk.msrb.mxu0 %vm1143_vm1, %v2440_v28 }
0x12b5   : > { %v4001_v29 = vpop.eup %4000 }
0x12b6   : > { %v2295_v30 = vsel %vm1143_vm1, %v4001_v29, 0.0 }
0x12b7   : > { %2296 = vadd.xlane.f32.xlu0 %v2295_v30 }
0x12ba   : > { %v2527_v51 = vpop.permute.xlu2 %2526 }
0x12c2   : > { %v2377_v31 = vpop.xlane.xlu1 %2376 }
0x12c3   : > { %v2378_v32 = vsub.f32 %v2372_v3, %v2377_v31 }
0x12c5   : > { %v2379_v33 = vmul.f32 1.442695, %v2378_v32 }
0x12c7   : > { %4002 = vpow2.f32 %v2379_v33  ;;  %v2680_v33 = vld [vmem:[#allocation5 + $0x38] sm:$0xff] }
0x12cd   : > { %v4003_v34 = vpop.eup %4002 }
0x12ce   : > { %v2381_v36 = vsel %vm1143_vm1, %v4003_v34, 0.0 }
0x12cf   : > { %2382 = vadd.xlane.f32.xlu0 %v2381_v36  ;;  %v2678_v36 = vld [vmem:[#allocation5 + $0x28] sm:$0xff] }
0x12da   : > { %v2529_v39 = vpop.permute.xlu1 %2528 }
0x12e3   : > { %2387 = vrot.lane.b32.xlu0 %v5128_v14, %s5516_s15 }
0x12eb   : > { %2437 = vrot.lane.b32.xlu0 %v2256_v7, %s5513_s30 }
0x132a   : > { %v2297_v27 = vpop.xlane.xlu0 %2296 }
0x132b   : > { %4004 = vrcp.f32 %v2297_v27  ;;  %v3694_v27 = vld [vmem:[%s5419_s11 + $0x38] sm:$0xff] }
0x1331   : > { %v4005_v5 = vpop.eup %4004 }
0x1332   : > { %v2299_v38 = vmul.f32 %v4005_v5, %v4001_v29  ;;  %v3693_v5 = vld [vmem:[%s5419_s11 + $0x30] sm:$0xff] }
0x1334   : > { %3677 = vmatmul.msk.f32.vlgmr.msrb.gmra.mxu2 %vm1143_vm1, %v2299_v38  ;;  %v3692_v38 = vld [vmem:[%s5419_s11 + $0x28] sm:$0xff] }
0x1335   : > { %3687 = vmatpush.xpose.msk.msrb.mxu2 %vm1143_vm1, %v2529_v39  ;;  %v2713_v39 = vld [vmem:[#allocation8 + $0x38] sm:$0xff] }
0x1342   : > { %v2383_v40 = vpop.xlane.xlu0 %2382 }
0x1343   : > { %4006 = vrcp.f32 %v2383_v40  ;;  %v2711_v40 = vld [vmem:[#allocation8 + $0x28] sm:$0xff] }
0x1349   : > { %v4007_v41 = vpop.eup %4006 }
0x134a   : > { %v2385_v43 = vmul.f32 %v4007_v41, %v4003_v34  ;;  %v2679_v34 = vld [vmem:[#allocation5 + $0x30] sm:$0xff] }
0x1355   : > { %v2388_v44 = vpop.permute.xlu0 %2387 }
0x1356   : > { %2408 = vmatpush.msra.mxu3 %v2388_v44  ;;  %v2710_v44 = vld [vmem:[#allocation8 + $0x20] sm:$0xff] }
0x1357   : > { %3681 = vmatmul.msk.f32.vlgmr.msra.gmra.mxu3 %vm1143_vm1, %v2385_v43 }
0x1358   : > { %2520 = vmatpush.msrb.mxu3 %v3672_v19 }
0x135a   : > { %2668 = vmatpush.msra.mxu3 %v3694_v27  ;;  %v2743_v27 = vld [vmem:[#allocation11 + $0x20] sm:$0xff] }
0x135c   : > { %2669 = vmatpush.msra.mxu3 %v3693_v5 }
0x135d   : > { %v2438_v49 = vpop.permute.xlu0 %2437 }
0x135e   : > { %2670 = vmatpush.msra.mxu3 %v3692_v38 }
0x13b7   : > { %v2320_v47 = vpop.f32.mrf.mxu2 }
0x13b8   : > { %3678 = vmatmul.msk.f32.vlgmr.msra.gmra.mxu0 %vm1143_vm1, %v2320_v47 }
0x13c0   : > { %3684 = vmatmul.msk.f32.vlgmr.msrb.gmra.mxu0 %vm1143_vm1, %v2438_v49 }
0x13da   : > { %v2410_v50 = vpop.f32.mrf.mxu3 }
0x13db   : > { %3682 = vmatmul.msk.f32.vlgmr.msra.gmra.mxu2 %vm1143_vm1, %v2410_v50 }
0x13dc   : > { %2698 = vmatpush.msra.mxu2 %v2680_v33 }
0x13de   : > { %2699 = vmatpush.msra.mxu2 %v2679_v34 }
0x13e0   : > { %2700 = vmatpush.msra.mxu2 %v2678_v36 }
0x13e2   : > { %2701 = vmatpush.msra.mxu2 %v2677_v37 }
0x13e3   : > { %3688 = vmatmul.msk.f32.vlgmr.msrb.gmra.mxu2 %vm1143_vm1, %v2527_v51 }
0x13eb   : > { %3696 = vmatmul.msk.f32.vlgmr.msra.gmra.mxu2 %vm1075_vm0, %v4948_v45  ;;  %v3691_v45 = vld [vmem:[%s5419_s11 + $0x20] sm:$0xff] }
0x13ec   : > { %2671 = vmatpush.msra.mxu3 %v3691_v45 }
0x13f3   : > { %3697 = vmatmul.msk.f32.gmra.mxu2 %vm1075_vm0, %v4955_v48  ;;  %v2712_v48 = vld [vmem:[#allocation8 + $0x30] sm:$0xff] }
0x1435   : > { %v2343_v52 = vpop.f32.mrf.mxu0 }
0x1436   : > { %v2346_v56 = vadd.f32 %v3953_v55, %v2343_v52  ;;  %v5216_v55 = vld [vmem:[#allocation19 + $0x4] sm:$0xf] }
0x143d   : > { %v2462_v53 = vpop.f32.mrf.mxu0 }
0x143e   : > { %v2465_v54 = vsel %vm1143_vm1, %v2462_v53, -inf }
0x143f   : > { %2466 = vmax.xlane.f32.xlu0 %v2465_v54 }
0x145e   : > { %v2433_v57 = vpop.f32.mrf.mxu2 }
0x145f   : > { %v2436_v58 = vadd.f32 %v2433_v57, %v2346_v56 }
0x1466   : > { %v2551_v59 = vpop.f32.mrf.mxu2 }
0x1467   : > { %v2554_v60 = vsel %vm1143_vm1, %v2551_v59, -inf }
0x1468   : > { %2555 = vmax.xlane.f32.xlu2 %v2554_v60 }
0x1480   : > { %2476 = vrot.lane.b32.xlu2 %v5128_v14, %s5513_s30 }
0x14b2   : > { %v2467_v61 = vpop.xlane.xlu0 %2466 }
0x14b3   : > { %v2468_v62 = vsub.f32 %v2462_v53, %v2467_v61  ;;  %v5214_v53 = vld [vmem:[%s5431_s23 + $0x4] sm:$0xf] }
0x14b4   : > { %v4042_v61 = vld [vmem:[%s4826_s27] sm:$0xff] }
0x14b5   : > { %v2469_v63 = vmul.f32 1.442695, %v2468_v62 }
0x14b7   : > { %4008 = vpow2.f32 %v2469_v63  ;;  %v2703_v63 = vpop.f32.mrf.mxu2 }
0x14bd   : > { %v4009_v1 = vpop.eup %4008 }
0x14be   : > { %v2471_v4 = vsel %vm1143_vm1, %v4009_v1, 0.0 }
0x14bf   : > { %2472 = vadd.xlane.f32.xlu1 %v2471_v4  ;;  %v2706_v4 = vpop.f32.mrf.mxu2 }
0x14db   : > { %v2556_v6 = vpop.xlane.xlu2 %2555 }
0x14dc   : > { %v2557_v12 = vsub.f32 %v2551_v59, %v2556_v6 }
0x14de   : > { %v2558_v8 = vmul.f32 1.442695, %v2557_v12 }
0x14e0   : > { %4010 = vpow2.f32 %v2558_v8 }
0x14e3   : > { %v2477_v9 = vpop.permute.xlu2 %2476 }
0x14e4   : > { %2497 = vmatpush.msra.mxu1 %v2477_v9  ;;  %v3956_v9 = vld [vmem:[#allocation10 + $0x1] ss:$0 sm:$0xff] }
0x14e6   : > { %v4011_v11 = vpop.eup %4010  ;;  %2609 = vmatpush.msrb.mxu1 %v3673_v20 }
0x14e7   : > { %v2560_v0 = vsel %vm1143_vm1, %v4011_v11, 0.0 }
0x14e8   : > { %2561 = vadd.xlane.f32.xlu0 %v2560_v0 }
0x14fc   : > { %2565 = vrot.lane.b32.xlu0 %v5128_v14, %s5518_s29 }
0x1532   : > { %v2473_v13 = vpop.xlane.xlu1 %2472 }
0x1533   : > { %4012 = vrcp.f32 %v2473_v13 }
0x1539   : > { %v4013_v2 = vpop.eup %4012 }
0x153a   : > { %v2475_v15 = vmul.f32 %v4013_v2, %v4009_v1  ;;  %v3954_v1 = vld [vmem:[#allocation7 + $0x1] ss:$0 sm:$0xff]  ;;  %v3955_v2 = vld [vmem:[#allocation2 + $0x1] ss:$0 sm:$0xff] }
0x153b   : > { %v5225_v6 = vadd.f32 %v3954_v1, %v2706_v4  ;;  %v5227_v12 = vadd.f32 %v3954_v1, %v2703_v63 }
0x153c   : > { %3685 = vmatmul.msk.f32.vlgmr.msra.gmra.mxu1 %vm1143_vm1, %v2475_v15 }
0x153d   : > { %3700 = vmatpush.xpose.msk.msra.mxu1 %vm1143_vm1, %v5225_v6 }
0x1541   : > { %3701 = vmatpush.xpose.msk.msra.mxu1 %vm1143_vm1, %v5227_v12 }
0x155b   : > { %v2562_v16 = vpop.xlane.xlu0 %2561 }
0x155c   : > { %4014 = vrcp.f32 %v2562_v16 }
0x1562   : > { %v4015_v7 = vpop.eup %4014 }
0x1563   : > { %v2564_v17 = vmul.f32 %v4015_v7, %v4011_v11 }
0x156e   : > { %v2566_v18 = vpop.permute.xlu0 %2565 }
0x156f   : > { %2586 = vmatpush.msra.mxu0 %v2566_v18 }
0x1570   : > { %3689 = vmatmul.msk.f32.vlgmr.msra.gmra.mxu0 %vm1143_vm1, %v2564_v17 }
0x1571   : > { %2731 = vmatpush.msrb.mxu0 %v2713_v39 }
0x1573   : > { %2732 = vmatpush.msrb.mxu0 %v2712_v48 }
0x1575   : > { %2733 = vmatpush.msrb.mxu0 %v2711_v40 }
0x1577   : > { %2734 = vmatpush.msrb.mxu0 %v2710_v44 }
0x1578   : > { %3698 = vmatmul.msk.f32.vlgmr.msrb.gmra.mxu0 %vm1075_vm0, %v4945_v42  ;;  %v2638_v42 = vperm.slane %v5214_v53, 0 }
0x1580   : > { %3699 = vmatmul.msk.f32.gmra.mxu0 %vm1075_vm0, %v4952_v46  ;;  %v2640_v46 = vperm.slane %v5216_v55, 0 }
0x15b9   : > { %v2499_v14 = vpop.f32.mrf.mxu1 }
0x15ba   : > { %3686 = vmatmul.msk.f32.vlgmr.msrb.gmra.mxu3 %vm1143_vm1, %v2499_v14  ;;  %v2744_v14 = vld [vmem:[#allocation11 + $0x28] sm:$0xff] }
0x15bb   : > { %2935 = vmatpush.msra.mxu0 %v2744_v14 }
0x15ed   : > { %v2588_v21 = vpop.f32.mrf.mxu0 }
0x15ee   : > { %3690 = vmatmul.msk.f32.vlgmr.msrb.gmra.mxu1 %vm1143_vm1, %v2588_v21 }
0x15ef   : > { %2836 = vmatpush.msrb.mxu1 %v2743_v27 }
0x15f5   : > { %v2736_v8 = vpop.f32.mrf.mxu0 }
0x15f6   : > { %v2737_v13 = vadd.f32 %v3956_v9, %v2736_v8 }
0x15fd   : > { %v2739_v11 = vpop.f32.mrf.mxu0 }
0x15fe   : > { %v2740_v0 = vadd.f32 %v3956_v9, %v2739_v11 }
0x1600   : > { %2812 = vmatpush.msrb.mxu3 %v2740_v0  ;;  %v5239_v17 = vpack.i.bf16 %v2737_v13, %v2740_v0 }
0x1602   : > { %2813 = vmatpush.msrb.mxu3 %v2737_v13 }
0x163d   : > { %v2522_v3 = vpop.f32.mrf.mxu3 }
0x163e   : > { %v2525_v22 = vadd.f32 %v2522_v3, %v2436_v58 }
0x166b   : > { %v2611_v23 = vpop.f32.mrf.mxu1 }
0x166c   : > { %v2614_v24 = vadd.f32 %v2611_v23, %v2525_v22 }
0x166e   : > { %v2615_v25 = vadd.f32 %v2614_v24, %v5118_v10 }
0x1670   : > { %v2616_v26 = vsel %vm1075_vm0, %v2615_v25, 0.0 }
0x1671   : > { %2617 = vadd.xlane.f32.xlu1 %v2616_v26 }
0x16e4   : > { %v2618_v28 = vpop.xlane.xlu1 %2617 }
0x16e5   : > { %v2619_v29 = vmul.f32 %v2618_v28, %v4934_v35 }
0x16e7   : > { %v2620_v30 = vsub.f32 %v2615_v25, %v2619_v29 }
0x16e9   : > { %v2621_v31 = vmul.f32 %v2620_v30, %v2620_v30 }
0x16eb   : > { %v2622_v32 = vsel %vm1075_vm0, %v2621_v31, 0.0 }
0x16ec   : > { %2623 = vadd.xlane.f32.xlu1 %v2622_v32 }
0x1705   : > { %2846 = vrot.lane.b32.xlu1 %v5225_v6, %s5516_s15 }
0x170d   : > { %2844 = vrot.lane.b32.xlu1 %v5227_v12, %s5516_s15 }
0x175f   : > { %v2624_v41 = vpop.xlane.xlu1 %2623 }
0x1760   : > { %v2625_v43 = vmul.f32 %v2624_v41, %v4934_v35 }
0x1762   : > { %v2626_v47 = vadd.f32 1e-05, %v2625_v43 }
0x1764   : > { %4016 = vrsqrt.f32 %v2626_v47  ;;  %vm2633_vm15 = vweird.f32 %v2626_v47 }
0x176a   : > { %v4017_v49 = vpop.eup %4016 }
0x176b   : > { %v2628_v50 = vmul.f32 %v4017_v49, %v2626_v47  ;;  %vm2634_vm14 = vweird.f32 %v4017_v49 }
0x176c   : > { %vm2635_vm2 = vmor %vm2633_vm15, %vm2634_vm14 }
0x176d   : > { %v2629_v51 = vmul.f32 %v4017_v49, %v2628_v50 }
0x176f   : > { %v2630_v52 = vmul.f32 0.5, %v2629_v51 }
0x1771   : > { %v2631_v54 = vsub.f32 1.5, %v2630_v52 }
0x1773   : > { %v2632_v56 = vmul.f32 %v4017_v49, %v2631_v54 }
0x1775   : > { %v2636_v57 = vsel %vm2635_vm2, %v4017_v49, %v2632_v56 }
0x1776   : > { %v2637_v58 = vmul.f32 %v2636_v57, %v2620_v30 }
0x1777   : > { %v2847_v18 = vpop.permute.xlu1 %2846 }
0x1778   : > { %v2639_v59 = vmul.f32 %v2638_v42, %v2637_v58 }
0x177a   : > { %v5220_v60 = vadd.f32 %v2640_v46, %v2639_v59 }
0x177c   : > { %v2642_v62 = vadd.f32 %v4042_v61, %v5220_v60 }
0x177e   : > { %3695 = vmatmul.msk.f32.vlgmr.msra.gmra.mxu3 %vm1075_vm0, %v2642_v62 }
0x177f   : > { %3705 = vmatpush.xpose.msk.msra.mxu3 %vm1143_vm1, %v2847_v18  ;;  %v2845_v19 = vpop.permute.xlu1 %2844 }
0x1783   : > { %3706 = vmatpush.xpose.msk.msra.mxu3 %vm1143_vm1, %v2845_v19 }
0x1801   : > { %v2673_v15 = vpop.f32.mrf.mxu3 }
0x1802   : > { %v2674_v16 = vadd.f32 %v3955_v2, %v2673_v15 }
0x1804   : > { %v2749_v7 = vmul.f32 0.35355338, %v2674_v16 }
0x1806   : > { %2842 = vrot.lane.b32.xlu1 %v2749_v7, %s5516_s15  ;;  %3702 = vmatmul.msk.f32.vlgmr.msra.gmra.mxu1 %vm1143_vm1, %v2749_v7 }
0x180e   : > { %3928 = vrot.lane.b32.xlu1 %v5239_v17, %s5516_s15  ;;  %s3297_s15 = scalar_lea.sflag [#allocation22], %s5043_s9 }
0x1816   : > { %2941 = vrot.lane.b32.xlu1 %v2749_v7, %s5513_s30 }
0x181e   : > { %3042 = vrot.lane.b32.xlu1 %v5225_v6, %s5518_s29 }
0x1826   : > { %3040 = vrot.lane.b32.xlu1 %v5227_v12, %s5518_s29 }
0x1878   : > { %v2843_v20 = vpop.permute.xlu1 %2842 }
0x1880   : > { %v3929_v21 = vpop.permute.xlu1 %3928 }
0x1881   : > { %v3931_v3 = vunpack.i.h.bf16 %v3929_v21  ;;  %v3930_v22 = vunpack.i.l.bf16 %v3929_v21  ;;  %v2745_v21 = vld [vmem:[#allocation11 + $0x30] sm:$0xff] }
0x1883   : > { %v2780_v23 = vpop.f32.mrf.mxu1  ;;  %2911 = vmatpush.msrb.mxu2 %v3930_v22 }
0x1884   : > { %v2783_v24 = vsel %vm1674_vm6, %v2780_v23, -inf }
0x1885   : > { %2784 = vmax.xlane.f32.xlu2 %v2783_v24  ;;  %2912 = vmatpush.msrb.mxu2 %v3931_v3 }
0x1887   : > { %3032 = vmatpush.msra.mxu2 %v2745_v21 }
0x1888   : > { %v2942_v25 = vpop.permute.xlu1 %2941 }
0x1890   : > { %v3043_v26 = vpop.permute.xlu1 %3042 }
0x1891   : > { %3715 = vmatpush.xpose.msk.msrb.mxu0 %vm1143_vm1, %v3043_v26 }
0x1898   : > { %v3041_v28 = vpop.permute.xlu1 %3040 }
0x1899   : > { %3716 = vmatpush.xpose.msk.msrb.mxu0 %vm1143_vm1, %v3041_v28  ;;  %v2746_v28 = vld [vmem:[#allocation11 + $0x38] sm:$0xff] }
0x18f8   : > { %v2785_v29 = vpop.xlane.xlu2 %2784 }
0x18f9   : > { %v2786_v30 = vsub.f32 %v2780_v23, %v2785_v29 }
0x18fb   : > { %v2787_v31 = vmul.f32 1.442695, %v2786_v30  ;;  %v3957_v30 = vld [vmem:[#allocation13 + $0x1] ss:$0 sm:$0xff] }
0x18fd   : > { %4018 = vpow2.f32 %v2787_v31 }
0x1903   : > { %v4019_v32 = vpop.eup %4018 }
0x1904   : > { %v2789_v33 = vsel %vm1674_vm6, %v4019_v32, 0.0 }
0x1905   : > { %2790 = vadd.xlane.f32.xlu0 %v2789_v33 }
0x1978   : > { %v2791_v34 = vpop.xlane.xlu0 %2790 }
0x1979   : > { %4020 = vrcp.f32 %v2791_v34 }
0x197f   : > { %v4021_v36 = vpop.eup %4020 }
0x1980   : > { %v5254_v37 = vmul.f32 %v4021_v36, %v4019_v32 }
0x1982   : > { %3703 = vmatmul.msk.f32.vlgmr.msrb.gmra.mxu3 %vm1674_vm6, %v5254_v37 }
0x198a   : > { %3707 = vmatmul.msk.f32.vlgmr.msra.gmra.mxu3 %vm1143_vm1, %v2843_v20 }
0x1a05   : > { %v2815_v5 = vpop.f32.mrf.mxu3 }
0x1a06   : > { %3704 = vmatmul.msk.f32.vlgmr.msrb.gmra.mxu1 %vm1143_vm1, %v2815_v5 }
0x1a0d   : > { %v2871_v38 = vpop.f32.mrf.mxu3 }
0x1a0e   : > { %v2874_v39 = vsel %vm1674_vm6, %v2871_v38, -inf }
0x1a0f   : > { %2875 = vmax.xlane.f32.xlu2 %v2874_v39 }
0x1a27   : > { %2945 = vrot.lane.b32.xlu2 %v5225_v6, %s5513_s30 }
0x1a82   : > { %v2876_v45 = vpop.xlane.xlu2 %2875 }
0x1a83   : > { %v2877_v48 = vsub.f32 %v2871_v38, %v2876_v45  ;;  %v2838_v52 = vpop.f32.mrf.mxu1 }
0x1a84   : > { %v2841_v31 = vadd.f32 %v3957_v30, %v2838_v52 }
0x1a85   : > { %v2878_v40 = vmul.f32 1.442695, %v2877_v48 }
0x1a87   : > { %4022 = vpow2.f32 %v2878_v40 }
0x1a8a   : > { %v2946_v41 = vpop.permute.xlu2 %2945 }
0x1a8b   : > { %3710 = vmatpush.xpose.msk.msra.mxu1 %vm1143_vm1, %v2946_v41  ;;  %v2150_v41 = vsel %vm1075_vm0, %v5118_v10, 0.0 }
0x1a8d   : > { %v4023_v43 = vpop.eup %4022 }
0x1a8e   : > { %v2880_v44 = vsel %vm1674_vm6, %v4023_v43, 0.0 }
0x1a8f   : > { %2881 = vadd.xlane.f32.xlu0 %v2880_v44  ;;  %v3166_v44 = vld [vmem:[#allocation14 + $0x30] sm:$0xff] }
0x1aa3   : > { %2943 = vrot.lane.b32.xlu0 %v5227_v12, %s5513_s30 }
0x1aab   : > { %3038 = vrot.lane.b32.xlu0 %v2749_v7, %s5518_s29 }
0x1b02   : > { %v2882_v47 = vpop.xlane.xlu0 %2881 }
0x1b03   : > { %4024 = vrcp.f32 %v2882_v47  ;;  %v3164_v47 = vld [vmem:[#allocation14 + $0x20] sm:$0xff] }
0x1b09   : > { %v4025_v49 = vpop.eup %4024 }
0x1b0a   : > { %v2884_v50 = vmul.f32 %v4025_v49, %v4023_v43  ;;  %v3167_v43 = vld [vmem:[#allocation14 + $0x38] sm:$0xff]  ;;  %v3728_v49 = vld [vmem:[%s5429_s21 + $0x78] sm:$0xff] }
0x1b0c   : > { %3708 = vmatmul.msk.f32.vlgmr.msrb.gmra.mxu2 %vm1674_vm6, %v2884_v50  ;;  %v2885_v15 = vadd.f32 %v2884_v50, %v5254_v37  ;;  %v3727_v50 = vld [vmem:[%s5429_s21 + $0x70] sm:$0xff] }
0x1b0d   : > { %3188 = vmatpush.msrb.mxu2 %v3167_v43 }
0x1b0f   : > { %3189 = vmatpush.msrb.mxu2 %v3166_v44 }
0x1b15   : > { %v2944_v51 = vpop.permute.xlu0 %2943 }
0x1b16   : > { %3711 = vmatpush.xpose.msk.msra.mxu1 %vm1143_vm1, %v2944_v51  ;;  %v3726_v51 = vld [vmem:[%s5429_s21 + $0x68] sm:$0xff] }
0x1b19   : > { %3712 = vmatmul.msk.f32.vlgmr.msra.gmra.mxu1 %vm1143_vm1, %v2942_v25 }
0x1b1d   : > { %v3039_v42 = vpop.permute.xlu0 %3038 }
0x1b8f   : > { %v2914_v54 = vpop.f32.mrf.mxu2 }
0x1b90   : > { %3709 = vmatmul.msk.f32.vlgmr.msra.gmra.mxu0 %vm1143_vm1, %v2914_v54 }
0x1b91   : > { %3222 = vmatpush.msra.mxu0 %v3728_v49 }
0x1b93   : > { %3223 = vmatpush.msra.mxu0 %v3727_v50 }
0x1b95   : > { %3224 = vmatpush.msra.mxu0 %v3726_v51 }
0x1b96   : > { %v2970_v56 = vpop.f32.mrf.mxu1 }
0x1b97   : > { %v2973_v57 = vsel %vm1674_vm6, %v2970_v56, -inf }
0x1b98   : > { %2974 = vmax.xlane.f32.xlu2 %v2973_v57  ;;  %3717 = vmatmul.msk.f32.vlgmr.msrb.gmra.mxu0 %vm1143_vm1, %v3039_v42  ;;  %v3724_v57 = vld [vmem:[%s5429_s21 + $0x58] sm:$0xff] }
0x1bb0   : > { %3933 = vrot.lane.b32.xlu2 %v5239_v17, %s5513_s30  ;;  %s3326_s30 = sshll.u32 %s3323_s16, 4  ;;  %s3327_s30 = int_to_ptr.hbm [resolvable:$true] %s3326_s30 }
0x1c0b   : > { %v2975_v46 = vpop.xlane.xlu2 %2974 }
0x1c0c   : > { %v2976_v58 = vsub.f32 %v2970_v56, %v2975_v46  ;;  %v3725_v56 = vld [vmem:[%s5429_s21 + $0x60] sm:$0xff] }
0x1c0d   : > { %v2937_v59 = vpop.f32.mrf.mxu0  ;;  %3225 = vmatpush.msra.mxu0 %v3725_v56 }
0x1c0e   : > { %v2977_v61 = vmul.f32 1.442695, %v2976_v58  ;;  %v2940_v33 = vadd.f32 %v2937_v59, %v2841_v31 }
0x1c0f   : > { %3226 = vmatpush.msra.mxu0 %v3724_v57 }
0x1c10   : > { %4026 = vpow2.f32 %v2977_v61 }
0x1c13   : > { %v3934_v62 = vpop.permute.xlu2 %3933 }
0x1c14   : > { %v3935_v63 = vunpack.i.l.bf16 %v3934_v62  ;;  %v3936_v6 = vunpack.i.h.bf16 %v3934_v62 }
0x1c15   : > { %v3067_v1 = vpop.f32.mrf.mxu0 }
0x1c16   : > { %v4027_v4 = vpop.eup %4026  ;;  %3008 = vmatpush.msrb.mxu3 %v3935_v63  ;;  %v3070_v12 = vsel %vm1674_vm6, %v3067_v1, -inf }
0x1c17   : > { %3071 = vmax.xlane.f32.xlu1 %v3070_v12  ;;  %v2979_v8 = vsel %vm1674_vm6, %v4027_v4, 0.0  ;;  %v3161_v12 = vperm.slane %v5216_v55, 1 }
0x1c18   : > { %2980 = vadd.xlane.f32.xlu0 %v2979_v8  ;;  %3009 = vmatpush.msrb.mxu3 %v3936_v6 }
0x1c1a   : > { %3129 = vmatpush.msra.mxu3 %v2746_v28 }
0x1c2c   : > { %3938 = vrot.lane.b32.xlu0 %v5239_v17, %s5518_s29  ;;  %s4389_s29 = sshra.s32 %s3327_s30, 4  ;;  %s4390_s29 = int_to_ptr.hbm [resolvable:$true] %s4389_s29 }
0x1c2d   : > { %s4391_s1 = scalar_lea.hbm %s4390_s29, 16  ;;  %p4396_p3 = scmp.lt.s32.totalorder %s4390_s29, %s5520_s12 }
0x1c2e   : > { %p4392_p0 = scmp.ne.s32.totalorder %s4390_s29, %s4391_s1  ;;  %p4397_p4 = scmp.lt.s32.totalorder %s4395_s14, %s4391_s1 }
0x1c30   : > { %p4393_p1 = pnand %p4392_p0, %p4696_p5  ;;  %p4398_p7 = por %p4397_p4, %p4396_p3 }
0x1c32   : > { %p4394_p2 = pneg %p4393_p1 }
0x1c34   : > { %p4399_p8 = pnand %p4398_p7, %p4394_p2 }
0x1c8a   : > { %v3072_v9 = vpop.xlane.xlu1 %3071 }
0x1c8b   : > { %v3073_v11 = vsub.f32 %v3067_v1, %v3072_v9  ;;  %v2981_v0 = vpop.xlane.xlu0 %2980  ;;  %v3159_v1 = vperm.slane %v5214_v53, 1 }
0x1c8c   : > { %4028 = vrcp.f32 %v2981_v0  ;;  %v3722_v0 = vld [vmem:[%s5429_s21 + $0x48] sm:$0xff] }
0x1c8d   : > { %v3074_v13 = vmul.f32 1.442695, %v3073_v11  ;;  %v3723_v11 = vld [vmem:[%s5429_s21 + $0x50] sm:$0xff] }
0x1c8e   : > { %3227 = vmatpush.msra.mxu0 %v3723_v11 }
0x1c8f   : > { %4030 = vpow2.f32 %v3074_v13  ;;  %v3721_v13 = vld [vmem:[%s5429_s21 + $0x40] sm:$0xff] }
0x1c90   : > { %3228 = vmatpush.msra.mxu0 %v3722_v0 }
0x1c92   : > { %v4029_v2 = vpop.eup %4028  ;;  %3229 = vmatpush.msra.mxu0 %v3721_v13 }
0x1c93   : > { %v2983_v16 = vmul.f32 %v4029_v2, %v4027_v4  ;;  %v3958_v2 = vld [vmem:[#allocation16 + $0x1] ss:$0 sm:$0xff] }
0x1c95   : > { %v4031_v7 = vpop.eup %4030  ;;  %v2984_v18 = vadd.f32 %v2983_v16, %v2885_v15  ;;  %3713 = vmatmul.msk.f32.vlgmr.msrb.gmra.mxu3 %vm1674_vm6, %v2983_v16 }
0x1c96   : > { %v3076_v19 = vsel %vm1674_vm6, %v4031_v7, 0.0 }
0x1c97   : > { %3077 = vadd.xlane.f32.xlu1 %v3076_v19 }
0x1c9e   : > { %v3939_v14 = vpop.permute.xlu0 %3938 }
0x1c9f   : > { %v3940_v17 = vunpack.i.l.bf16 %v3939_v14  ;;  %v3941_v20 = vunpack.i.h.bf16 %v3939_v14 }
0x1ca1   : > { %3105 = vmatpush.msrb.mxu1 %v3940_v17 }
0x1ca3   : > { %3106 = vmatpush.msrb.mxu1 %v3941_v20 }
0x1d0a   : > { %v3078_v3 = vpop.xlane.xlu1 %3077 }
0x1d0b   : > { %4032 = vrcp.f32 %v3078_v3 }
0x1d11   : > { %v4033_v22 = vpop.eup %4032 }
0x1d12   : > { %v3080_v23 = vmul.f32 %v4033_v22, %v4031_v7 }
0x1d14   : > { %v3081_v24 = vadd.f32 %v3080_v23, %v2984_v18  ;;  %3718 = vmatmul.msk.f32.vlgmr.msrb.gmra.mxu1 %vm1674_vm6, %v3080_v23  ;;  %v3959_v18 = vld [vmem:[#allocation17 + $0x1] ss:$0 sm:$0xff] }
0x1d16   : > { %v3135_v25 = vmul.f32 0.25, %v3081_v24 }
0x1d18   : > { %3731 = vst.msk [vmem:[%s5049_s28 + $0x8] sm:$0xff] %vm1674_vm6, %v3135_v25  ;;  %v3011_v26 = vpop.f32.mrf.mxu3 }
0x1d19   : > { %3714 = vmatmul.msk.f32.vlgmr.msra.gmra.mxu2 %vm1143_vm1, %v3011_v26 }
0x1d91   : > { %v3108_v29 = vpop.f32.mrf.mxu1 }
0x1d92   : > { %3719 = vmatmul.msk.f32.vlgmr.msra.gmra.mxu3 %vm1143_vm1, %v3108_v29 }
0x1d9c   : > { %v3034_v32 = vpop.f32.mrf.mxu2 }
0x1d9d   : > { %v3037_v34 = vadd.f32 %v3034_v32, %v2940_v33 }
0x1e15   : > { %v3131_v36 = vpop.f32.mrf.mxu3 }
0x1e16   : > { %v3134_v37 = vadd.f32 %v3131_v36, %v3037_v34  ;;  %v3257_v36 = vperm.slane %v5214_v53, 2 }
0x1e18   : > { %v3136_v27 = vadd.f32 %v3134_v37, %v5220_v60  ;;  %v3165_v60 = vld [vmem:[#allocation14 + $0x28] sm:$0xff] }
0x1e19   : > { %3190 = vmatpush.msrb.mxu2 %v3165_v60 }
0x1e1a   : > { %v3137_v5 = vsel %vm1075_vm0, %v3136_v27, 0.0 }
0x1e1b   : > { %3138 = vadd.xlane.f32.xlu1 %v3137_v5  ;;  %3191 = vmatpush.msrb.mxu2 %v3164_v47 }
0x1e8e   : > { %v3139_v38 = vpop.xlane.xlu1 %3138 }
0x1e8f   : > { %v3140_v39 = vmul.f32 %v3139_v38, %v4934_v35  ;;  %v3259_v38 = vperm.slane %v5216_v55, 2 }
0x1e91   : > { %v3141_v45 = vsub.f32 %v3136_v27, %v3140_v39 }
0x1e93   : > { %v3142_v48 = vmul.f32 %v3141_v45, %v3141_v45 }
0x1e95   : > { %v3143_v40 = vsel %vm1075_vm0, %v3142_v48, 0.0 }
0x1e96   : > { %3144 = vadd.xlane.f32.xlu1 %v3143_v40 }
0x1e9e   : > { %2151 = vadd.xlane.f32.xlu1 %v2150_v41 }
0x1f09   : > { %v3145_v52 = vpop.xlane.xlu1 %3144 }
0x1f0a   : > { %v3146_v54 = vmul.f32 %v3145_v52, %v4934_v35 }
0x1f0c   : > { %v3147_v42 = vadd.f32 1e-05, %v3146_v54 }
0x1f0e   : > { %4034 = vrsqrt.f32 %v3147_v42  ;;  %vm3154_vm3 = vweird.f32 %v3147_v42 }
0x1f11   : > { %v2152_v37 = vpop.xlane.xlu1 %2151 }
0x1f12   : > { %v2153_v39 = vmul.f32 %v2152_v37, %v4934_v35 }
0x1f14   : > { %v4035_v46 = vpop.eup %4034  ;;  %v2154_v40 = vsub.f32 %v5118_v10, %v2153_v39 }
0x1f15   : > { %v3149_v58 = vmul.f32 %v4035_v46, %v3147_v42  ;;  %vm3155_vm1 = vweird.f32 %v4035_v46 }
0x1f16   : > { %vm3156_vm4 = vmor %vm3154_vm3, %vm3155_vm1  ;;  %v2155_v43 = vmul.f32 %v2154_v40, %v2154_v40 }
0x1f17   : > { %v3150_v59 = vmul.f32 %v4035_v46, %v3149_v58 }
0x1f18   : > { %v2156_v44 = vsel %vm1075_vm0, %v2155_v43, 0.0 }
0x1f19   : > { %v3151_v61 = vmul.f32 0.5, %v3150_v59 }
0x1f1b   : > { %v3152_v62 = vsub.f32 1.5, %v3151_v61  ;;  %v4043_v61 = vld [vmem:[%s5431_s23] sm:$0xf] }
0x1f1d   : > { %v3153_v63 = vmul.f32 %v4035_v46, %v3152_v62  ;;  %v2172_v62 = vperm.slane %v4043_v61, 3 }
0x1f1f   : > { %v3157_v4 = vsel %vm3156_vm4, %v4035_v46, %v3153_v63 }
0x1f20   : > { %v3158_v6 = vmul.f32 %v3157_v4, %v3141_v45 }
0x1f22   : > { %v3160_v8 = vmul.f32 %v3159_v1, %v3158_v6  ;;  %v4044_v1 = vld [vmem:[#allocation19] sm:$0xf] }
0x1f23   : > { %v2174_v4 = vperm.slane %v4044_v1, 3 }
0x1f24   : > { %v3162_v9 = vadd.f32 %v3161_v12, %v3160_v8 }
0x1f26   : > { %3720 = vmatmul.msk.f32.vlgmr.msrb.gmra.mxu2 %vm1075_vm0, %v3162_v9 }
0x1fa9   : > { %v3193_v15 = vpop.f32.mrf.mxu2 }
0x1faa   : > { %v3194_v16 = vadd.f32 %v3958_v2, %v3193_v15 }
0x1fac   : > { %v3196_v7 = vmax.f32 %v3194_v16, 0.0 }
0x1fae   : > { %3729 = vmatmul.msk.f32.vlgmr.msra.gmra.mxu0 %vm2099_vm10, %v3196_v7 }
0x202b   : > { %v3231_v19 = vpop.f32.mrf.mxu0 }
0x202c   : > { %v3232_v14 = vadd.f32 %v3959_v18, %v3231_v19 }
0x202e   : > { %v3234_v17 = vadd.f32 %v3232_v14, %v3162_v9 }
0x2030   : > { %v3235_v20 = vsel %vm1075_vm0, %v3234_v17, 0.0 }
0x2031   : > { %3236 = vadd.xlane.f32.xlu2 %v3235_v20 }
0x20a4   : > { %v3237_v21 = vpop.xlane.xlu2 %3236 }
0x20a5   : > { %v3238_v3 = vmul.f32 %v3237_v21, %v4934_v35 }
0x20a7   : > { %v3239_v22 = vsub.f32 %v3234_v17, %v3238_v3 }
0x20a9   : > { %v3240_v23 = vmul.f32 %v3239_v22, %v3239_v22 }
0x20ab   : > { %v3241_v24 = vsel %vm1075_vm0, %v3240_v23, 0.0 }
0x20ac   : > { %3242 = vadd.xlane.f32.xlu0 %v3241_v24 }
0x211f   : > { %v3243_v25 = vpop.xlane.xlu0 %3242 }
0x2120   : > { %v3244_v26 = vmul.f32 %v3243_v25, %v4934_v35 }
0x2122   : > { %v3245_v28 = vadd.f32 1e-05, %v3244_v26 }
0x2124   : > { %4036 = vrsqrt.f32 %v3245_v28  ;;  %vm3252_vm6 = vweird.f32 %v3245_v28 }
0x212a   : > { %v4037_v29 = vpop.eup %4036 }
0x212b   : > { %v3247_v30 = vmul.f32 %v4037_v29, %v3245_v28  ;;  %vm3253_vm5 = vweird.f32 %v4037_v29 }
0x212c   : > { %vm3254_vm7 = vmor %vm3252_vm6, %vm3253_vm5 }
0x212d   : > { %v3248_v31 = vmul.f32 %v4037_v29, %v3247_v30 }
0x212f   : > { %v3249_v32 = vmul.f32 0.5, %v3248_v31 }
0x2131   : > { %v3250_v33 = vsub.f32 1.5, %v3249_v32 }
0x2133   : > { %v3251_v34 = vmul.f32 %v4037_v29, %v3250_v33 }
0x2135   : > { %v3255_v27 = vsel %vm3254_vm7, %v4037_v29, %v3251_v34 }
0x2136   : > { %v3256_v5 = vmul.f32 %v3255_v27, %v3239_v22 }
0x2138   : > { %v3258_v45 = vmul.f32 %v3257_v36, %v3256_v5 }
0x213a   : > { %v3260_v48 = vadd.f32 %v3259_v38, %v3258_v45 }
0x213c   : > { %v3261_v41 = vsel %vm1075_vm0, %v3260_v48, 0.0 }
0x213d   : > { %3262 = vadd.xlane.f32.xlu1 %v3261_v41 }
0x2145   : > { %2157 = vadd.xlane.f32.xlu1 %v2156_v44 }
0x21b0   : > { %v3263_v60 = vpop.xlane.xlu1 %3262 }
0x21b1   : > { %v3264_v47 = vmul.f32 %v3263_v60, %v4934_v35 }
0x21b3   : > { %v5334_v49 = vsub.f32 %v3260_v48, %v3264_v47 }
0x21b5   : > { %v3266_v50 = vmul.f32 %v5334_v49, %v5334_v49 }
0x21b7   : > { %v3267_v51 = vsel %vm1075_vm0, %v3266_v50, 0.0 }
0x21b8   : > { %3268 = vadd.xlane.f32.xlu1 %v3267_v51  ;;  %v2158_v10 = vpop.xlane.xlu1 %2157 }
0x21b9   : > { %v2159_v52 = vmul.f32 %v2158_v10, %v4934_v35 }
0x21bb   : > { %v2160_v54 = vadd.f32 1e-05, %v2159_v52 }
0x21bd   : > { %4038 = vrsqrt.f32 %v2160_v54  ;;  %vm2167_vm9 = vweird.f32 %v2160_v54 }
0x21c3   : > { %v4039_v56 = vpop.eup %4038 }
0x21c4   : > { %v2162_v42 = vmul.f32 %v4039_v56, %v2160_v54  ;;  %vm2168_vm8 = vweird.f32 %v4039_v56 }
0x21c5   : > { %vm2169_vm10 = vmor %vm2167_vm9, %vm2168_vm8 }
0x21c6   : > { %v2163_v57 = vmul.f32 %v4039_v56, %v2162_v42 }
0x21c8   : > { %v2164_v46 = vmul.f32 0.5, %v2163_v57 }
0x21ca   : > { %v2165_v58 = vsub.f32 1.5, %v2164_v46 }
0x21cc   : > { %v2166_v59 = vmul.f32 %v4039_v56, %v2165_v58 }
0x21ce   : > { %v2170_v63 = vsel %vm2169_vm10, %v4039_v56, %v2166_v59 }
0x21cf   : > { %v2171_v6 = vmul.f32 %v2170_v63, %v2154_v40 }
0x21d0   : > { %4402 = shalt.err (!%p4399_p8)
}
0x21d1   : > { %s5465_s16 = smov 128   ;;  %s4521_s2 = smov 256   ;;  %v2173_v12 = vmul.f32 %v2172_v62, %v2171_v6  ;;  %v3283_v19 = vperm.slane %v5214_v53, 3  ;;  %v3285_v14 = vperm.slane %v5216_v55, 3 }
0x21d2   : > { %s4522_s4 = smov 8   ;;  %s5522_s28 = sshll.u32 %s5043_s9, 4 }
0x21d3   : > { %3785 = dma.vmem_to_hbm [thread:$0]  (%p4696_p5), %s3325_s13, 256, %s3327_s30, %s3297_s15, %s5465_s16, %s4521_s2, %s4522_s4   ;;  %v2175_v8 = vadd.f32 %v2174_v4, %v2173_v12 }
0x21d4   : > { %s1024_s0 = scalar_lea.vmem [#allocation20], %s5522_s28  ;;  %s5523_s7 = sshll.u32 %s4679_s8, 3 }
0x21d5   : > { %2176 = vst.msk [vmem:[%s1024_s0] sm:$0xff] %vm1075_vm0, %v2175_v8  ;;  %s5524_s15 = sld [smem:[#allocation54_spill]]  ;;  %s3308_s1 = sshll.u32 %s1024_s0, 4  ;;  %s3309_s1 = int_to_ptr.vmem [resolvable:$true] %s3308_s1 }
0x21d6   : > { %s3292_s6 = scalar_lea.sflag [#allocation4], %s5043_s9 }
0x21db   : > { %s3307_s29 = scalar_lea.hbm %s5524_s15, %s5523_s7  ;;  %s4423_s30 = scalar_lea.hbm %s5524_s15, 32 }
0x21dc   : > { %s3310_s14 = sshll.u32 %s3307_s29, 4  ;;  %s3311_s14 = int_to_ptr.hbm [resolvable:$true] %s3310_s14 }
0x21dd   : > { %s4417_s8 = sshra.s32 %s3311_s14, 4  ;;  %s4418_s8 = int_to_ptr.hbm [resolvable:$true] %s4417_s8 }
0x21de   : > { %s4419_s28 = scalar_lea.hbm %s4418_s8, 16  ;;  %p4424_p12 = scmp.lt.s32.totalorder %s4418_s8, %s5524_s15 }
0x21df   : > { %p4420_p9 = scmp.ne.s32.totalorder %s4418_s8, %s4419_s28  ;;  %p4425_p13 = scmp.lt.s32.totalorder %s4423_s30, %s4419_s28 }
0x21e1   : > { %p4421_p10 = pnand %p4420_p9, %p4696_p5  ;;  %p4426_p0 = por %p4425_p13, %p4424_p12 }
0x21e3   : > { %p4422_p11 = pneg %p4421_p10 }
0x21e5   : > { %p4427_p1 = pnand %p4426_p0, %p4422_p11 }
0x222b   : > { %v3269_v9 = vpop.xlane.xlu1 %3268 }
0x222c   : > { %v3270_v11 = vmul.f32 %v3269_v9, %v4934_v35 }
0x222e   : > { %v3271_v0 = vadd.f32 1e-05, %v3270_v11 }
0x2230   : > { %4040 = vrsqrt.f32 %v3271_v0  ;;  %vm3278_vm12 = vweird.f32 %v3271_v0 }
0x2236   : > { %v4041_v13 = vpop.eup %4040 }
0x2237   : > { %v3273_v2 = vmul.f32 %v4041_v13, %v3271_v0  ;;  %vm3279_vm11 = vweird.f32 %v4041_v13 }
0x2238   : > { %vm3280_vm13 = vmor %vm3278_vm12, %vm3279_vm11 }
0x2239   : > { %v3274_v15 = vmul.f32 %v4041_v13, %v3273_v2 }
0x223b   : > { %v3275_v16 = vmul.f32 0.5, %v3274_v15 }
0x223d   : > { %v3276_v7 = vsub.f32 1.5, %v3275_v16 }
0x223f   : > { %v3277_v18 = vmul.f32 %v4041_v13, %v3276_v7 }
0x2241   : > { %v3281_v35 = vsel %vm3280_vm13, %v4041_v13, %v3277_v18 }
0x2242   : > { %v3282_v17 = vmul.f32 %v3281_v35, %v5334_v49 }
0x2244   : > { %v3284_v20 = vmul.f32 %v3283_v19, %v3282_v17 }
0x2246   : > { %v3286_v21 = vadd.f32 %v3285_v14, %v3284_v20 }
0x2248   : > { %3730 = vst.msk [vmem:[%s1024_s0 + $0x8] sm:$0xff] %vm1075_vm0, %v3286_v21 }
0x2249   : > { %4430 = shalt.err (!%p4427_p1)
}
0x224a   : > { %s5525_s9 = smov 128  }
0x224b   : > { %3784 = dma.vmem_to_hbm [thread:$0]  (%p4696_p5), %s3309_s1, 256, %s3311_s14, %s3292_s6, %s5525_s9, %s4521_s2, %s4522_s4  }
0x224c PF: > { %s5526_s0 = sld [smem:[#allocation33_spill]] }
0x224d   : > { %s5527_s5 = sld [smem:[#allocation31_spill]] }
0x2252   : > { %p3851_p2 = scmp.ge.s32.totalorder %s5526_s0, 2 }
0x2253   : > { %s3341_s7 = sand.u32 1, %s5527_s5  }
0x2254   : > { %p3823_p3 = pnand %p3851_p2, %p4700_p6  ;;  %s3342_s16 = scalar_lea.sflag [#allocation4], %s3341_s7 }
0x2256   : > { %p3824_p4 = pneg %p3823_p3 }
0x2258   : > { %4472 = dma.done.wait (%p3824_p4), %s3342_s16, 256  }
0x2259   : > { %4474 = vsyncadd (%p3824_p4), %s3342_s16, 4294967040  ;;  %s3352_s8 = scalar_lea.sflag [#allocation22], %s3341_s7 }
0x225a   : > { %4476 = dma.done.wait (%p3824_p4), %s3352_s8, 256  }
0x225b   : > { %4478 = vsyncadd (%p3824_p4), %s3352_s8, 4294967040  ;;  %s5529_s28 = sld [smem:[#allocation34_spill]]  ;;  %s5532_s27 = smov %s4485_s3 }
0x225c   : > { %s5530_s13 = sld [smem:[#allocation32_spill]] }
0x225d   : > { %s5531_s7 = sld [smem:[#allocation35_spill]] }
0x2261   : > { %p46_p5 = scmp.ge.s32.totalorder %s5529_s28, 4  }
0x2262   : > { %s5533_s3 = smov %s5530_s13 }
0x2263   :  { %48 = sbr.rel (!%p46_p5) target bundleno = 30 (0x1e), region = 251 }
0x2268   :  { %3358 = vsyncpa [#allocation3], 1 }
0x2269   :  { %3360 = vsyncpa [#allocation3 + $0x1], 1 }
0x226a   :  { %3361 = vsyncpa [#allocation6], 1 }
0x226b   :  { %3362 = vsyncpa [#allocation9], 1 }
0x226c   :  { %3363 = vsyncpa [#allocation12], 1 }
0x226d   :  { %3364 = vsyncpa [#allocation15], 1 }
0x226e   :  { %3365 = vsyncpa [#allocation18], 1 }
0x226f   :  { %3366 = vsyncpa [#allocation4], 1 }
0x2270   :  { %3368 = vsyncpa [#allocation4 + $0x1], 1 }
0x2271   :  { %3369 = vsyncpa [#allocation22], 1 }
0x2272   :  { %3371 = vsyncpa [#allocation22 + $0x1], 1 }

</bundles_post_ra>
